<compile_context>
chip_gen: v6e
topology: v6e:2x2x1
jax: 0.10.0
libtpu: 0.0.40
codegen_flags: <defaults>
</compile_context>

<pallas_src>
import jax
import jax.numpy as jnp
from jax import lax
from jax.experimental import pallas as pl
from jax.experimental.pallas import tpu as pltpu


# ----------------------------------------------------------------------------
# Tile choosers.  Budgets are on the RESIDENT footprint: Pallas double-buffers
# every BlockSpec'd operand, so resident ~= 2x the per-step block bytes.  A
# 10 MiB resident cap is safe on all generations (v5e 16 MiB scoped default,
# v6e 32 MiB scoped, v7x 32 MiB scoped / 64 MiB physical) without needing to
# raise vmem_limit_bytes.
# ----------------------------------------------------------------------------
_RESIDENT_VMEM_BUDGET = 10 * 1024 * 1024


def _choose_batch_tile(B, per_batch_bytes, const_bytes,
                       budget=_RESIDENT_VMEM_BUDGET):
    """Largest TB dividing B, with TB <= B//2 when B >= 2 (v7x has 2 TensorCores:
    a 'parallel' axis only shards if it has >= 2 steps), whose double-buffered
    footprint fits the budget."""
    cap = B if B < 2 else max(1, B // 2)
    best = 1
    for tb in range(1, cap + 1):
        if B % tb != 0:
            continue
        if 2 * (tb * per_batch_bytes + const_bytes) <= budget:
            best = tb
    return best


# ----------------------------------------------------------------------------
# Pallas kernel 1: outer product for compl_mul3d, no pre-materialized broadcasts.
#   out[0,b,om,q] = Re(x_ft)[b,q] * Re(w_real)[om]     (om = o*m + w, q = i*m + j)
#   out[1,b,om,q] = Re(x_ft)[b,q] * Im(w_real)[om]
#   out[2,b,om,q] = Im(x_ft)[b,q] * Re(w_imag)[om]
#   out[3,b,om,q] = Im(x_ft)[b,q] * Im(w_imag)[om]
# The replication over 'w' and over (i,j) happens as cheap in-register broadcasts.
# ----------------------------------------------------------------------------
def _compl_outer_kernel(x2_ref, w4_ref, out_ref):
    x2 = x2_ref[...]                     # (TB, 2, Q)
    w4 = w4_ref[...]                     # (4, OM)   resident, tiny
    xr = x2[:, 0:1, :]                   # (TB, 1, Q)
    xi = x2[:, 1:2, :]
    wb = w4[:, None, :, None]            # (4, 1, OM, 1)
    out_ref[0, ...] = xr * wb[0]         # Re(out_real)
    out_ref[1, ...] = xr * wb[1]         # Im(out_real)
    out_ref[2, ...] = xi * wb[2]         # Re(out_imag)
    out_ref[3, ...] = xi * wb[3]         # Im(out_imag)


def compl_mul_pallas(x2, w4):
    B, _, Q = x2.shape
    OM = w4.shape[1]
    per_batch = 4 * (4 * OM * Q + 2 * Q)     # out block + x block bytes (f32), per unit TB
    const = 4 * 4 * OM                        # resident weight block
    TB = _choose_batch_tile(B, per_batch, const)
    # TODO(synk): if even TB=1 overflowed the VMEM budget (huge O*modes*Q) the
    # lane axis would also need splitting; not needed at these shapes.
    grid = (B // TB,)

    cost = pl.CostEstimate(
        flops=4 * B * OM * Q,
        transcendentals=0,
        bytes_accessed=4 * (2 * B * Q + 4 * OM + 4 * B * OM * Q))

    return pl.pallas_call(
        _compl_outer_kernel,
        out_shape=jax.ShapeDtypeStruct((4, B, OM, Q), jnp.float32),
        grid=grid,
        in_specs=[pl.BlockSpec((TB, 2, Q), lambda bi: (bi, 0, 0)),
                  # constant index_map -> weights stay resident, DMA'd once
                  pl.BlockSpec((4, OM), lambda bi: (0, 0))],
        out_specs=pl.BlockSpec((4, TB, OM, Q), lambda bi: (0, bi, 0, 0)),
        compiler_params=pltpu.CompilerParams(
            dimension_semantics=("parallel",)),
        cost_estimate=cost,
    )(x2, w4)


# ----------------------------------------------------------------------------
# Pallas kernel 2: combine_ri Linear, lane-dense on both sides.
#   yT[n, r] = sum_k W[n, k] * XT[k, r] + b[n]
# XT arrives as (K, M) so X loads and (N, TM) stores are lane-dense; the tiny
# 4x16 contraction is K unrolled VPU rank-1 FMAs (no MXU pass).
# ----------------------------------------------------------------------------
def _linear_kernel(xT_ref, w_ref, b_ref, o_ref):
    x = xT_ref[...]                      # (K, TM)  lane-dense
    w = w_ref[...]                       # (N, K)   resident, tiny
    K = x.shape[0]
    acc = jnp.zeros((w.shape[0], x.shape[1]), jnp.float32)
    for k in range(K):                   # K is small & static (4*out_channels)
        acc = acc + w[:, k:k + 1] * x[k:k + 1, :]
    o_ref[...] = acc + b_ref[...]


def linear_pallas_T(XT, W, b):
    """Returns yT of shape (N, M) with yT[n, r] = sum_k W[n,k]*XT[k,r] + b[n]."""
    K, M = XT.shape
    N = W.shape[0]
    if M <= 256:
        TM, Mp = M, M                    # single full-extent block (always legal)
    else:
        half = (M // 2 // 128) * 128     # guarantee >= 2 grid steps (v7x: 2 TCs)
        TM = max(128, min(16384, half))  # big tiles amortize per-step overhead
        Mp = pl.cdiv(M, TM) * TM
        if Mp != M:                      # ragged M: pad, don't assert
            XT = jnp.pad(XT, ((0, 0), (0, Mp - M)))
    b2 = b.reshape(N, 1).astype(jnp.float32)

    cost = pl.CostEstimate(
        flops=2 * Mp * K * N + Mp * N,
        transcendentals=0,
        bytes_accessed=4 * (Mp * K + N * K + N + N * Mp))

    yT = pl.pallas_call(
        _linear_kernel,
        out_shape=jax.ShapeDtypeStruct((N, Mp), jnp.float32),
        grid=(Mp // TM,),
        in_specs=[pl.BlockSpec((K, TM), lambda i: (0, i)),
                  pl.BlockSpec((N, K), lambda i: (0, 0)),
                  pl.BlockSpec((N, 1), lambda i: (0, 0))],
        out_specs=pl.BlockSpec((N, TM), lambda i: (0, i)),
        compiler_params=pltpu.CompilerParams(
            dimension_semantics=("parallel",)),
        cost_estimate=cost,
    )(XT.astype(jnp.float32), W.astype(jnp.float32), b2)

    return yT[:, :M] if Mp != M else yT


# ----------------------------------------------------------------------------
# Parameter init (deterministic, mirrors the torch __init__ shapes)
# ----------------------------------------------------------------------------
def init_params(key, in_channels, out_channels, modes):
    k1, k2, k3, k4, k5, k6 = jax.random.split(key, 6)
    scale = 1.0 / (in_channels * out_channels)
    # torch.rand(..., dtype=cfloat): real & imag each ~ U[0, 1)
    weights_real = scale * (jax.random.uniform(k1, (out_channels, modes))
                            + 1j * jax.random.uniform(k2, (out_channels, modes)))
    weights_imag = scale * (jax.random.uniform(k3, (out_channels, modes))
                            + 1j * jax.random.uniform(k4, (out_channels, modes)))
    fan_in = 4 * out_channels
    bound = 1.0 / jnp.sqrt(fan_in)
    combine_w = jax.random.uniform(k5, (out_channels, fan_in),
                                   minval=-bound, maxval=bound,
                                   dtype=jnp.float32)
    combine_b = jax.random.uniform(k6, (out_channels,),
                                   minval=-bound, maxval=bound,
                                   dtype=jnp.float32)
    return dict(weights_real=weights_real.astype(jnp.complex64),
                weights_imag=weights_imag.astype(jnp.complex64),
                combine_w=combine_w, combine_b=combine_b)


# ----------------------------------------------------------------------------
# Forward pass
# ----------------------------------------------------------------------------
def spectral_conv3d_forward(x, params, modes, out_channels):
    B, D1, D2 = x.shape
    m = modes
    O = out_channels
    Q = D1 * m
    OM = O * m

    # TODO(synk): FFT/IFFT have no Pallas TPU primitive; computed with jnp.fft.
    # Only bins [:m] of the last axis are consumed, so rfftn halves the most
    # expensive transform whenever m <= D2//2 + 1 (guaranteed here).
    if m <= D2 // 2 + 1:
        x_ft = jnp.fft.rfftn(x, axes=(-3, -2, -1))
    else:
        x_ft = jnp.fft.fftn(x, axes=(-3, -2, -1))

    # TODO(synk): the reference slice `[:, :, :m, :m, :m]` over-indexes the 3-D
    # FFT; interpreted (as before) as truncating the last frequency axis to m.
    xr = jnp.real(x_ft)[:, :, :m].reshape(B, Q)
    xi = jnp.imag(x_ft)[:, :, :m].reshape(B, Q)
    x2 = jnp.stack([xr, xi], axis=1).astype(jnp.float32)       # (B, 2, Q)

    wre, wim = params["weights_real"], params["weights_imag"]  # (O, m) complex64
    w4 = jnp.stack([jnp.real(wre), jnp.imag(wre),
                    jnp.real(wim), jnp.imag(wim)]).astype(jnp.float32)  # (4, O, m)
    w4 = w4.reshape(4, OM)

    planes = compl_mul_pallas(x2, w4)                # (4, B, OM, Q)

    # (B, OM, Q) -> (B, O, m, D1, m) is a free, contiguous reshape ('bowij').
    planes = planes.reshape(4, B, O, m, D1, m)
    out_c = lax.complex(planes[::2], planes[1::2])   # (2, B, O, m, D1, m): [out_real, out_imag]

    s = x.shape[-3:]                                 # (B, D1, D2), as in the reference
    # One batched ifftn instead of two separate calls.
    xx = jnp.fft.ifftn(out_c, s=s, axes=(-3, -2, -1))    # (2, B, O, B, D1, D2) complex

    x_r = jnp.concatenate([jnp.real(xx[0]), jnp.real(xx[1])], axis=1)
    x_i = jnp.concatenate([jnp.imag(xx[0]), jnp.imag(xx[1])], axis=1)
    x_ri = jnp.concatenate([x_r, x_i], axis=1)       # (B, 4*O, B, D1, D2)

    lead = x_ri.shape[:-1]
    K = x_ri.shape[-1]
    assert K == 4 * O, "last dim must equal 4*out_channels for combine_ri"

    # Present the Linear's input transposed (K leading) so the kernel reads
    # lane-dense (K, TM) blocks; XLA fuses this with the concat producers.
    XT = jnp.moveaxis(x_ri, -1, 0).reshape(K, -1)    # (K, M)

    yT = linear_pallas_T(XT, params["combine_w"], params["combine_b"])  # (O, M)
    # Fold the output transpose into the final reshape (single fused op).
    return jnp.moveaxis(yT.reshape((O,) + lead), 0, -1)


if __name__ == "__main__":
    in_channels, out_channels, modes = 4, 4, 4
    B, D1 = 8, 8
    D2 = 4 * out_channels            # 16, required by combine_ri on the last dim

    key = jax.random.PRNGKey(0)
    kx, kp = jax.random.split(key)
    x = jax.random.normal(kx, (B, D1, D2), dtype=jnp.float32)
    params = init_params(kp, in_channels, out_channels, modes)

    fwd = jax.jit(spectral_conv3d_forward, static_argnums=(2, 3))
    y = jax.block_until_ready(fwd(x, params, modes, out_channels))

    assert y.shape == (B, 4 * out_channels, B, D1, out_channels)
    assert y.dtype == jnp.float32
    print("KERNEL_OK")
</pallas_src>

<mosaic_0001>
module attributes {stable_mosaic.version = 11 : i64} {
  func.func @_compl_outer_kernel(%arg0: i32, %arg1: memref<4x2x32xf32, #tpu.memory_space<vmem>>, %arg2: memref<4x16xf32, #tpu.memory_space<vmem>>, %arg3: memref<4x4x16x32xf32, #tpu.memory_space<vmem>>) attributes {dimension_semantics = [#tpu.dimension_semantics<parallel>], iteration_bounds = array<i64: 2>, scalar_prefetch = 0 : i64, scratch_operands = 0 : i64, tpu.core_type = #tpu.core_type<tc>, window_params = [{transform_indices = @transform_0, window_bounds = array<i64: 4, 2, 32>}, {pipeline_mode = #tpu.pipeline_mode<synchronous>, transform_indices = @transform_1, window_bounds = array<i64: 4, 16>}, {transform_indices = @transform_2, window_bounds = array<i64: 4, 4, 16, 32>}]} {
    %c0 = arith.constant 0 : index
    %c0_0 = arith.constant 0 : index
    %c0_1 = arith.constant 0 : index
    %0 = vector.load %arg1[%c0, %c0_0, %c0_1] : memref<4x2x32xf32, #tpu.memory_space<vmem>>, vector<4x2x32xf32>
    %c0_2 = arith.constant 0 : index
    %c0_3 = arith.constant 0 : index
    %1 = vector.load %arg2[%c0_2, %c0_3] : memref<4x16xf32, #tpu.memory_space<vmem>>, vector<4x16xf32>
    %2 = vector.extract_strided_slice %0 {offsets = [0, 0, 0], sizes = [4, 1, 32], strides = [1, 1, 1]} : vector<4x2x32xf32> to vector<4x1x32xf32>
    %3 = vector.extract_strided_slice %0 {offsets = [0, 1, 0], sizes = [4, 1, 32], strides = [1, 1, 1]} : vector<4x2x32xf32> to vector<4x1x32xf32>
    %4 = vector.shape_cast %1 : vector<4x16xf32> to vector<4x1x16x1xf32>
    %5 = vector.extract_strided_slice %4 {offsets = [0, 0, 0, 0], sizes = [1, 1, 16, 1], strides = [1, 1, 1, 1]} : vector<4x1x16x1xf32> to vector<1x1x16x1xf32>
    %6 = vector.shape_cast %5 : vector<1x1x16x1xf32> to vector<1x16x1xf32>
    %7 = vector.broadcast %2 : vector<4x1x32xf32> to vector<4x16x32xf32>
    %8 = vector.broadcast %6 : vector<1x16x1xf32> to vector<4x16x32xf32>
    %9 = arith.mulf %7, %8 : vector<4x16x32xf32>
    %c0_4 = arith.constant 0 : index
    %c0_5 = arith.constant 0 : index
    %c0_6 = arith.constant 0 : index
    %c0_7 = arith.constant 0 : index
    %10 = vector.load %arg3[%c0_4, %c0_5, %c0_6, %c0_7] : memref<4x4x16x32xf32, #tpu.memory_space<vmem>>, vector<1x4x16x32xf32>
    %11 = vector.shape_cast %10 : vector<1x4x16x32xf32> to vector<4x16x32xf32>
    %12 = vector.shape_cast %9 : vector<4x16x32xf32> to vector<1x4x16x32xf32>
    tpu.vector_store %arg3[%c0_4, %c0_5, %c0_6, %c0_7], %12 {strides = array<i32>} : memref<4x4x16x32xf32, #tpu.memory_space<vmem>>, vector<1x4x16x32xf32>,
    %13 = vector.extract_strided_slice %4 {offsets = [1, 0, 0, 0], sizes = [1, 1, 16, 1], strides = [1, 1, 1, 1]} : vector<4x1x16x1xf32> to vector<1x1x16x1xf32>
    %14 = vector.shape_cast %13 : vector<1x1x16x1xf32> to vector<1x16x1xf32>
    %15 = vector.broadcast %2 : vector<4x1x32xf32> to vector<4x16x32xf32>
    %16 = vector.broadcast %14 : vector<1x16x1xf32> to vector<4x16x32xf32>
    %17 = arith.mulf %15, %16 : vector<4x16x32xf32>
    %c1 = arith.constant 1 : index
    %c0_8 = arith.constant 0 : index
    %c0_9 = arith.constant 0 : index
    %c0_10 = arith.constant 0 : index
    %18 = vector.load %arg3[%c1, %c0_8, %c0_9, %c0_10] : memref<4x4x16x32xf32, #tpu.memory_space<vmem>>, vector<1x4x16x32xf32>
    %19 = vector.shape_cast %18 : vector<1x4x16x32xf32> to vector<4x16x32xf32>
    %20 = vector.shape_cast %17 : vector<4x16x32xf32> to vector<1x4x16x32xf32>
    tpu.vector_store %arg3[%c1, %c0_8, %c0_9, %c0_10], %20 {strides = array<i32>} : memref<4x4x16x32xf32, #tpu.memory_space<vmem>>, vector<1x4x16x32xf32>,
    %21 = vector.extract_strided_slice %4 {offsets = [2, 0, 0, 0], sizes = [1, 1, 16, 1], strides = [1, 1, 1, 1]} : vector<4x1x16x1xf32> to vector<1x1x16x1xf32>
    %22 = vector.shape_cast %21 : vector<1x1x16x1xf32> to vector<1x16x1xf32>
    %23 = vector.broadcast %3 : vector<4x1x32xf32> to vector<4x16x32xf32>
    %24 = vector.broadcast %22 : vector<1x16x1xf32> to vector<4x16x32xf32>
    %25 = arith.mulf %23, %24 : vector<4x16x32xf32>
    %c2 = arith.constant 2 : index
    %c0_11 = arith.constant 0 : index
    %c0_12 = arith.constant 0 : index
    %c0_13 = arith.constant 0 : index
    %26 = vector.load %arg3[%c2, %c0_11, %c0_12, %c0_13] : memref<4x4x16x32xf32, #tpu.memory_space<vmem>>, vector<1x4x16x32xf32>
    %27 = vector.shape_cast %26 : vector<1x4x16x32xf32> to vector<4x16x32xf32>
    %28 = vector.shape_cast %25 : vector<4x16x32xf32> to vector<1x4x16x32xf32>
    tpu.vector_store %arg3[%c2, %c0_11, %c0_12, %c0_13], %28 {strides = array<i32>} : memref<4x4x16x32xf32, #tpu.memory_space<vmem>>, vector<1x4x16x32xf32>,
    %29 = vector.extract_strided_slice %4 {offsets = [3, 0, 0, 0], sizes = [1, 1, 16, 1], strides = [1, 1, 1, 1]} : vector<4x1x16x1xf32> to vector<1x1x16x1xf32>
    %30 = vector.shape_cast %29 : vector<1x1x16x1xf32> to vector<1x16x1xf32>
    %31 = vector.broadcast %3 : vector<4x1x32xf32> to vector<4x16x32xf32>
    %32 = vector.broadcast %30 : vector<1x16x1xf32> to vector<4x16x32xf32>
    %33 = arith.mulf %31, %32 : vector<4x16x32xf32>
    %c3 = arith.constant 3 : index
    %c0_14 = arith.constant 0 : index
    %c0_15 = arith.constant 0 : index
    %c0_16 = arith.constant 0 : index
    %34 = vector.load %arg3[%c3, %c0_14, %c0_15, %c0_16] : memref<4x4x16x32xf32, #tpu.memory_space<vmem>>, vector<1x4x16x32xf32>
    %35 = vector.shape_cast %34 : vector<1x4x16x32xf32> to vector<4x16x32xf32>
    %36 = vector.shape_cast %33 : vector<4x16x32xf32> to vector<1x4x16x32xf32>
    tpu.vector_store %arg3[%c3, %c0_14, %c0_15, %c0_16], %36 {strides = array<i32>} : memref<4x4x16x32xf32, #tpu.memory_space<vmem>>, vector<1x4x16x32xf32>,
    return
  }
  func.func @transform_0(%arg0: i32) -> (i32, i32, i32) {
    %c0_i32 = arith.constant 0 : i32
    %c0_i32_0 = arith.constant 0 : i32
    %c0_i32_1 = arith.constant 0 : i32
    return %arg0, %c0_i32, %c0_i32_0 : i32, i32, i32
  }
  func.func @transform_1(%arg0: i32) -> (i32, i32) {
    %c0_i32 = arith.constant 0 : i32
    %c0_i32_0 = arith.constant 0 : i32
    %c0_i32_1 = arith.constant 0 : i32
    return %c0_i32, %c0_i32_0 : i32, i32
  }
  func.func @transform_2(%arg0: i32) -> (i32, i32, i32, i32) {
    %c0_i32 = arith.constant 0 : i32
    %c0_i32_0 = arith.constant 0 : i32
    %c0_i32_1 = arith.constant 0 : i32
    %c0_i32_2 = arith.constant 0 : i32
    return %c0_i32, %arg0, %c0_i32_0, %c0_i32_1 : i32, i32, i32, i32
  }
}

module attributes {stable_mosaic.version = 11 : i64} {
  func.func @_linear_kernel(%arg0: i32, %arg1: memref<16x4096xf32, #tpu.memory_space<vmem>>, %arg2: memref<4x16xf32, #tpu.memory_space<vmem>>, %arg3: memref<4x1xf32, #tpu.memory_space<vmem>>, %arg4: memref<4x4096xf32, #tpu.memory_space<vmem>>) attributes {dimension_semantics = [#tpu.dimension_semantics<parallel>], iteration_bounds = array<i64: 2>, scalar_prefetch = 0 : i64, scratch_operands = 0 : i64, tpu.core_type = #tpu.core_type<tc>, window_params = [{transform_indices = @transform_0, window_bounds = array<i64: 16, 4096>}, {pipeline_mode = #tpu.pipeline_mode<synchronous>, transform_indices = @transform_1, window_bounds = array<i64: 4, 16>}, {pipeline_mode = #tpu.pipeline_mode<synchronous>, transform_indices = @transform_2, window_bounds = array<i64: 4, 1>}, {transform_indices = @transform_3, window_bounds = array<i64: 4, 4096>}]} {
    %c0 = arith.constant 0 : index
    %c0_0 = arith.constant 0 : index
    %0 = vector.load %arg1[%c0, %c0_0] : memref<16x4096xf32, #tpu.memory_space<vmem>>, vector<16x4096xf32>
    %c0_1 = arith.constant 0 : index
    %c0_2 = arith.constant 0 : index
    %1 = vector.load %arg2[%c0_1, %c0_2] : memref<4x16xf32, #tpu.memory_space<vmem>>, vector<4x16xf32>
    %cst = arith.constant 0.000000e+00 : f32
    %2 = vector.broadcast %cst : f32 to vector<4x4096xf32>
    %3 = vector.extract_strided_slice %1 {offsets = [0, 0], sizes = [4, 1], strides = [1, 1]} : vector<4x16xf32> to vector<4x1xf32>
    %4 = vector.extract_strided_slice %0 {offsets = [0, 0], sizes = [1, 4096], strides = [1, 1]} : vector<16x4096xf32> to vector<1x4096xf32>
    %5 = vector.broadcast %3 : vector<4x1xf32> to vector<4x4096xf32>
    %6 = vector.broadcast %4 : vector<1x4096xf32> to vector<4x4096xf32>
    %7 = arith.mulf %5, %6 : vector<4x4096xf32>
    %8 = arith.addf %2, %7 : vector<4x4096xf32>
    %9 = vector.extract_strided_slice %1 {offsets = [0, 1], sizes = [4, 1], strides = [1, 1]} : vector<4x16xf32> to vector<4x1xf32>
    %10 = vector.extract_strided_slice %0 {offsets = [1, 0], sizes = [1, 4096], strides = [1, 1]} : vector<16x4096xf32> to vector<1x4096xf32>
    %11 = vector.broadcast %9 : vector<4x1xf32> to vector<4x4096xf32>
    %12 = vector.broadcast %10 : vector<1x4096xf32> to vector<4x4096xf32>
    %13 = arith.mulf %11, %12 : vector<4x4096xf32>
    %14 = arith.addf %8, %13 : vector<4x4096xf32>
    %15 = vector.extract_strided_slice %1 {offsets = [0, 2], sizes = [4, 1], strides = [1, 1]} : vector<4x16xf32> to vector<4x1xf32>
    %16 = vector.extract_strided_slice %0 {offsets = [2, 0], sizes = [1, 4096], strides = [1, 1]} : vector<16x4096xf32> to vector<1x4096xf32>
    %17 = vector.broadcast %15 : vector<4x1xf32> to vector<4x4096xf32>
    %18 = vector.broadcast %16 : vector<1x4096xf32> to vector<4x4096xf32>
    %19 = arith.mulf %17, %18 : vector<4x4096xf32>
    %20 = arith.addf %14, %19 : vector<4x4096xf32>
    %21 = vector.extract_strided_slice %1 {offsets = [0, 3], sizes = [4, 1], strides = [1, 1]} : vector<4x16xf32> to vector<4x1xf32>
    %22 = vector.extract_strided_slice %0 {offsets = [3, 0], sizes = [1, 4096], strides = [1, 1]} : vector<16x4096xf32> to vector<1x4096xf32>
    %23 = vector.broadcast %21 : vector<4x1xf32> to vector<4x4096xf32>
    %24 = vector.broadcast %22 : vector<1x4096xf32> to vector<4x4096xf32>
    %25 = arith.mulf %23, %24 : vector<4x4096xf32>
    %26 = arith.addf %20, %25 : vector<4x4096xf32>
    %27 = vector.extract_strided_slice %1 {offsets = [0, 4], sizes = [4, 1], strides = [1, 1]} : vector<4x16xf32> to vector<4x1xf32>
    %28 = vector.extract_strided_slice %0 {offsets = [4, 0], sizes = [1, 4096], strides = [1, 1]} : vector<16x4096xf32> to vector<1x4096xf32>
    %29 = vector.broadcast %27 : vector<4x1xf32> to vector<4x4096xf32>
    %30 = vector.broadcast %28 : vector<1x4096xf32> to vector<4x4096xf32>
    %31 = arith.mulf %29, %30 : vector<4x4096xf32>
    %32 = arith.addf %26, %31 : vector<4x4096xf32>
    %33 = vector.extract_strided_slice %1 {offsets = [0, 5], sizes = [4, 1], strides = [1, 1]} : vector<4x16xf32> to vector<4x1xf32>
    %34 = vector.extract_strided_slice %0 {offsets = [5, 0], sizes = [1, 4096], strides = [1, 1]} : vector<16x4096xf32> to vector<1x4096xf32>
    %35 = vector.broadcast %33 : vector<4x1xf32> to vector<4x4096xf32>
    %36 = vector.broadcast %34 : vector<1x4096xf32> to vector<4x4096xf32>
    %37 = arith.mulf %35, %36 : vector<4x4096xf32>
    %38 = arith.addf %32, %37 : vector<4x4096xf32>
    %39 = vector.extract_strided_slice %1 {offsets = [0, 6], sizes = [4, 1], strides = [1, 1]} : vector<4x16xf32> to vector<4x1xf32>
    %40 = vector.extract_strided_slice %0 {offsets = [6, 0], sizes = [1, 4096], strides = [1, 1]} : vector<16x4096xf32> to vector<1x4096xf32>
    %41 = vector.broadcast %39 : vector<4x1xf32> to vector<4x4096xf32>
    %42 = vector.broadcast %40 : vector<1x4096xf32> to vector<4x4096xf32>
    %43 = arith.mulf %41, %42 : vector<4x4096xf32>
    %44 = arith.addf %38, %43 : vector<4x4096xf32>
    %45 = vector.extract_strided_slice %1 {offsets = [0, 7], sizes = [4, 1], strides = [1, 1]} : vector<4x16xf32> to vector<4x1xf32>
    %46 = vector.extract_strided_slice %0 {offsets = [7, 0], sizes = [1, 4096], strides = [1, 1]} : vector<16x4096xf32> to vector<1x4096xf32>
    %47 = vector.broadcast %45 : vector<4x1xf32> to vector<4x4096xf32>
    %48 = vector.broadcast %46 : vector<1x4096xf32> to vector<4x4096xf32>
    %49 = arith.mulf %47, %48 : vector<4x4096xf32>
    %50 = arith.addf %44, %49 : vector<4x4096xf32>
    %51 = vector.extract_strided_slice %1 {offsets = [0, 8], sizes = [4, 1], strides = [1, 1]} : vector<4x16xf32> to vector<4x1xf32>
    %52 = vector.extract_strided_slice %0 {offsets = [8, 0], sizes = [1, 4096], strides = [1, 1]} : vector<16x4096xf32> to vector<1x4096xf32>
    %53 = vector.broadcast %51 : vector<4x1xf32> to vector<4x4096xf32>
    %54 = vector.broadcast %52 : vector<1x4096xf32> to vector<4x4096xf32>
    %55 = arith.mulf %53, %54 : vector<4x4096xf32>
    %56 = arith.addf %50, %55 : vector<4x4096xf32>
    %57 = vector.extract_strided_slice %1 {offsets = [0, 9], sizes = [4, 1], strides = [1, 1]} : vector<4x16xf32> to vector<4x1xf32>
    %58 = vector.extract_strided_slice %0 {offsets = [9, 0], sizes = [1, 4096], strides = [1, 1]} : vector<16x4096xf32> to vector<1x4096xf32>
    %59 = vector.broadcast %57 : vector<4x1xf32> to vector<4x4096xf32>
    %60 = vector.broadcast %58 : vector<1x4096xf32> to vector<4x4096xf32>
    %61 = arith.mulf %59, %60 : vector<4x4096xf32>
    %62 = arith.addf %56, %61 : vector<4x4096xf32>
    %63 = vector.extract_strided_slice %1 {offsets = [0, 10], sizes = [4, 1], strides = [1, 1]} : vector<4x16xf32> to vector<4x1xf32>
    %64 = vector.extract_strided_slice %0 {offsets = [10, 0], sizes = [1, 4096], strides = [1, 1]} : vector<16x4096xf32> to vector<1x4096xf32>
    %65 = vector.broadcast %63 : vector<4x1xf32> to vector<4x4096xf32>
    %66 = vector.broadcast %64 : vector<1x4096xf32> to vector<4x4096xf32>
    %67 = arith.mulf %65, %66 : vector<4x4096xf32>
    %68 = arith.addf %62, %67 : vector<4x4096xf32>
    %69 = vector.extract_strided_slice %1 {offsets = [0, 11], sizes = [4, 1], strides = [1, 1]} : vector<4x16xf32> to vector<4x1xf32>
    %70 = vector.extract_strided_slice %0 {offsets = [11, 0], sizes = [1, 4096], strides = [1, 1]} : vector<16x4096xf32> to vector<1x4096xf32>
    %71 = vector.broadcast %69 : vector<4x1xf32> to vector<4x4096xf32>
    %72 = vector.broadcast %70 : vector<1x4096xf32> to vector<4x4096xf32>
    %73 = arith.mulf %71, %72 : vector<4x4096xf32>
    %74 = arith.addf %68, %73 : vector<4x4096xf32>
    %75 = vector.extract_strided_slice %1 {offsets = [0, 12], sizes = [4, 1], strides = [1, 1]} : vector<4x16xf32> to vector<4x1xf32>
    %76 = vector.extract_strided_slice %0 {offsets = [12, 0], sizes = [1, 4096], strides = [1, 1]} : vector<16x4096xf32> to vector<1x4096xf32>
    %77 = vector.broadcast %75 : vector<4x1xf32> to vector<4x4096xf32>
    %78 = vector.broadcast %76 : vector<1x4096xf32> to vector<4x4096xf32>
    %79 = arith.mulf %77, %78 : vector<4x4096xf32>
    %80 = arith.addf %74, %79 : vector<4x4096xf32>
    %81 = vector.extract_strided_slice %1 {offsets = [0, 13], sizes = [4, 1], strides = [1, 1]} : vector<4x16xf32> to vector<4x1xf32>
    %82 = vector.extract_strided_slice %0 {offsets = [13, 0], sizes = [1, 4096], strides = [1, 1]} : vector<16x4096xf32> to vector<1x4096xf32>
    %83 = vector.broadcast %81 : vector<4x1xf32> to vector<4x4096xf32>
    %84 = vector.broadcast %82 : vector<1x4096xf32> to vector<4x4096xf32>
    %85 = arith.mulf %83, %84 : vector<4x4096xf32>
    %86 = arith.addf %80, %85 : vector<4x4096xf32>
    %87 = vector.extract_strided_slice %1 {offsets = [0, 14], sizes = [4, 1], strides = [1, 1]} : vector<4x16xf32> to vector<4x1xf32>
    %88 = vector.extract_strided_slice %0 {offsets = [14, 0], sizes = [1, 4096], strides = [1, 1]} : vector<16x4096xf32> to vector<1x4096xf32>
    %89 = vector.broadcast %87 : vector<4x1xf32> to vector<4x4096xf32>
    %90 = vector.broadcast %88 : vector<1x4096xf32> to vector<4x4096xf32>
    %91 = arith.mulf %89, %90 : vector<4x4096xf32>
    %92 = arith.addf %86, %91 : vector<4x4096xf32>
    %93 = vector.extract_strided_slice %1 {offsets = [0, 15], sizes = [4, 1], strides = [1, 1]} : vector<4x16xf32> to vector<4x1xf32>
    %94 = vector.extract_strided_slice %0 {offsets = [15, 0], sizes = [1, 4096], strides = [1, 1]} : vector<16x4096xf32> to vector<1x4096xf32>
    %95 = vector.broadcast %93 : vector<4x1xf32> to vector<4x4096xf32>
    %96 = vector.broadcast %94 : vector<1x4096xf32> to vector<4x4096xf32>
    %97 = arith.mulf %95, %96 : vector<4x4096xf32>
    %98 = arith.addf %92, %97 : vector<4x4096xf32>
    %c0_3 = arith.constant 0 : index
    %c0_4 = arith.constant 0 : index
    %99 = vector.load %arg3[%c0_3, %c0_4] : memref<4x1xf32, #tpu.memory_space<vmem>>, vector<4x1xf32>
    %100 = vector.broadcast %99 : vector<4x1xf32> to vector<4x4096xf32>
    %101 = arith.addf %98, %100 : vector<4x4096xf32>
    %c0_5 = arith.constant 0 : index
    %c0_6 = arith.constant 0 : index
    %102 = vector.load %arg4[%c0_5, %c0_6] : memref<4x4096xf32, #tpu.memory_space<vmem>>, vector<4x4096xf32>
    tpu.vector_store %arg4[%c0_5, %c0_6], %101 {strides = array<i32>} : memref<4x4096xf32, #tpu.memory_space<vmem>>, vector<4x4096xf32>,
    return
  }
  func.func @transform_0(%arg0: i32) -> (i32, i32) {
    %c0_i32 = arith.constant 0 : i32
    %c0_i32_0 = arith.constant 0 : i32
    return %c0_i32, %arg0 : i32, i32
  }
  func.func @transform_1(%arg0: i32) -> (i32, i32) {
    %c0_i32 = arith.constant 0 : i32
    %c0_i32_0 = arith.constant 0 : i32
    %c0_i32_1 = arith.constant 0 : i32
    return %c0_i32, %c0_i32_0 : i32, i32
  }
  func.func @transform_2(%arg0: i32) -> (i32, i32) {
    %c0_i32 = arith.constant 0 : i32
    %c0_i32_0 = arith.constant 0 : i32
    %c0_i32_1 = arith.constant 0 : i32
    return %c0_i32, %c0_i32_0 : i32, i32
  }
  func.func @transform_3(%arg0: i32) -> (i32, i32) {
    %c0_i32 = arith.constant 0 : i32
    %c0_i32_0 = arith.constant 0 : i32
    return %c0_i32, %arg0 : i32, i32
  }
}

</mosaic_0001>

<bundles_post_ra>
// kernel: custom-call
= control target key start
LH: loop header
LB: loop body
LE: loop exit
PB: predicated region body
PF: predicated region fallthrough
CT: control target
= control target key end

     0   :  { %2 = vsyncpa [#allocation0], 0  ;;  %s47_s0 = inlined_call_operand.hbm [shape: c64[4,4], index: 0, kind: input, shape index: {}]   ;;  %s48_s1 = inlined_call_operand.vmem [shape: f32[4,4], index: 1, kind: output, shape index: {}]  }
   0x1   :  { %s3_s8 = sshll.u32 %s48_s1, 4  ;;  %s4_s8 = int_to_ptr.vmem [resolvable:$true] %s3_s8 }
   0x2   :  { %s17_s9 = scalar_lea.vmem %s4_s8, 64  ;;  %p22_p1 = scmp.lt.s32.totalorder %s4_s8, %s4_s8 }
   0x3   :  { %p18_p0 = scmp.ne.s32.totalorder %s4_s8, %s17_s9  ;;  %p23_p2 = scmp.lt.s32.totalorder %s17_s9, %s17_s9 }
   0x5   :  { %p24_p3 = por %p23_p2, %p22_p1 }
   0x7   :  { %p25_p4 = pnand %p24_p3, %p18_p0 }
   0x9   :  { %28 = shalt.err (!%p25_p4)  }
   0xa   :  { %6 = dma.hbm_to_vmem [thread:$0]  %s47_s0, 64, %s4_s8, [#allocation0] }
   0xb   :  { %29 = dma.done.wait [#allocation0], 64  }
   0xc   :  { %30 = vsyncadd [#allocation0], 4294967232 }
   0xd   :  { %8 = vsyncpa [#allocation0], 1 }

// kernel: custom-call.1
= control target key start
LH: loop header
LB: loop body
LE: loop exit
PB: predicated region body
PF: predicated region fallthrough
CT: control target
= control target key end

     0   :  { %s51_s0 = inlined_call_operand.hbm [shape: c64[4,4], index: 0, kind: input, shape index: {}]   ;;  %s52_s1 = inlined_call_operand.vmem [shape: f32[4,4], index: 1, kind: output, shape index: {}]  }
   0x1   :  { %s2_s8 = scalar_lea.hbm %s51_s0, 64 }
   0x2   :  { %3 = vsyncpa [#allocation0], 0  ;;  %s4_s11 = sshll.u32 %s52_s1, 4  ;;  %s5_s11 = int_to_ptr.vmem [resolvable:$true] %s4_s11 }
   0x3   :  { %s20_s12 = scalar_lea.vmem %s5_s11, 64  ;;  %p25_p1 = scmp.lt.s32.totalorder %s5_s11, %s5_s11 }
   0x4   :  { %p21_p0 = scmp.ne.s32.totalorder %s5_s11, %s20_s12  ;;  %p26_p2 = scmp.lt.s32.totalorder %s20_s12, %s20_s12 }
   0x6   :  { %p27_p3 = por %p26_p2, %p25_p1 }
   0x8   :  { %p28_p4 = pnand %p27_p3, %p21_p0 }
   0xa   :  { %31 = shalt.err (!%p28_p4)  }
   0xb   :  { %7 = dma.hbm_to_vmem [thread:$0]  %s2_s8, 64, %s5_s11, [#allocation0] }
   0xc   :  { %33 = dma.done.wait [#allocation0], 64  }
   0xd   :  { %34 = vsyncadd [#allocation0], 4294967232 }
   0xe   :  { %9 = vsyncpa [#allocation0], 1 }

// kernel: spectral_conv3d_forward.2
= control target key start
LH: loop header
LB: loop body
LE: loop exit
PB: predicated region body
PF: predicated region fallthrough
CT: control target
= control target key end

     0   :  { %s611_s9 = smov 0   ;;  %s613_s10 = smov 0   ;;  %s796_s0 = inlined_call_operand.vmem [shape: f32[8,2,32], index: 0, kind: input, shape index: {}]   ;;  %s797_s1 = inlined_call_operand.vmem [shape: f32[4,16], index: 1, kind: input, shape index: {}]   ;;  %s798_s2 = inlined_call_operand.vmem [shape: f32[4,8,16,32], index: 2, kind: output, shape index: {}]  }
   0x1   :  { %s615_s11 = smov 0  }
   0x2 LB: > { %s624_s12 = sadd.s32 4294967295, %s594_s11   ;;  %s626_s13 = sadd.s32 1, %s594_s11   ;;  %s594_s11 = sphi %s615_s11, %s802_s11   ;;  %s590_s10 = sphi %s613_s10, %s801_s10   ;;  %s586_s9 = sphi %s611_s9, %s800_s9  }
   0x3   : > { %s63_s14 = ssub.s32 %s594_s11, %s626_s13  ;;  %s66_s15 = sadd.s32 1, %s590_s10 }
   0x4   : > { %p64_p0 = scmp.eq.s32.totalorder %s63_s14, 0  ;;  %p76_p1 = scmp.ne.s32.totalorder %s590_s10, %s586_s9 }
   0x5   : > { %p77_p2 = scmp.eq.s32.totalorder %s624_s12, 1  ;;  %p512_p3 = scmp.ge.s32.totalorder %s594_s11, 1 }
   0x6   : > { %s634_s16 = scalar_select %p64_p0, %s590_s10, %s66_s15  }
   0x7   : > { %p636_p4 = por %p77_p2, %p76_p1  ;;  %p113_p5 = scmp.lt.s32.totalorder %s594_s11, 3 }
   0x9   : > { %p114_p6 = pnand %p512_p3, %p113_p5 }
   0xa   : > { %s514_s20 = sshll.u32 (!%p114_p6), %s624_s12, 2  ;;  %s131_s25 = sand.u32 (!%p114_p6), 1, %s586_s9  }
   0xb   : > { %117 = sbr.rel (%p114_p6) target bundleno = 173 (0xad), region = 28  ;;  %p135_p7 = scmp.lt.s32.totalorder (!%p114_p6), %s514_s20, 7 }
   0xc   : > { %s513_s26 = sshll.u32 (!%p114_p6), %s131_s25, 8 }
   0xd   : > { %s648_s27 = scalar_lea.vmem (!%p114_p6), [#allocation2], %s513_s26 }
  0x10   : > { %v146_v0 = vlaneseq  ;;  %v145_v2 = vld [vmem:[%s797_s1] sm:$0xf]  ;;  %s804_s20 = smov (!%p135_p7, %s514_s20), 7  ;;  %vm214_vm0 = vcmask 261120   ;;  %s547_s28 = sshll.u32 (%p636_p4), %s624_s12, 6 }
  0x11   : > { %s515_s21 = sshll.u32 %s804_s20, 1  ;;  %s723_s3 = scalar_lea.vmem (%p636_p4), %s798_s2, %s547_s28 }
  0x12   : > { %v147_v1 = vshrl.u32 %v146_v0, 7  ;;  %s138_s24 = scalar_lea.vmem %s796_s0, %s515_s21 }
  0x13   : > { %v141_v11 = vld [vmem:[%s138_s24] sm:$0x3]  ;;  %v142_v12 = vld [vmem:[%s138_s24 + $0x2] sm:$0x3]  ;;  %v143_v13 = vld [vmem:[%s138_s24 + $0x4] sm:$0x3] }
  0x14   : > { %v159_v3 = vsub.s32 1, %v147_v1  ;;  %v148_v4 = vsub.s32 0, %v147_v1  ;;  %v170_v7 = vsub.s32 2, %v147_v1  ;;  %v181_v9 = vsub.s32 3, %v147_v1  ;;  %v144_v14 = vld [vmem:[%s138_s24 + $0x6] sm:$0x3] }
  0x16   : > { %v160_v5 = vrot.slane %v145_v2, %v159_v3  ;;  %v149_v6 = vrot.slane %v145_v2, %v148_v4  ;;  %v171_v8 = vrot.slane %v145_v2, %v170_v7  ;;  %v182_v10 = vrot.slane %v145_v2, %v181_v9 }
  0x17   : > { %v193_v15 = vrot.slane %v141_v11, %v148_v4  ;;  %v197_v16 = vrot.slane %v142_v12, %v148_v4  ;;  %v201_v17 = vrot.slane %v143_v13, %v148_v4  ;;  %v205_v18 = vrot.slane %v144_v14, %v148_v4 }
  0x18   : > { %162 = vbcast.lane.b32.xlu1 %v160_v5, 256  ;;  %151 = vbcast.lane.b32.xlu0 %v149_v6, 256  ;;  %v243_v31 = vrot.slane %v141_v11, %v159_v3  ;;  %v247_v32 = vrot.slane %v142_v12, %v159_v3  ;;  %v251_v33 = vrot.slane %v143_v13, %v159_v3 }
  0x19   : > { %v255_v34 = vrot.slane %v144_v14, %v159_v3 }
  0x1c   : > { %166 = vbcast.lane.b32.xlu1 %v160_v5, 264  ;;  %155 = vbcast.lane.b32.xlu0 %v149_v6, 264 }
  0x20   : > { %177 = vbcast.lane.b32.xlu1 %v171_v8, 264  ;;  %173 = vbcast.lane.b32.xlu0 %v171_v8, 256 }
  0x24   : > { %188 = vbcast.lane.b32.xlu1 %v182_v10, 264  ;;  %184 = vbcast.lane.b32.xlu0 %v182_v10, 256 }
  0x8a   : > { %v163_v19 = vpop.permute.xlu1 %162  ;;  %v152_v20 = vpop.permute.xlu0 %151 }
  0x8b   : > { %v223_v21 = vmul.f32 %v193_v15, %v163_v19  ;;  %v225_v22 = vmul.f32 %v197_v16, %v163_v19  ;;  %v227_v23 = vmul.f32 %v201_v17, %v163_v19  ;;  %v229_v24 = vmul.f32 %v205_v18, %v163_v19 }
  0x8c   : > { %v206_v25 = vmul.f32 %v193_v15, %v152_v20  ;;  %v208_v26 = vmul.f32 %v197_v16, %v152_v20  ;;  %v210_v27 = vmul.f32 %v201_v17, %v152_v20  ;;  %v212_v28 = vmul.f32 %v205_v18, %v152_v20 }
  0x8d   : > { %516 = vst.msk [vmem:[%s648_s27 + $0x40] sm:$0xff] %vm214_vm0, %v223_v21  ;;  %518 = vst.msk [vmem:[%s648_s27 + $0x50] sm:$0xff] %vm214_vm0, %v225_v22 }
  0x8e   : > { %520 = vst.msk [vmem:[%s648_s27 + $0x60] sm:$0xff] %vm214_vm0, %v227_v23  ;;  %522 = vst.msk [vmem:[%s648_s27 + $0x70] sm:$0xff] %vm214_vm0, %v229_v24  ;;  %v167_v29 = vpop.permute.xlu1 %166  ;;  %v156_v30 = vpop.permute.xlu0 %155 }
  0x8f   : > { %215 = vst.msk [vmem:[%s648_s27] sm:$0xff] %vm214_vm0, %v206_v25  ;;  %217 = vst.msk [vmem:[%s648_s27 + $0x10] sm:$0xff] %vm214_vm0, %v208_v26  ;;  %v224_v35 = vmul.f32 %v193_v15, %v167_v29  ;;  %v226_v36 = vmul.f32 %v197_v16, %v167_v29  ;;  %v228_v37 = vmul.f32 %v201_v17, %v167_v29 }
  0x90   : > { %219 = vst.msk [vmem:[%s648_s27 + $0x20] sm:$0xff] %vm214_vm0, %v210_v27  ;;  %221 = vst.msk [vmem:[%s648_s27 + $0x30] sm:$0xff] %vm214_vm0, %v212_v28  ;;  %v230_v38 = vmul.f32 %v205_v18, %v167_v29  ;;  %v207_v39 = vmul.f32 %v193_v15, %v156_v30  ;;  %v209_v40 = vmul.f32 %v197_v16, %v156_v30 }
  0x91   : > { %v211_v41 = vmul.f32 %v201_v17, %v156_v30  ;;  %v213_v42 = vmul.f32 %v205_v18, %v156_v30  ;;  %517 = vst.msk [vmem:[%s648_s27 + $0x48] sm:$0xff] %vm214_vm0, %v224_v35  ;;  %519 = vst.msk [vmem:[%s648_s27 + $0x58] sm:$0xff] %vm214_vm0, %v226_v36 }
  0x92   : > { %521 = vst.msk [vmem:[%s648_s27 + $0x68] sm:$0xff] %vm214_vm0, %v228_v37  ;;  %523 = vst.msk [vmem:[%s648_s27 + $0x78] sm:$0xff] %vm214_vm0, %v230_v38  ;;  %v178_v43 = vpop.permute.xlu1 %177  ;;  %v174_v44 = vpop.permute.xlu0 %173 }
  0x93   : > { %216 = vst.msk [vmem:[%s648_s27 + $0x8] sm:$0xff] %vm214_vm0, %v207_v39  ;;  %218 = vst.msk [vmem:[%s648_s27 + $0x18] sm:$0xff] %vm214_vm0, %v209_v40  ;;  %v257_v45 = vmul.f32 %v243_v31, %v178_v43  ;;  %v259_v46 = vmul.f32 %v247_v32, %v178_v43  ;;  %v261_v47 = vmul.f32 %v251_v33, %v178_v43 }
  0x94   : > { %220 = vst.msk [vmem:[%s648_s27 + $0x28] sm:$0xff] %vm214_vm0, %v211_v41  ;;  %222 = vst.msk [vmem:[%s648_s27 + $0x38] sm:$0xff] %vm214_vm0, %v213_v42  ;;  %v263_v48 = vmul.f32 %v255_v34, %v178_v43  ;;  %v256_v49 = vmul.f32 %v243_v31, %v174_v44  ;;  %v258_v50 = vmul.f32 %v247_v32, %v174_v44  ;;  %v407_v7 = vld [vmem:[%s648_s27 + $0x40] sm:$0xff] (%p636_p4)  ;;  %v411_v9 = vld [vmem:[%s648_s27 + $0x50] sm:$0xff] (%p636_p4) }
  0x95   : > { %v260_v51 = vmul.f32 %v251_v33, %v174_v44  ;;  %v262_v52 = vmul.f32 %v255_v34, %v174_v44  ;;  %525 = vst.msk [vmem:[%s648_s27 + $0x88] sm:$0xff] %vm214_vm0, %v257_v45  ;;  %527 = vst.msk [vmem:[%s648_s27 + $0x98] sm:$0xff] %vm214_vm0, %v259_v46  ;;  %v415_v11 = vld [vmem:[%s648_s27 + $0x60] sm:$0xff] (%p636_p4)  ;;  %v419_v13 = vld [vmem:[%s648_s27 + $0x70] sm:$0xff] (%p636_p4) }
  0x96   : > { %529 = vst.msk [vmem:[%s648_s27 + $0xa8] sm:$0xff] %vm214_vm0, %v261_v47  ;;  %531 = vst.msk [vmem:[%s648_s27 + $0xb8] sm:$0xff] %vm214_vm0, %v263_v48  ;;  %v189_v53 = vpop.permute.xlu1 %188  ;;  %v185_v54 = vpop.permute.xlu0 %184  ;;  %v391_v63 = vld [vmem:[%s648_s27] sm:$0xff] (%p636_p4)  ;;  %v395_v1 = vld [vmem:[%s648_s27 + $0x10] sm:$0xff] (%p636_p4) }
  0x97   : > { %524 = vst.msk [vmem:[%s648_s27 + $0x80] sm:$0xff] %vm214_vm0, %v256_v49  ;;  %526 = vst.msk [vmem:[%s648_s27 + $0x90] sm:$0xff] %vm214_vm0, %v258_v50  ;;  %v274_v55 = vmul.f32 %v243_v31, %v189_v53  ;;  %v276_v56 = vmul.f32 %v247_v32, %v189_v53  ;;  %v278_v57 = vmul.f32 %v251_v33, %v189_v53  ;;  %v399_v3 = vld [vmem:[%s648_s27 + $0x20] sm:$0xff] (%p636_p4)  ;;  %v403_v5 = vld [vmem:[%s648_s27 + $0x30] sm:$0xff] (%p636_p4) }
  0x98   : > { %528 = vst.msk [vmem:[%s648_s27 + $0xa0] sm:$0xff] %vm214_vm0, %v260_v51  ;;  %530 = vst.msk [vmem:[%s648_s27 + $0xb0] sm:$0xff] %vm214_vm0, %v262_v52  ;;  %v280_v58 = vmul.f32 %v255_v34, %v189_v53  ;;  %v273_v59 = vmul.f32 %v243_v31, %v185_v54  ;;  %v275_v60 = vmul.f32 %v247_v32, %v185_v54  ;;  %296 = sbr.rel (!%p636_p4) target bundleno = 173 (0xad), region = 32  ;;  %v409_v8 = vld [vmem:[%s648_s27 + $0x48] sm:$0xff] (%p636_p4)  ;;  %v413_v10 = vld [vmem:[%s648_s27 + $0x58] sm:$0xff] (%p636_p4) }
  0x99   : > { %v277_v61 = vmul.f32 %v251_v33, %v185_v54  ;;  %v279_v62 = vmul.f32 %v255_v34, %v185_v54  ;;  %533 = vst.msk [vmem:[%s648_s27 + $0xc8] sm:$0xff] %vm214_vm0, %v274_v55  ;;  %535 = vst.msk [vmem:[%s648_s27 + $0xd8] sm:$0xff] %vm214_vm0, %v276_v56  ;;  %v417_v12 = vld [vmem:[%s648_s27 + $0x68] sm:$0xff] (%p636_p4)  ;;  %v421_v14 = vld [vmem:[%s648_s27 + $0x78] sm:$0xff] (%p636_p4) }
  0x9a   : > { %537 = vst.msk [vmem:[%s648_s27 + $0xe8] sm:$0xff] %vm214_vm0, %v278_v57  ;;  %539 = vst.msk [vmem:[%s648_s27 + $0xf8] sm:$0xff] %vm214_vm0, %v280_v58  ;;  %v393_v0 = vld [vmem:[%s648_s27 + $0x8] sm:$0xff] (%p636_p4)  ;;  %v397_v2 = vld [vmem:[%s648_s27 + $0x18] sm:$0xff] (%p636_p4) }
  0x9b   : > { %532 = vst.msk [vmem:[%s648_s27 + $0xc0] sm:$0xff] %vm214_vm0, %v273_v59  ;;  %534 = vst.msk [vmem:[%s648_s27 + $0xd0] sm:$0xff] %vm214_vm0, %v275_v60  ;;  %v401_v4 = vld [vmem:[%s648_s27 + $0x28] sm:$0xff] (%p636_p4)  ;;  %v405_v6 = vld [vmem:[%s648_s27 + $0x38] sm:$0xff] (%p636_p4) }
  0x9c   : > { %536 = vst.msk [vmem:[%s648_s27 + $0xe0] sm:$0xff] %vm214_vm0, %v277_v61  ;;  %538 = vst.msk [vmem:[%s648_s27 + $0xf0] sm:$0xff] %vm214_vm0, %v279_v62  ;;  %v425_v16 = vld [vmem:[%s648_s27 + $0x88] sm:$0xff] (%p636_p4)  ;;  %v429_v18 = vld [vmem:[%s648_s27 + $0x98] sm:$0xff] (%p636_p4) }
  0x9d   : > { %392 = vst [vmem:[%s723_s3] sm:$0xff] %v391_v63  ;;  %394 = vst [vmem:[%s723_s3 + $0x8] sm:$0xff] %v393_v0  ;;  %v433_v20 = vld [vmem:[%s648_s27 + $0xa8] sm:$0xff]  ;;  %v437_v22 = vld [vmem:[%s648_s27 + $0xb8] sm:$0xff] }
  0x9e   : > { %396 = vst [vmem:[%s723_s3 + $0x10] sm:$0xff] %v395_v1  ;;  %398 = vst [vmem:[%s723_s3 + $0x18] sm:$0xff] %v397_v2  ;;  %v423_v15 = vld [vmem:[%s648_s27 + $0x80] sm:$0xff]  ;;  %v427_v17 = vld [vmem:[%s648_s27 + $0x90] sm:$0xff] }
  0x9f   : > { %400 = vst [vmem:[%s723_s3 + $0x20] sm:$0xff] %v399_v3  ;;  %402 = vst [vmem:[%s723_s3 + $0x28] sm:$0xff] %v401_v4  ;;  %v431_v19 = vld [vmem:[%s648_s27 + $0xa0] sm:$0xff]  ;;  %v435_v21 = vld [vmem:[%s648_s27 + $0xb0] sm:$0xff] }
  0xa0   : > { %404 = vst [vmem:[%s723_s3 + $0x30] sm:$0xff] %v403_v5  ;;  %406 = vst [vmem:[%s723_s3 + $0x38] sm:$0xff] %v405_v6  ;;  %v441_v24 = vld [vmem:[%s648_s27 + $0xc8] sm:$0xff]  ;;  %v445_v26 = vld [vmem:[%s648_s27 + $0xd8] sm:$0xff] }
  0xa1   : > { %408 = vst [vmem:[%s723_s3 + $0x80] sm:$0xff] %v407_v7  ;;  %410 = vst [vmem:[%s723_s3 + $0x88] sm:$0xff] %v409_v8  ;;  %v449_v28 = vld [vmem:[%s648_s27 + $0xe8] sm:$0xff]  ;;  %v453_v30 = vld [vmem:[%s648_s27 + $0xf8] sm:$0xff] }
  0xa2   : > { %412 = vst [vmem:[%s723_s3 + $0x90] sm:$0xff] %v411_v9  ;;  %414 = vst [vmem:[%s723_s3 + $0x98] sm:$0xff] %v413_v10  ;;  %v439_v23 = vld [vmem:[%s648_s27 + $0xc0] sm:$0xff]  ;;  %v443_v25 = vld [vmem:[%s648_s27 + $0xd0] sm:$0xff] }
  0xa3   : > { %416 = vst [vmem:[%s723_s3 + $0xa0] sm:$0xff] %v415_v11  ;;  %418 = vst [vmem:[%s723_s3 + $0xa8] sm:$0xff] %v417_v12  ;;  %v447_v27 = vld [vmem:[%s648_s27 + $0xe0] sm:$0xff]  ;;  %v451_v29 = vld [vmem:[%s648_s27 + $0xf0] sm:$0xff] }
  0xa4   : > { %420 = vst [vmem:[%s723_s3 + $0xb0] sm:$0xff] %v419_v13  ;;  %422 = vst [vmem:[%s723_s3 + $0xb8] sm:$0xff] %v421_v14 }
  0xa5   : > { %424 = vst [vmem:[%s723_s3 + $0x100] sm:$0xff] %v423_v15  ;;  %426 = vst [vmem:[%s723_s3 + $0x108] sm:$0xff] %v425_v16 }
  0xa6   : > { %428 = vst [vmem:[%s723_s3 + $0x110] sm:$0xff] %v427_v17  ;;  %430 = vst [vmem:[%s723_s3 + $0x118] sm:$0xff] %v429_v18 }
  0xa7   : > { %432 = vst [vmem:[%s723_s3 + $0x120] sm:$0xff] %v431_v19  ;;  %434 = vst [vmem:[%s723_s3 + $0x128] sm:$0xff] %v433_v20 }
  0xa8   : > { %436 = vst [vmem:[%s723_s3 + $0x130] sm:$0xff] %v435_v21  ;;  %438 = vst [vmem:[%s723_s3 + $0x138] sm:$0xff] %v437_v22 }
  0xa9   : > { %440 = vst [vmem:[%s723_s3 + $0x180] sm:$0xff] %v439_v23  ;;  %442 = vst [vmem:[%s723_s3 + $0x188] sm:$0xff] %v441_v24 }
  0xaa   : > { %444 = vst [vmem:[%s723_s3 + $0x190] sm:$0xff] %v443_v25  ;;  %446 = vst [vmem:[%s723_s3 + $0x198] sm:$0xff] %v445_v26 }
  0xab   : > { %448 = vst [vmem:[%s723_s3 + $0x1a0] sm:$0xff] %v447_v27  ;;  %450 = vst [vmem:[%s723_s3 + $0x1a8] sm:$0xff] %v449_v28 }
  0xac   : > { %452 = vst [vmem:[%s723_s3 + $0x1b0] sm:$0xff] %v451_v29  ;;  %454 = vst [vmem:[%s723_s3 + $0x1b8] sm:$0xff] %v453_v30 }
  0xad PF: > { %p9_p8 = scmp.ge.s32.totalorder %s626_s13, 4   ;;  %s800_s9 = smov %s590_s10 }
  0xae   : > { %s801_s10 = smov %s634_s16  ;;  %s802_s11 = smov %s626_s13 }
  0xaf   :  { %11 = sbr.rel (!%p9_p8) target bundleno = 2 (0x2), region = 99 }

// kernel: spectral_conv3d_forward.3
= control target key start
LH: loop header
LB: loop body
LE: loop exit
PB: predicated region body
PF: predicated region fallthrough
CT: control target
= control target key end

     0   :  { %s3897_s12 = smov 0   ;;  %s3899_s13 = smov 0   ;;  %s7881_s0 = inlined_call_operand.vmem [shape: f32[16,8192], index: 0, kind: input, shape index: {}]   ;;  %s7882_s1 = inlined_call_operand.vmem [shape: f32[4,16], index: 1, kind: input, shape index: {}]   ;;  %s7883_s2 = inlined_call_operand.vmem [shape: f32[4,1], index: 2, kind: input, shape index: {}]   ;;  %s7884_s3 = inlined_call_operand.vmem [shape: f32[4,8192], index: 3, kind: output, shape index: {}]  }
   0x1   :  { %s3901_s14 = smov 0  }
   0x2 LB: > { %s3701_s15 = sadd.s32 4294967295, %s3859_s14   ;;  %s3914_s16 = sadd.s32 1, %s3859_s14   ;;  %s3859_s14 = sphi %s3901_s14, %s9402_s14   ;;  %s3855_s13 = sphi %s3899_s13, %s9401_s13   ;;  %s3851_s12 = sphi %s3897_s12, %s9400_s12  }
   0x3   : > { %s17_s17 = ssub.s32 %s3859_s14, %s3914_s16  ;;  %s20_s18 = sadd.s32 1, %s3855_s13 }
   0x4   : > { %p18_p0 = scmp.eq.s32.totalorder %s17_s17, 0  ;;  %p27_p1 = scmp.ne.s32.totalorder %s3855_s13, %s3851_s12 }
   0x5   : > { %p28_p2 = scmp.eq.s32.totalorder %s3859_s14, 0  ;;  %p3704_p4 = scmp.ge.s32.totalorder %s3859_s14, 2 }
   0x6   : > { %s3923_s19 = scalar_select %p18_p0, %s3855_s13, %s20_s18  }
   0x7   : > { %p29_p3 = por %p28_p2, %p27_p1  ;;  %127 = sbr.rel (%p3704_p4) target bundleno = 48 (0x30), region = 24 }
   0xc   : > { %130 = sbr.rel (!%p29_p3) target bundleno = 48 (0x30), region = 28  ;;  %s132_s20 = sand.u32 (%p29_p3), 1, %s3855_s13  }
   0xd   : > { %s3714_s21 = sshll.u32 (%p29_p3), %s3859_s14, 8  ;;  %s3705_s22 = sshll.u32 (%p29_p3), %s132_s20, 9 }
   0xe   : > { %s3931_s25 = scalar_lea.vmem (%p29_p3), %s7881_s0, %s3714_s21  ;;  %s3936_s26 = scalar_lea.vmem (%p29_p3), [#allocation2], %s3705_s22 }
   0xf   : > { %v150_v0 = vld [vmem:[%s3931_s25] sm:$0xff] (%p29_p3)  ;;  %v152_v1 = vld [vmem:[%s3931_s25 + $0x8] sm:$0xff] (%p29_p3)  ;;  %v154_v2 = vld [vmem:[%s3931_s25 + $0x10] sm:$0xff] (%p29_p3) }
  0x10   : > { %151 = vst [vmem:[%s3936_s26] sm:$0xff] (%p29_p3), %v150_v0  ;;  %153 = vst [vmem:[%s3936_s26 + $0x8] sm:$0xff] (%p29_p3), %v152_v1  ;;  %v156_v3 = vld [vmem:[%s3931_s25 + $0x18] sm:$0xff] (%p29_p3)  ;;  %v158_v4 = vld [vmem:[%s3931_s25 + $0x20] sm:$0xff] (%p29_p3) }
  0x11   : > { %155 = vst [vmem:[%s3936_s26 + $0x10] sm:$0xff] %v154_v2  ;;  %v160_v5 = vld [vmem:[%s3931_s25 + $0x28] sm:$0xff]  ;;  %157 = vst [vmem:[%s3936_s26 + $0x18] sm:$0xff] %v156_v3  ;;  %v162_v6 = vld [vmem:[%s3931_s25 + $0x30] sm:$0xff] }
  0x12   : > { %159 = vst [vmem:[%s3936_s26 + $0x20] sm:$0xff] %v158_v4  ;;  %161 = vst [vmem:[%s3936_s26 + $0x28] sm:$0xff] %v160_v5  ;;  %v164_v7 = vld [vmem:[%s3931_s25 + $0x38] sm:$0xff]  ;;  %v166_v8 = vld [vmem:[%s3931_s25 + $0x40] sm:$0xff] }
  0x13   : > { %163 = vst [vmem:[%s3936_s26 + $0x30] sm:$0xff] %v162_v6  ;;  %165 = vst [vmem:[%s3936_s26 + $0x38] sm:$0xff] %v164_v7  ;;  %v168_v9 = vld [vmem:[%s3931_s25 + $0x48] sm:$0xff]  ;;  %v170_v10 = vld [vmem:[%s3931_s25 + $0x50] sm:$0xff] }
  0x14   : > { %167 = vst [vmem:[%s3936_s26 + $0x40] sm:$0xff] %v166_v8  ;;  %v172_v11 = vld [vmem:[%s3931_s25 + $0x58] sm:$0xff]  ;;  %169 = vst [vmem:[%s3936_s26 + $0x48] sm:$0xff] %v168_v9  ;;  %v174_v12 = vld [vmem:[%s3931_s25 + $0x60] sm:$0xff] }
  0x15   : > { %171 = vst [vmem:[%s3936_s26 + $0x50] sm:$0xff] %v170_v10  ;;  %173 = vst [vmem:[%s3936_s26 + $0x58] sm:$0xff] %v172_v11  ;;  %v176_v13 = vld [vmem:[%s3931_s25 + $0x68] sm:$0xff]  ;;  %v178_v14 = vld [vmem:[%s3931_s25 + $0x70] sm:$0xff] }
  0x16   : > { %175 = vst [vmem:[%s3936_s26 + $0x60] sm:$0xff] %v174_v12  ;;  %177 = vst [vmem:[%s3936_s26 + $0x68] sm:$0xff] %v176_v13  ;;  %v180_v15 = vld [vmem:[%s3931_s25 + $0x78] sm:$0xff]  ;;  %v182_v16 = vld [vmem:[%s3931_s25 + $0x80] sm:$0xff] }
  0x17   : > { %179 = vst [vmem:[%s3936_s26 + $0x70] sm:$0xff] %v178_v14  ;;  %v184_v17 = vld [vmem:[%s3931_s25 + $0x88] sm:$0xff]  ;;  %181 = vst [vmem:[%s3936_s26 + $0x78] sm:$0xff] %v180_v15  ;;  %v186_v18 = vld [vmem:[%s3931_s25 + $0x90] sm:$0xff] }
  0x18   : > { %183 = vst [vmem:[%s3936_s26 + $0x80] sm:$0xff] %v182_v16  ;;  %185 = vst [vmem:[%s3936_s26 + $0x88] sm:$0xff] %v184_v17  ;;  %v188_v19 = vld [vmem:[%s3931_s25 + $0x98] sm:$0xff]  ;;  %v190_v20 = vld [vmem:[%s3931_s25 + $0xa0] sm:$0xff] }
  0x19   : > { %187 = vst [vmem:[%s3936_s26 + $0x90] sm:$0xff] %v186_v18  ;;  %189 = vst [vmem:[%s3936_s26 + $0x98] sm:$0xff] %v188_v19  ;;  %v192_v21 = vld [vmem:[%s3931_s25 + $0xa8] sm:$0xff]  ;;  %v194_v22 = vld [vmem:[%s3931_s25 + $0xb0] sm:$0xff] }
  0x1a   : > { %191 = vst [vmem:[%s3936_s26 + $0xa0] sm:$0xff] %v190_v20  ;;  %v196_v23 = vld [vmem:[%s3931_s25 + $0xb8] sm:$0xff]  ;;  %193 = vst [vmem:[%s3936_s26 + $0xa8] sm:$0xff] %v192_v21  ;;  %v198_v24 = vld [vmem:[%s3931_s25 + $0xc0] sm:$0xff] }
  0x1b   : > { %195 = vst [vmem:[%s3936_s26 + $0xb0] sm:$0xff] %v194_v22  ;;  %197 = vst [vmem:[%s3936_s26 + $0xb8] sm:$0xff] %v196_v23  ;;  %v200_v25 = vld [vmem:[%s3931_s25 + $0xc8] sm:$0xff]  ;;  %v202_v26 = vld [vmem:[%s3931_s25 + $0xd0] sm:$0xff] }
  0x1c   : > { %199 = vst [vmem:[%s3936_s26 + $0xc0] sm:$0xff] %v198_v24  ;;  %201 = vst [vmem:[%s3936_s26 + $0xc8] sm:$0xff] %v200_v25  ;;  %v204_v27 = vld [vmem:[%s3931_s25 + $0xd8] sm:$0xff]  ;;  %v206_v28 = vld [vmem:[%s3931_s25 + $0xe0] sm:$0xff] }
  0x1d   : > { %203 = vst [vmem:[%s3936_s26 + $0xd0] sm:$0xff] %v202_v26  ;;  %v208_v29 = vld [vmem:[%s3931_s25 + $0xe8] sm:$0xff]  ;;  %205 = vst [vmem:[%s3936_s26 + $0xd8] sm:$0xff] %v204_v27  ;;  %v210_v30 = vld [vmem:[%s3931_s25 + $0xf0] sm:$0xff] }
  0x1e   : > { %207 = vst [vmem:[%s3936_s26 + $0xe0] sm:$0xff] %v206_v28  ;;  %209 = vst [vmem:[%s3936_s26 + $0xe8] sm:$0xff] %v208_v29  ;;  %v212_v31 = vld [vmem:[%s3931_s25 + $0xf8] sm:$0xff]  ;;  %v214_v32 = vld [vmem:[%s3931_s25 + $0x200] sm:$0xff] }
  0x1f   : > { %211 = vst [vmem:[%s3936_s26 + $0xf0] sm:$0xff] %v210_v30  ;;  %213 = vst [vmem:[%s3936_s26 + $0xf8] sm:$0xff] %v212_v31  ;;  %v216_v33 = vld [vmem:[%s3931_s25 + $0x208] sm:$0xff]  ;;  %v218_v34 = vld [vmem:[%s3931_s25 + $0x210] sm:$0xff] }
  0x20   : > { %215 = vst [vmem:[%s3936_s26 + $0x100] sm:$0xff] %v214_v32  ;;  %v220_v35 = vld [vmem:[%s3931_s25 + $0x218] sm:$0xff]  ;;  %217 = vst [vmem:[%s3936_s26 + $0x108] sm:$0xff] %v216_v33  ;;  %v222_v36 = vld [vmem:[%s3931_s25 + $0x220] sm:$0xff] }
  0x21   : > { %219 = vst [vmem:[%s3936_s26 + $0x110] sm:$0xff] %v218_v34  ;;  %221 = vst [vmem:[%s3936_s26 + $0x118] sm:$0xff] %v220_v35  ;;  %v224_v37 = vld [vmem:[%s3931_s25 + $0x228] sm:$0xff]  ;;  %v226_v38 = vld [vmem:[%s3931_s25 + $0x230] sm:$0xff] }
  0x22   : > { %223 = vst [vmem:[%s3936_s26 + $0x120] sm:$0xff] %v222_v36  ;;  %225 = vst [vmem:[%s3936_s26 + $0x128] sm:$0xff] %v224_v37  ;;  %v228_v39 = vld [vmem:[%s3931_s25 + $0x238] sm:$0xff]  ;;  %v230_v40 = vld [vmem:[%s3931_s25 + $0x240] sm:$0xff] }
  0x23   : > { %227 = vst [vmem:[%s3936_s26 + $0x130] sm:$0xff] %v226_v38  ;;  %v232_v41 = vld [vmem:[%s3931_s25 + $0x248] sm:$0xff]  ;;  %229 = vst [vmem:[%s3936_s26 + $0x138] sm:$0xff] %v228_v39  ;;  %v234_v42 = vld [vmem:[%s3931_s25 + $0x250] sm:$0xff] }
  0x24   : > { %231 = vst [vmem:[%s3936_s26 + $0x140] sm:$0xff] %v230_v40  ;;  %233 = vst [vmem:[%s3936_s26 + $0x148] sm:$0xff] %v232_v41  ;;  %v236_v43 = vld [vmem:[%s3931_s25 + $0x258] sm:$0xff]  ;;  %v238_v44 = vld [vmem:[%s3931_s25 + $0x260] sm:$0xff] }
  0x25   : > { %235 = vst [vmem:[%s3936_s26 + $0x150] sm:$0xff] %v234_v42  ;;  %237 = vst [vmem:[%s3936_s26 + $0x158] sm:$0xff] %v236_v43  ;;  %v240_v45 = vld [vmem:[%s3931_s25 + $0x268] sm:$0xff]  ;;  %v242_v46 = vld [vmem:[%s3931_s25 + $0x270] sm:$0xff] }
  0x26   : > { %239 = vst [vmem:[%s3936_s26 + $0x160] sm:$0xff] %v238_v44  ;;  %v244_v47 = vld [vmem:[%s3931_s25 + $0x278] sm:$0xff]  ;;  %241 = vst [vmem:[%s3936_s26 + $0x168] sm:$0xff] %v240_v45  ;;  %v246_v48 = vld [vmem:[%s3931_s25 + $0x280] sm:$0xff] }
  0x27   : > { %243 = vst [vmem:[%s3936_s26 + $0x170] sm:$0xff] %v242_v46  ;;  %245 = vst [vmem:[%s3936_s26 + $0x178] sm:$0xff] %v244_v47  ;;  %v248_v49 = vld [vmem:[%s3931_s25 + $0x288] sm:$0xff]  ;;  %v250_v50 = vld [vmem:[%s3931_s25 + $0x290] sm:$0xff] }
  0x28   : > { %247 = vst [vmem:[%s3936_s26 + $0x180] sm:$0xff] %v246_v48  ;;  %249 = vst [vmem:[%s3936_s26 + $0x188] sm:$0xff] %v248_v49  ;;  %v252_v51 = vld [vmem:[%s3931_s25 + $0x298] sm:$0xff]  ;;  %v254_v52 = vld [vmem:[%s3931_s25 + $0x2a0] sm:$0xff] }
  0x29   : > { %251 = vst [vmem:[%s3936_s26 + $0x190] sm:$0xff] %v250_v50  ;;  %v256_v53 = vld [vmem:[%s3931_s25 + $0x2a8] sm:$0xff]  ;;  %253 = vst [vmem:[%s3936_s26 + $0x198] sm:$0xff] %v252_v51  ;;  %v258_v54 = vld [vmem:[%s3931_s25 + $0x2b0] sm:$0xff] }
  0x2a   : > { %255 = vst [vmem:[%s3936_s26 + $0x1a0] sm:$0xff] %v254_v52  ;;  %257 = vst [vmem:[%s3936_s26 + $0x1a8] sm:$0xff] %v256_v53  ;;  %v260_v55 = vld [vmem:[%s3931_s25 + $0x2b8] sm:$0xff]  ;;  %v262_v56 = vld [vmem:[%s3931_s25 + $0x2c0] sm:$0xff] }
  0x2b   : > { %259 = vst [vmem:[%s3936_s26 + $0x1b0] sm:$0xff] %v258_v54  ;;  %261 = vst [vmem:[%s3936_s26 + $0x1b8] sm:$0xff] %v260_v55  ;;  %v264_v57 = vld [vmem:[%s3931_s25 + $0x2c8] sm:$0xff]  ;;  %v266_v58 = vld [vmem:[%s3931_s25 + $0x2d0] sm:$0xff] }
  0x2c   : > { %263 = vst [vmem:[%s3936_s26 + $0x1c0] sm:$0xff] %v262_v56  ;;  %v268_v59 = vld [vmem:[%s3931_s25 + $0x2d8] sm:$0xff]  ;;  %265 = vst [vmem:[%s3936_s26 + $0x1c8] sm:$0xff] %v264_v57  ;;  %v270_v60 = vld [vmem:[%s3931_s25 + $0x2e0] sm:$0xff] }
  0x2d   : > { %267 = vst [vmem:[%s3936_s26 + $0x1d0] sm:$0xff] %v266_v58  ;;  %269 = vst [vmem:[%s3936_s26 + $0x1d8] sm:$0xff] %v268_v59  ;;  %v272_v61 = vld [vmem:[%s3931_s25 + $0x2e8] sm:$0xff]  ;;  %v274_v62 = vld [vmem:[%s3931_s25 + $0x2f0] sm:$0xff] }
  0x2e   : > { %271 = vst [vmem:[%s3936_s26 + $0x1e0] sm:$0xff] %v270_v60  ;;  %273 = vst [vmem:[%s3936_s26 + $0x1e8] sm:$0xff] %v272_v61  ;;  %v276_v63 = vld [vmem:[%s3931_s25 + $0x2f8] sm:$0xff] }
  0x2f   : > { %275 = vst [vmem:[%s3936_s26 + $0x1f0] sm:$0xff] %v274_v62  ;;  %277 = vst [vmem:[%s3936_s26 + $0x1f8] sm:$0xff] %v276_v63 }
  0x30 PF: > { %p3708_p5 = scmp.ge.s32.totalorder %s3859_s14, 1  ;;  %p282_p6 = scmp.lt.s32.totalorder %s3859_s14, 3 }
  0x32   : > { %p283_p7 = pnand %p3708_p5, %p282_p6 }
  0x34   : > { %286 = sbr.rel (%p283_p7) target bundleno = 636 (0x27c), region = 51 }
  0x39   : > { %v383_v0 = vld [vmem:[%s7882_s1] sm:$0xf]  ;;  %v3861_v1 = vmov 2   ;;  %v3862_v2 = vmov 0   ;;  %v3863_v3 = vmov 3   ;;  %v3864_v4 = vmov 1  }
  0x3a   : > { %3757 = vset.pattern.permute.xlu1 %v3861_v1  ;;  %3755 = vset.pattern.permute.xlu0 %v3862_v2  ;;  %v3865_v5 = vmov 4   ;;  %v3866_v6 = vmov 5   ;;  %v3867_v7 = vmov 6   ;;  %v3868_v8 = vmov 8   ;;  %s289_s29 = sand.u32 1, %s3851_s12   ;;  %s7813_s7 = sshll.u32 %s3701_s15, 5 }
  0x3b   : > { %778 = vperm.xlu1 %3757, %v383_v0   ;;  %386 = vperm.xlu0 %3755, %v383_v0   ;;  %v3869_v9 = vmov 7   ;;  %v3870_v10 = vmov 11   ;;  %v3871_v11 = vmov 9   ;;  %v3872_v12 = vmov 14   ;;  %s3709_s30 = sshll.u32 %s289_s29, 9  ;;  %p314_p8 = scmp.lt.s32.totalorder %s7813_s7, 63 }
  0x3c   : > { %v3873_v13 = vmov 10   ;;  %v3874_v14 = vmov 12   ;;  %v389_v15 = vlaneseq  ;;  %v3875_v16 = vmov 13   ;;  %v3521_v19 = vld [vmem:[%s7883_s2] sm:$0xf]  ;;  %s4076_s6 = scalar_lea.vmem [#allocation2], %s3709_s30 }
  0x3d   : > { %v3876_v18 = vmov 15   ;;  %v4079_v20 = vld [vmem:[%s4076_s6] sm:$0xff]  ;;  %v4085_v22 = vld [vmem:[%s4076_s6 + $0x8] sm:$0xff]  ;;  %v4088_v23 = vld [vmem:[%s4076_s6 + $0x10] sm:$0xff]  ;;  %s9404_s7 = smov (!%p314_p8, %s7813_s7), 63 }
  0x3e   : > { %v4071_v17 = vshrl.u32 %v389_v15, 7  ;;  %8063 = vst [vmem:[#allocation3_spill] sm:$0xff] %v4079_v20  ;;  %8065 = vst [vmem:[#allocation5_spill] sm:$0xff] %v4085_v22  ;;  %v4091_v24 = vld [vmem:[%s4076_s6 + $0x18] sm:$0xff]  ;;  %v4094_v25 = vld [vmem:[%s4076_s6 + $0x20] sm:$0xff]  ;;  %s3711_s8 = sshll.u32 %s9404_s7, 2 }
  0x3f   : > { %3758 = vset.pattern.permute.xlu1 %v3863_v3  ;;  %3756 = vset.pattern.permute.xlu0 %v3864_v4  ;;  %8066 = vst [vmem:[#allocation6_spill] sm:$0xff] %v4088_v23  ;;  %8067 = vst [vmem:[#allocation7_spill] sm:$0xff] %v4091_v24  ;;  %v4097_v26 = vld [vmem:[%s4076_s6 + $0x28] sm:$0xff]  ;;  %v4100_v27 = vld [vmem:[%s4076_s6 + $0x30] sm:$0xff]  ;;  %s7853_s11 = scalar_lea.vmem %s7884_s3, %s3711_s8 }
  0x40   : > { %974 = vperm.xlu1 %3758, %v383_v0   ;;  %582 = vperm.xlu0 %3756, %v383_v0   ;;  %v4082_v21 = vsub.s32 2, %v4071_v17  ;;  %8068 = vst [vmem:[#allocation8_spill] sm:$0xff] %v4094_v25  ;;  %8069 = vst [vmem:[#allocation9_spill] sm:$0xff] %v4097_v26  ;;  %v4103_v28 = vld [vmem:[%s4076_s6 + $0x38] sm:$0xff]  ;;  %v4106_v29 = vld [vmem:[%s4076_s6 + $0x40] sm:$0xff]  ;;  %v4136_v39 = vsub.s32 0, %v4071_v17 }
  0x41   : > { %8070 = vst [vmem:[#allocation10_spill] sm:$0xff] %v4100_v27  ;;  %8071 = vst [vmem:[#allocation11_spill] sm:$0xff] %v4103_v28  ;;  %v4109_v30 = vld [vmem:[%s4076_s6 + $0x48] sm:$0xff]  ;;  %v4112_v31 = vld [vmem:[%s4076_s6 + $0x50] sm:$0xff]  ;;  %v4139_v40 = vsub.s32 3, %v4071_v17 }
  0x42   : > { %8064 = vst [vmem:[#allocation4_spill] sm:$0xff] %v4082_v21  ;;  %8072 = vst [vmem:[#allocation12_spill] sm:$0xff] %v4106_v29  ;;  %v4116_v32 = vld [vmem:[%s4076_s6 + $0x58] sm:$0xff]  ;;  %v4119_v33 = vld [vmem:[%s4076_s6 + $0x60] sm:$0xff]  ;;  %v8136_v44 = vrot.slane %v4085_v22, %v4082_v21 }
  0x43   : > { %8073 = vst [vmem:[#allocation13_spill] sm:$0xff] %v4109_v30  ;;  %8074 = vst [vmem:[#allocation14_spill] sm:$0xff] %v4112_v31  ;;  %v4122_v34 = vld [vmem:[%s4076_s6 + $0x68] sm:$0xff]  ;;  %v4125_v35 = vld [vmem:[%s4076_s6 + $0x70] sm:$0xff] }
  0x44   : > { %3759 = vset.pattern.permute.xlu1 %v3865_v5  ;;  %3760 = vset.pattern.permute.xlu0 %v3866_v6  ;;  %8075 = vst [vmem:[#allocation15_spill] sm:$0xff] %v4116_v32  ;;  %8076 = vst [vmem:[#allocation16_spill] sm:$0xff] %v4119_v33  ;;  %v4128_v36 = vld [vmem:[%s4076_s6 + $0x78] sm:$0xff]  ;;  %v4131_v37 = vld [vmem:[%s4076_s6 + $0x80] sm:$0xff] }
  0x45   : > { %1170 = vperm.xlu1 %3759, %v383_v0   ;;  %1366 = vperm.xlu0 %3760, %v383_v0   ;;  %8077 = vst [vmem:[#allocation17_spill] sm:$0xff] %v4122_v34  ;;  %8078 = vst [vmem:[#allocation18_spill] sm:$0xff] %v4125_v35  ;;  %v4142_v41 = vld [vmem:[%s4076_s6 + $0x88] sm:$0xff]  ;;  %v4145_v42 = vld [vmem:[%s4076_s6 + $0x90] sm:$0xff] }
  0x46   : > { %8079 = vst [vmem:[#allocation19_spill] sm:$0xff] %v4128_v36  ;;  %8080 = vst [vmem:[#allocation20_spill] sm:$0xff] %v4131_v37  ;;  %v4148_v43 = vld [vmem:[%s4076_s6 + $0x98] sm:$0xff]  ;;  %v4159_v48 = vld [vmem:[%s4076_s6 + $0xa0] sm:$0xff] }
  0x47   : > { %8081 = vst [vmem:[#allocation21_spill] sm:$0xff] %v4136_v39  ;;  %8082 = vst [vmem:[#allocation22_spill] sm:$0xff] %v4139_v40  ;;  %v4162_v49 = vld [vmem:[%s4076_s6 + $0xa8] sm:$0xff]  ;;  %v4165_v50 = vld [vmem:[%s4076_s6 + $0xb0] sm:$0xff] }
  0x48   : > { %8083 = vst [vmem:[#allocation23_spill] sm:$0xff] %v4142_v41  ;;  %8084 = vst [vmem:[#allocation24_spill] sm:$0xff] %v4145_v42  ;;  %v4176_v55 = vld [vmem:[%s4076_s6 + $0xb8] sm:$0xff]  ;;  %v4179_v56 = vld [vmem:[%s4076_s6 + $0xc0] sm:$0xff] }
  0x49   : > { %3761 = vset.pattern.permute.xlu1 %v3867_v7  ;;  %3763 = vset.pattern.permute.xlu0 %v3868_v8  ;;  %8085 = vst [vmem:[#allocation25_spill] sm:$0xff] %v4148_v43  ;;  %8086 = vst [vmem:[#allocation26_spill] sm:$0xff] %v4159_v48  ;;  %v4182_v57 = vld [vmem:[%s4076_s6 + $0xc8] sm:$0xff]  ;;  %v4193_v62 = vld [vmem:[%s4076_s6 + $0xd0] sm:$0xff] }
  0x4a   : > { %1562 = vperm.xlu1 %3761, %v383_v0   ;;  %1954 = vperm.xlu0 %3763, %v383_v0   ;;  %8087 = vst [vmem:[#allocation27_spill] sm:$0xff] %v4162_v49  ;;  %8088 = vst [vmem:[#allocation28_spill] sm:$0xff] %v4165_v50  ;;  %v4196_v63 = vld [vmem:[%s4076_s6 + $0xd8] sm:$0xff]  ;;  %v4210_v5 = vld [vmem:[%s4076_s6 + $0xe8] sm:$0xff] }
  0x4b   : > { %8089 = vst [vmem:[#allocation29_spill] sm:$0xff] %v4176_v55  ;;  %8090 = vst [vmem:[#allocation30_spill] sm:$0xff] %v4179_v56  ;;  %v4213_v6 = vld [vmem:[%s4076_s6 + $0xf0] sm:$0xff]  ;;  %v4216_v7 = vld [vmem:[%s4076_s6 + $0xf8] sm:$0xff] }
  0x4c   : > { %8091 = vst [vmem:[#allocation31_spill] sm:$0xff] %v4182_v57  ;;  %8092 = vst [vmem:[#allocation32_spill] sm:$0xff] %v4193_v62  ;;  %v4683_v15 = vld [vmem:[%s4076_s6 + $0x108] sm:$0xff]  ;;  %v4689_v4 = vld [vmem:[%s4076_s6 + $0x118] sm:$0xff] }
  0x4d   : > { %8093 = vst [vmem:[#allocation33_spill] sm:$0xff] %v4196_v63  ;;  %8095 = vst [vmem:[#allocation35_spill] sm:$0xff] %v4210_v5  ;;  %v4700_v3 = vld [vmem:[%s4076_s6 + $0x120] sm:$0xff]  ;;  %v4706_v1 = vld [vmem:[%s4076_s6 + $0x130] sm:$0xff] }
  0x4e   : > { %3762 = vset.pattern.permute.xlu1 %v3869_v9  ;;  %3766 = vset.pattern.permute.xlu0 %v3870_v10  ;;  %8096 = vst [vmem:[#allocation36_spill] sm:$0xff] %v4213_v6  ;;  %8103 = vst [vmem:[#allocation43_spill] sm:$0xff] %v4683_v15  ;;  %v4686_v10 = vld [vmem:[%s4076_s6 + $0x110] sm:$0xff]  ;;  %v4709_v61 = vld [vmem:[%s4076_s6 + $0x138] sm:$0xff] }
  0x4f   : > { %1758 = vperm.xlu1 %3762, %v383_v0   ;;  %2542 = vperm.xlu0 %3766, %v383_v0   ;;  %8104 = vst [vmem:[#allocation44_spill] sm:$0xff] %v4686_v10  ;;  %8105 = vst [vmem:[#allocation45_spill] sm:$0xff] %v4689_v4  ;;  %v4720_v60 = vld [vmem:[%s4076_s6 + $0x140] sm:$0xff]  ;;  %v4723_v59 = vld [vmem:[%s4076_s6 + $0x148] sm:$0xff] }
  0x50   : > { %8106 = vst [vmem:[#allocation46_spill] sm:$0xff] %v4700_v3  ;;  %8108 = vst [vmem:[#allocation48_spill] sm:$0xff] %v4706_v1  ;;  %v4726_v58 = vld [vmem:[%s4076_s6 + $0x150] sm:$0xff]  ;;  %v4737_v54 = vld [vmem:[%s4076_s6 + $0x158] sm:$0xff]  ;;  %v8142_v3 = vrot.slane %v4094_v25, %v4082_v21 }
  0x51   : > { %8109 = vst [vmem:[#allocation49_spill] sm:$0xff] %v4709_v61  ;;  %8110 = vst [vmem:[#allocation50_spill] sm:$0xff] %v4720_v60  ;;  %v4740_v53 = vld [vmem:[%s4076_s6 + $0x160] sm:$0xff]  ;;  %v4743_v52 = vld [vmem:[%s4076_s6 + $0x168] sm:$0xff]  ;;  %v8174_v60 = vrot.slane %v4159_v48, %v4082_v21 }
  0x52   : > { %8111 = vst [vmem:[#allocation51_spill] sm:$0xff] %v4723_v59  ;;  %8112 = vst [vmem:[#allocation52_spill] sm:$0xff] %v4726_v58  ;;  %v4754_v51 = vld [vmem:[%s4076_s6 + $0x170] sm:$0xff]  ;;  %v4757_v47 = vld [vmem:[%s4076_s6 + $0x178] sm:$0xff]  ;;  %v8140_v59 = vrot.slane %v4091_v24, %v4082_v21 }
  0x53   : > { %3764 = vset.pattern.permute.xlu1 %v3871_v11  ;;  %3769 = vset.pattern.permute.xlu0 %v3872_v12  ;;  %v4241_v12 = vsub.s32 1, %v4071_v17  ;;  %v4680_v11 = vld [vmem:[%s4076_s6 + $0x100] sm:$0xff]  ;;  %8113 = vst [vmem:[#allocation53_spill] sm:$0xff] %v4737_v54  ;;  %8114 = vst [vmem:[#allocation54_spill] sm:$0xff] %v4740_v53  ;;  %v4763_v45 = vld [vmem:[%s4076_s6 + $0x188] sm:$0xff]  ;;  %v8172_v53 = vrot.slane %v4148_v43, %v4082_v21 }
  0x54   : > { %2150 = vperm.xlu1 %3764, %v383_v0   ;;  %3130 = vperm.xlu0 %3769, %v383_v0   ;;  %8102 = vst [vmem:[#allocation42_spill] sm:$0xff] %v4680_v11  ;;  %8115 = vst [vmem:[#allocation55_spill] sm:$0xff] %v4743_v52  ;;  %v4760_v46 = vld [vmem:[%s4076_s6 + $0x180] sm:$0xff]  ;;  %v4769_v8 = vld [vmem:[%s4076_s6 + $0x198] sm:$0xff]  ;;  %v8170_v52 = vrot.slane %v4145_v42, %v4082_v21  ;;  %v8176_v11 = vrot.slane %v4162_v49, %v4082_v21 }
  0x55   : > { %8097 = vst [vmem:[#allocation37_spill] sm:$0xff] %v4241_v12  ;;  %8116 = vst [vmem:[#allocation56_spill] sm:$0xff] %v4754_v51  ;;  %v4797_v4 = vld [vmem:[%s4076_s6 + $0x1b8] sm:$0xff]  ;;  %v4800_v10 = vld [vmem:[%s4076_s6 + $0x1c0] sm:$0xff] }
  0x56   : > { %8117 = vst [vmem:[#allocation57_spill] sm:$0xff] %v4757_v47  ;;  %8118 = vst [vmem:[#allocation58_spill] sm:$0xff] %v4760_v46  ;;  %v4803_v15 = vld [vmem:[%s4076_s6 + $0x1c8] sm:$0xff]  ;;  %v4814_v61 = vld [vmem:[%s4076_s6 + $0x1d0] sm:$0xff]  ;;  %v8138_v47 = vrot.slane %v4088_v23, %v4082_v21  ;;  %v8168_v46 = vrot.slane %v4142_v41, %v4082_v21 }
  0x57   : > { %8119 = vst [vmem:[#allocation59_spill] sm:$0xff] %v4763_v45  ;;  %8121 = vst [vmem:[#allocation61_spill] sm:$0xff] %v4769_v8  ;;  %v4817_v1 = vld [vmem:[%s4076_s6 + $0x1d8] sm:$0xff]  ;;  %v4831_v58 = vld [vmem:[%s4076_s6 + $0x1e8] sm:$0xff]  ;;  %v8162_v8 = vrot.slane %v4125_v35, %v4082_v21  ;;  %v8166_v45 = vrot.slane %v4131_v37, %v4082_v21 }
  0x58   : > { %3765 = vset.pattern.permute.xlu1 %v3873_v13  ;;  %3772 = vset.pattern.permute.xlu0 %v3862_v2  ;;  %v4483_v13 = vsub.s32 5, %v4071_v17  ;;  %8125 = vst [vmem:[#allocation65_spill] sm:$0xff] %v4797_v4  ;;  %8126 = vst [vmem:[#allocation66_spill] sm:$0xff] %v4800_v10  ;;  %v4834_v38 = vld [vmem:[%s4076_s6 + $0x1f0] sm:$0xff]  ;;  %v4837_v54 = vld [vmem:[%s4076_s6 + $0x1f8] sm:$0xff]  ;;  %v8154_v10 = vrot.slane %v4112_v31, %v4082_v21  ;;  %v8156_v4 = vrot.slane %v4116_v32, %v4082_v21 }
  0x59   : > { %2346 = vperm.xlu1 %3765, %v383_v0   ;;  %8127 = vst [vmem:[#allocation67_spill] sm:$0xff] %v4803_v15  ;;  %8128 = vst [vmem:[#allocation68_spill] sm:$0xff] %v4814_v61  ;;  %v8150_v61 = vrot.slane %v4106_v29, %v4082_v21  ;;  %v8152_v15 = vrot.slane %v4109_v30, %v4082_v21 }
  0x5a   : > { %8099 = vst [vmem:[#allocation39_spill] sm:$0xff] %v4483_v13  ;;  %v4786_v13 = vld [vmem:[%s4076_s6 + $0x1b0] sm:$0xff]  ;;  %8129 = vst [vmem:[#allocation69_spill] sm:$0xff] %v4817_v1 }
  0x5b   : > { %8124 = vst [vmem:[#allocation64_spill] sm:$0xff] %v4786_v13  ;;  %8131 = vst [vmem:[#allocation71_spill] sm:$0xff] %v4831_v58  ;;  %v8146_v58 = vrot.slane %v4100_v27, %v4082_v21  ;;  %v8158_v13 = vrot.slane %v4119_v33, %v4082_v21 }
  0x5c   : > { %8132 = vst [vmem:[#allocation72_spill] sm:$0xff] %v4834_v38  ;;  %8133 = vst [vmem:[#allocation73_spill] sm:$0xff] %v4837_v54  ;;  %v8144_v54 = vrot.slane %v4097_v26, %v4082_v21 }
  0x5d   : > { %3767 = vset.pattern.permute.xlu1 %v3874_v14  ;;  %v4766_v14 = vld [vmem:[%s4076_s6 + $0x190] sm:$0xff] }
  0x5e   : > { %2738 = vperm.xlu1 %3767, %v383_v0   ;;  %8120 = vst [vmem:[#allocation60_spill] sm:$0xff] %v4766_v14  ;;  %v8164_v14 = vrot.slane %v4128_v36, %v4082_v21 }
  0x62   : > { %3768 = vset.pattern.permute.xlu1 %v3875_v16  ;;  %v4418_v16 = vsub.s32 4, %v4071_v17 }
  0x63   : > { %2934 = vperm.xlu1 %3768, %v383_v0  }
  0x64   : > { %8098 = vst [vmem:[#allocation38_spill] sm:$0xff] %v4418_v16  ;;  %v8178_v16 = vrot.slane %v4165_v50, %v4082_v21 }
  0x67   : > { %3770 = vset.pattern.permute.xlu1 %v3876_v18  ;;  %v4548_v18 = vsub.s32 6, %v4071_v17 }
  0x68   : > { %3326 = vperm.xlu1 %3770, %v383_v0   ;;  %v4199_v0 = vld [vmem:[%s4076_s6 + $0xe0] sm:$0xff] }
  0x69   : > { %8094 = vst [vmem:[#allocation34_spill] sm:$0xff] %v4199_v0  ;;  %8100 = vst [vmem:[#allocation40_spill] sm:$0xff] %v4548_v18  ;;  %v4783_v18 = vld [vmem:[%s4076_s6 + $0x1a8] sm:$0xff] }
  0x6a   : > { %8123 = vst [vmem:[#allocation63_spill] sm:$0xff] %v4783_v18  ;;  %v8160_v18 = vrot.slane %v4122_v34, %v4082_v21 }
  0x6c   : > { %3771 = vset.pattern.permute.xlu1 %v3862_v2  ;;  %v4703_v2 = vld [vmem:[%s4076_s6 + $0x128] sm:$0xff] }
  0x6d   : > { %3524 = vperm.xlu1 %3771, %v3521_v19   ;;  %v4621_v19 = vsub.s32 7, %v4071_v17  ;;  %8107 = vst [vmem:[#allocation47_spill] sm:$0xff] %v4703_v2  ;;  %v4820_v2 = vld [vmem:[%s4076_s6 + $0x1e0] sm:$0xff]  ;;  %v8134_v17 = vrot.slane %v4079_v20, %v4082_v21 }
  0x6e   : > { %8130 = vst [vmem:[#allocation70_spill] sm:$0xff] %v4820_v2  ;;  %v8148_v2 = vrot.slane %v4103_v28, %v4082_v21 }
  0x6f   : > { %8101 = vst [vmem:[#allocation41_spill] sm:$0xff] %v4621_v19  ;;  %v4780_v19 = vld [vmem:[%s4076_s6 + $0x1a0] sm:$0xff] }
  0x70   : > { %8122 = vst [vmem:[#allocation62_spill] sm:$0xff] %v4780_v19 }
  0xb6   : > { %v779_v19 = vpop.permute.xlu1 %778 }
  0xb7   : > { %v4874_v9 = vmul.f32 %v8134_v17, %v779_v19  ;;  %v4879_v1 = vmul.f32 %v8136_v44, %v779_v19  ;;  %v4884_v51 = vmul.f32 %v8138_v47, %v779_v19  ;;  %v4889_v38 = vmul.f32 %v8140_v59, %v779_v19 }
  0xb8   : > { %v4894_v17 = vmul.f32 %v8142_v3, %v779_v19  ;;  %v4899_v44 = vmul.f32 %v8144_v54, %v779_v19  ;;  %v4904_v47 = vmul.f32 %v8146_v58, %v779_v19  ;;  %v4909_v59 = vmul.f32 %v8148_v2, %v779_v19 }
  0xb9   : > { %8135 = vst [vmem:[#allocation74_spill] sm:$0xff] %v4874_v9  ;;  %8137 = vst [vmem:[#allocation75_spill] sm:$0xff] %v4879_v1  ;;  %v4914_v3 = vmul.f32 %v8150_v61, %v779_v19  ;;  %v4919_v54 = vmul.f32 %v8152_v15, %v779_v19  ;;  %v4924_v58 = vmul.f32 %v8154_v10, %v779_v19 }
  0xba   : > { %8139 = vst [vmem:[#allocation76_spill] sm:$0xff] %v4884_v51  ;;  %8141 = vst [vmem:[#allocation77_spill] sm:$0xff] %v4889_v38  ;;  %v4929_v2 = vmul.f32 %v8156_v4, %v779_v19  ;;  %v4934_v61 = vmul.f32 %v8158_v13, %v779_v19  ;;  %v4939_v15 = vmul.f32 %v8160_v18, %v779_v19 }
  0xbb   : > { %8143 = vst [vmem:[#allocation78_spill] sm:$0xff] %v4894_v17  ;;  %8145 = vst [vmem:[#allocation79_spill] sm:$0xff] %v4899_v44  ;;  %v4944_v10 = vmul.f32 %v8162_v8, %v779_v19  ;;  %v4949_v4 = vmul.f32 %v8164_v14, %v779_v19  ;;  %v4954_v13 = vmul.f32 %v8166_v45, %v779_v19 }
  0xbc   : > { %8147 = vst [vmem:[#allocation80_spill] sm:$0xff] %v4904_v47  ;;  %8149 = vst [vmem:[#allocation81_spill] sm:$0xff] %v4909_v59  ;;  %v4959_v18 = vmul.f32 %v8168_v46, %v779_v19  ;;  %v4964_v8 = vmul.f32 %v8170_v52, %v779_v19  ;;  %v4969_v14 = vmul.f32 %v8172_v53, %v779_v19 }
  0xbd   : > { %8151 = vst [vmem:[#allocation82_spill] sm:$0xff] %v4914_v3  ;;  %8153 = vst [vmem:[#allocation83_spill] sm:$0xff] %v4919_v54  ;;  %v4974_v45 = vmul.f32 %v8174_v60, %v779_v19  ;;  %v4979_v46 = vmul.f32 %v8176_v11, %v779_v19  ;;  %v4984_v52 = vmul.f32 %v8178_v16, %v779_v19 }
  0xbe   : > { %8155 = vst [vmem:[#allocation84_spill] sm:$0xff] %v4924_v58  ;;  %8157 = vst [vmem:[#allocation85_spill] sm:$0xff] %v4929_v2  ;;  %v8210_v2 = vrot.slane %v4119_v33, %v4136_v39  ;;  %v8211_v58 = vrot.slane %v4122_v34, %v4136_v39  ;;  %v8212_v54 = vrot.slane %v4125_v35, %v4136_v39 }
  0xbf   : > { %8159 = vst [vmem:[#allocation86_spill] sm:$0xff] %v4934_v61  ;;  %8161 = vst [vmem:[#allocation87_spill] sm:$0xff] %v4939_v15  ;;  %v8208_v15 = vrot.slane %v4112_v31, %v4136_v39  ;;  %v8209_v61 = vrot.slane %v4116_v32, %v4136_v39  ;;  %v8213_v3 = vrot.slane %v4128_v36, %v4136_v39 }
  0xc0   : > { %8163 = vst [vmem:[#allocation88_spill] sm:$0xff] %v4944_v10  ;;  %8165 = vst [vmem:[#allocation89_spill] sm:$0xff] %v4949_v4  ;;  %v8206_v4 = vrot.slane %v4106_v29, %v4136_v39  ;;  %v8207_v10 = vrot.slane %v4109_v30, %v4136_v39  ;;  %v8214_v59 = vrot.slane %v4131_v37, %v4136_v39 }
  0xc1   : > { %8167 = vst [vmem:[#allocation90_spill] sm:$0xff] %v4954_v13  ;;  %8169 = vst [vmem:[#allocation91_spill] sm:$0xff] %v4959_v18  ;;  %v8204_v18 = vrot.slane %v4100_v27, %v4136_v39  ;;  %v8205_v13 = vrot.slane %v4103_v28, %v4136_v39  ;;  %v8215_v47 = vrot.slane %v4142_v41, %v4136_v39 }
  0xc2   : > { %8171 = vst [vmem:[#allocation92_spill] sm:$0xff] %v4964_v8  ;;  %8173 = vst [vmem:[#allocation93_spill] sm:$0xff] %v4969_v14  ;;  %v8180_v8 = vrot.slane %v4176_v55, %v4082_v21  ;;  %v8182_v14 = vrot.slane %v4179_v56, %v4082_v21  ;;  %v8216_v44 = vrot.slane %v4145_v42, %v4136_v39 }
  0xc3   : > { %8175 = vst [vmem:[#allocation94_spill] sm:$0xff] %v4974_v45  ;;  %8177 = vst [vmem:[#allocation95_spill] sm:$0xff] %v4979_v46  ;;  %v8184_v45 = vrot.slane %v4182_v57, %v4082_v21  ;;  %v8186_v46 = vrot.slane %v4193_v62, %v4082_v21  ;;  %v8218_v17 = vrot.slane %v4148_v43, %v4136_v39 }
  0xc4   : > { %8179 = vst [vmem:[#allocation96_spill] sm:$0xff] %v4984_v52  ;;  %v4989_v53 = vmul.f32 %v8180_v8, %v779_v19  ;;  %v4994_v60 = vmul.f32 %v8182_v14, %v779_v19  ;;  %v8188_v52 = vrot.slane %v4196_v63, %v4082_v21  ;;  %v8220_v38 = vrot.slane %v4159_v48, %v4136_v39 }
  0xc5   : > { %v4999_v11 = vmul.f32 %v8184_v45, %v779_v19  ;;  %v5004_v16 = vmul.f32 %v8186_v46, %v779_v19  ;;  %v8222_v51 = vrot.slane %v4162_v49, %v4136_v39  ;;  %v8224_v1 = vrot.slane %v4165_v50, %v4136_v39 }
  0xc6   : > { %8181 = vst [vmem:[#allocation97_spill] sm:$0xff] %v4989_v53  ;;  %8183 = vst [vmem:[#allocation98_spill] sm:$0xff] %v4994_v60  ;;  %v5009_v8 = vmul.f32 %v8188_v52, %v779_v19  ;;  %v8190_v53 = vrot.slane %v4199_v0, %v4082_v21  ;;  %v8192_v60 = vrot.slane %v4210_v5, %v4082_v21 }
  0xc7   : > { %8185 = vst [vmem:[#allocation99_spill] sm:$0xff] %v4999_v11  ;;  %8187 = vst [vmem:[#allocation100_spill] sm:$0xff] %v5004_v16  ;;  %v8194_v11 = vrot.slane %v4213_v6, %v4082_v21  ;;  %v8196_v16 = vrot.slane %v4216_v7, %v4082_v21  ;;  %v8202_v21 = vrot.slane %v4094_v25, %v4136_v39 }
  0xc8   : > { %8189 = vst [vmem:[#allocation101_spill] sm:$0xff] %v5009_v8  ;;  %v5014_v14 = vmul.f32 %v8190_v53, %v779_v19  ;;  %v5019_v45 = vmul.f32 %v8192_v60, %v779_v19  ;;  %v387_v8 = vpop.permute.xlu0 %386  ;;  %v8198_v53 = vrot.slane %v4079_v20, %v4136_v39  ;;  %v8199_v60 = vrot.slane %v4085_v22, %v4136_v39 }
  0xc9   : > { %v5024_v46 = vmul.f32 %v8194_v11, %v779_v19  ;;  %v5029_v52 = vmul.f32 %v8196_v16, %v779_v19  ;;  %v8200_v11 = vrot.slane %v4088_v23, %v4136_v39  ;;  %v8201_v19 = vrot.slane %v4091_v24, %v4136_v39 }
  0xca   : > { %8191 = vst [vmem:[#allocation102_spill] sm:$0xff] %v5014_v14  ;;  %8193 = vst [vmem:[#allocation103_spill] sm:$0xff] %v5019_v45  ;;  %v5034_v14 = vmul.f32 %v8198_v53, %v387_v8  ;;  %v5039_v45 = vmul.f32 %v8199_v60, %v387_v8  ;;  %v5054_v53 = vmul.f32 %v8202_v21, %v387_v8 }
  0xcb   : > { %8195 = vst [vmem:[#allocation104_spill] sm:$0xff] %v5024_v46  ;;  %8197 = vst [vmem:[#allocation105_spill] sm:$0xff] %v5029_v52  ;;  %v5044_v46 = vmul.f32 %v8200_v11, %v387_v8  ;;  %v5049_v16 = vmul.f32 %v8201_v19, %v387_v8  ;;  %v8203_v52 = vrot.slane %v4097_v26, %v4136_v39 }
  0xcc   : > { %v5064_v11 = vmul.f32 %v8204_v18, %v387_v8  ;;  %v5069_v19 = vmul.f32 %v8205_v13, %v387_v8  ;;  %v5074_v21 = vmul.f32 %v8206_v4, %v387_v8  ;;  %v5084_v18 = vmul.f32 %v8208_v15, %v387_v8 }
  0xcd   : > { %v5059_v60 = vmul.f32 %v8203_v52, %v387_v8  ;;  %v5079_v52 = vmul.f32 %v8207_v10, %v387_v8  ;;  %v5089_v13 = vmul.f32 %v8209_v61, %v387_v8  ;;  %v5094_v4 = vmul.f32 %v8210_v2, %v387_v8 }
  0xce   : > { %v5099_v10 = vmul.f32 %v8211_v58, %v387_v8  ;;  %v5104_v15 = vmul.f32 %v8212_v54, %v387_v8  ;;  %v5109_v61 = vmul.f32 %v8213_v3, %v387_v8  ;;  %v5114_v2 = vmul.f32 %v8214_v59, %v387_v8 }
  0xcf   : > { %v5119_v58 = vmul.f32 %v8215_v47, %v387_v8  ;;  %v5124_v54 = vmul.f32 %v8216_v44, %v387_v8  ;;  %v5129_v3 = vmul.f32 %v8218_v17, %v387_v8  ;;  %v5134_v59 = vmul.f32 %v8220_v38, %v387_v8 }
  0xd0   : > { %v5139_v47 = vmul.f32 %v8222_v51, %v387_v8  ;;  %v5144_v44 = vmul.f32 %v8224_v1, %v387_v8  ;;  %v8226_v9 = vrot.slane %v4176_v55, %v4136_v39  ;;  %v8228_v38 = vrot.slane %v4179_v56, %v4136_v39 }
  0xd1   : > { %8217 = vst [vmem:[#allocation106_spill] sm:$0xff] %v5124_v54  ;;  %8219 = vst [vmem:[#allocation107_spill] sm:$0xff] %v5129_v3  ;;  %v975_v3 = vpop.permute.xlu1 %974  ;;  %v8230_v51 = vrot.slane %v4182_v57, %v4136_v39  ;;  %v8232_v1 = vrot.slane %v4193_v62, %v4136_v39  ;;  %v8236_v54 = vrot.slane %v4199_v0, %v4136_v39 }
  0xd2   : > { %8221 = vst [vmem:[#allocation108_spill] sm:$0xff] %v5134_v59  ;;  %8223 = vst [vmem:[#allocation109_spill] sm:$0xff] %v5139_v47  ;;  %v5149_v17 = vmul.f32 %v8226_v9, %v387_v8  ;;  %v5154_v59 = vmul.f32 %v8228_v38, %v387_v8  ;;  %v8234_v9 = vrot.slane %v4196_v63, %v4136_v39 }
  0xd3   : > { %8225 = vst [vmem:[#allocation110_spill] sm:$0xff] %v5144_v44  ;;  %v5159_v47 = vmul.f32 %v8230_v51, %v387_v8  ;;  %v5164_v44 = vmul.f32 %v8232_v1, %v387_v8  ;;  %v5174_v38 = vmul.f32 %v8236_v54, %v387_v8 }
  0xd4   : > { %8227 = vst [vmem:[#allocation111_spill] sm:$0xff] %v5149_v17  ;;  %8229 = vst [vmem:[#allocation112_spill] sm:$0xff] %v5154_v59  ;;  %v5169_v17 = vmul.f32 %v8234_v9, %v387_v8  ;;  %v8238_v59 = vrot.slane %v4210_v5, %v4136_v39 }
  0xd5   : > { %8231 = vst [vmem:[#allocation113_spill] sm:$0xff] %v5159_v47  ;;  %8233 = vst [vmem:[#allocation114_spill] sm:$0xff] %v5164_v44  ;;  %v8240_v47 = vrot.slane %v4213_v6, %v4136_v39  ;;  %v8242_v44 = vrot.slane %v4216_v7, %v4136_v39  ;;  %v8250_v39 = vrot.slane %v4091_v24, %v4139_v40 }
  0xd6   : > { %8235 = vst [vmem:[#allocation115_spill] sm:$0xff] %v5169_v17  ;;  %8237 = vst [vmem:[#allocation116_spill] sm:$0xff] %v5174_v38  ;;  %v5179_v51 = vmul.f32 %v8238_v59, %v387_v8  ;;  %v8244_v17 = vrot.slane %v4079_v20, %v4139_v40  ;;  %v8246_v38 = vrot.slane %v4085_v22, %v4139_v40 }
  0xd7   : > { %v5184_v1 = vmul.f32 %v8240_v47, %v387_v8  ;;  %v5189_v9 = vmul.f32 %v8242_v44, %v387_v8  ;;  %v5209_v8 = vmul.f32 %v8250_v39, %v975_v3  ;;  %v8252_v44 = vrot.slane %v4094_v25, %v4139_v40 }
  0xd8   : > { %8239 = vst [vmem:[#allocation117_spill] sm:$0xff] %v5179_v51  ;;  %v5194_v54 = vmul.f32 %v8244_v17, %v975_v3  ;;  %v5199_v59 = vmul.f32 %v8246_v38, %v975_v3  ;;  %v8248_v51 = vrot.slane %v4088_v23, %v4139_v40 }
  0xd9   : > { %8241 = vst [vmem:[#allocation118_spill] sm:$0xff] %v5184_v1  ;;  %8243 = vst [vmem:[#allocation119_spill] sm:$0xff] %v5189_v9  ;;  %v5214_v17 = vmul.f32 %v8252_v44, %v975_v3  ;;  %v8300_v9 = vrot.slane %v4199_v0, %v4139_v40 }
  0xda   : > { %8245 = vst [vmem:[#allocation120_spill] sm:$0xff] %v5194_v54  ;;  %8247 = vst [vmem:[#allocation121_spill] sm:$0xff] %v5199_v59  ;;  %v5204_v47 = vmul.f32 %v8248_v51, %v975_v3  ;;  %v8254_v54 = vrot.slane %v4097_v26, %v4139_v40  ;;  %v8256_v59 = vrot.slane %v4100_v27, %v4139_v40 }
  0xdb   : > { %8251 = vst [vmem:[#allocation123_spill] sm:$0xff] %v5209_v8  ;;  %8253 = vst [vmem:[#allocation124_spill] sm:$0xff] %v5214_v17  ;;  %v8260_v8 = vrot.slane %v4106_v29, %v4139_v40  ;;  %v8262_v17 = vrot.slane %v4109_v30, %v4139_v40 }
  0xdc   : > { %8249 = vst [vmem:[#allocation122_spill] sm:$0xff] %v5204_v47  ;;  %v5219_v38 = vmul.f32 %v8254_v54, %v975_v3  ;;  %v5224_v51 = vmul.f32 %v8256_v59, %v975_v3  ;;  %v8258_v47 = vrot.slane %v4103_v28, %v4139_v40 }
  0xdd   : > { %v5234_v44 = vmul.f32 %v8260_v8, %v975_v3  ;;  %v5239_v54 = vmul.f32 %v8262_v17, %v975_v3 }
  0xde   : > { %8255 = vst [vmem:[#allocation125_spill] sm:$0xff] %v5219_v38  ;;  %8257 = vst [vmem:[#allocation126_spill] sm:$0xff] %v5224_v51  ;;  %v5229_v39 = vmul.f32 %v8258_v47, %v975_v3  ;;  %v8264_v38 = vrot.slane %v4112_v31, %v4139_v40  ;;  %v8266_v51 = vrot.slane %v4116_v32, %v4139_v40 }
  0xdf   : > { %8261 = vst [vmem:[#allocation128_spill] sm:$0xff] %v5234_v44  ;;  %8263 = vst [vmem:[#allocation129_spill] sm:$0xff] %v5239_v54  ;;  %v8270_v44 = vrot.slane %v4122_v34, %v4139_v40  ;;  %v8272_v54 = vrot.slane %v4125_v35, %v4139_v40 }
  0xe0   : > { %8259 = vst [vmem:[#allocation127_spill] sm:$0xff] %v5229_v39  ;;  %v5244_v59 = vmul.f32 %v8264_v38, %v975_v3  ;;  %v5249_v47 = vmul.f32 %v8266_v51, %v975_v3  ;;  %v8268_v39 = vrot.slane %v4119_v33, %v4139_v40 }
  0xe1   : > { %v5259_v17 = vmul.f32 %v8270_v44, %v975_v3  ;;  %v5264_v38 = vmul.f32 %v8272_v54, %v975_v3 }
  0xe2   : > { %8265 = vst [vmem:[#allocation130_spill] sm:$0xff] %v5244_v59  ;;  %8267 = vst [vmem:[#allocation131_spill] sm:$0xff] %v5249_v47  ;;  %v5254_v8 = vmul.f32 %v8268_v39, %v975_v3  ;;  %v8274_v59 = vrot.slane %v4128_v36, %v4139_v40  ;;  %v8276_v47 = vrot.slane %v4131_v37, %v4139_v40 }
  0xe3   : > { %8271 = vst [vmem:[#allocation133_spill] sm:$0xff] %v5259_v17  ;;  %8273 = vst [vmem:[#allocation134_spill] sm:$0xff] %v5264_v38  ;;  %v8280_v17 = vrot.slane %v4145_v42, %v4139_v40  ;;  %v8282_v38 = vrot.slane %v4148_v43, %v4139_v40 }
  0xe4   : > { %8269 = vst [vmem:[#allocation132_spill] sm:$0xff] %v5254_v8  ;;  %v5269_v51 = vmul.f32 %v8274_v59, %v975_v3  ;;  %v5274_v39 = vmul.f32 %v8276_v47, %v975_v3  ;;  %v8278_v8 = vrot.slane %v4142_v41, %v4139_v40 }
  0xe5   : > { %v5284_v54 = vmul.f32 %v8280_v17, %v975_v3  ;;  %v5289_v59 = vmul.f32 %v8282_v38, %v975_v3 }
  0xe6   : > { %8275 = vst [vmem:[#allocation135_spill] sm:$0xff] %v5269_v51  ;;  %8277 = vst [vmem:[#allocation136_spill] sm:$0xff] %v5274_v39  ;;  %v5279_v44 = vmul.f32 %v8278_v8, %v975_v3  ;;  %v8284_v51 = vrot.slane %v4159_v48, %v4139_v40  ;;  %v8286_v39 = vrot.slane %v4162_v49, %v4139_v40 }
  0xe7   : > { %8281 = vst [vmem:[#allocation138_spill] sm:$0xff] %v5284_v54  ;;  %8283 = vst [vmem:[#allocation139_spill] sm:$0xff] %v5289_v59  ;;  %v8290_v54 = vrot.slane %v4176_v55, %v4139_v40  ;;  %v583_v59 = vpop.permute.xlu0 %582 }
  0xe8   : > { %8279 = vst [vmem:[#allocation137_spill] sm:$0xff] %v5279_v44  ;;  %v5294_v47 = vmul.f32 %v8284_v51, %v975_v3  ;;  %v5299_v8 = vmul.f32 %v8286_v39, %v975_v3  ;;  %v8288_v44 = vrot.slane %v4165_v50, %v4139_v40  ;;  %v8292_v51 = vrot.slane %v4179_v56, %v4139_v40 }
  0xe9   : > { %v5309_v38 = vmul.f32 %v8290_v54, %v975_v3  ;;  %v8294_v39 = vrot.slane %v4182_v57, %v4139_v40  ;;  %v8298_v54 = vrot.slane %v4196_v63, %v4139_v40 }
  0xea   : > { %8285 = vst [vmem:[#allocation140_spill] sm:$0xff] %v5294_v47  ;;  %8287 = vst [vmem:[#allocation141_spill] sm:$0xff] %v5299_v8  ;;  %v5304_v17 = vmul.f32 %v8288_v44, %v975_v3  ;;  %v5314_v47 = vmul.f32 %v8292_v51, %v975_v3  ;;  %v8296_v44 = vrot.slane %v4193_v62, %v4139_v40 }
  0xeb   : > { %8291 = vst [vmem:[#allocation143_spill] sm:$0xff] %v5309_v38  ;;  %v5319_v8 = vmul.f32 %v8294_v39, %v975_v3  ;;  %v5329_v38 = vmul.f32 %v8298_v54, %v975_v3  ;;  %v5334_v51 = vmul.f32 %v8300_v9, %v975_v3 }
  0xec   : > { %8289 = vst [vmem:[#allocation142_spill] sm:$0xff] %v5304_v17  ;;  %8293 = vst [vmem:[#allocation144_spill] sm:$0xff] %v5314_v47  ;;  %v5324_v17 = vmul.f32 %v8296_v44, %v975_v3  ;;  %v8302_v47 = vrot.slane %v4210_v5, %v4139_v40 }
  0xed   : > { %8295 = vst [vmem:[#allocation145_spill] sm:$0xff] %v5319_v8  ;;  %8299 = vst [vmem:[#allocation147_spill] sm:$0xff] %v5329_v38  ;;  %v8304_v8 = vrot.slane %v4213_v6, %v4139_v40  ;;  %v8307_v38 = vrot.slane %v4079_v20, %v4241_v12 }
  0xee   : > { %8297 = vst [vmem:[#allocation146_spill] sm:$0xff] %v5324_v17  ;;  %8301 = vst [vmem:[#allocation148_spill] sm:$0xff] %v5334_v51  ;;  %v5339_v39 = vmul.f32 %v8302_v47, %v975_v3  ;;  %v8306_v17 = vrot.slane %v4216_v7, %v4139_v40  ;;  %v8308_v51 = vrot.slane %v4085_v22, %v4241_v12 }
  0xef   : > { %v5344_v44 = vmul.f32 %v8304_v8, %v975_v3  ;;  %v713_v9 = vmul.f32 %v8307_v38, %v583_v59  ;;  %v8309_v47 = vrot.slane %v4088_v23, %v4241_v12  ;;  %v8310_v8 = vrot.slane %v4091_v24, %v4241_v12 }
  0xf0   : > { %8303 = vst [vmem:[#allocation149_spill] sm:$0xff] %v5339_v39  ;;  %v5349_v54 = vmul.f32 %v8306_v17, %v975_v3  ;;  %v714_v1 = vmul.f32 %v8308_v51, %v583_v59  ;;  %v8311_v3 = vrot.slane %v4094_v25, %v4241_v12  ;;  %v8312_v40 = vrot.slane %v4097_v26, %v4241_v12 }
  0xf1   : > { %8305 = vst [vmem:[#allocation150_spill] sm:$0xff] %v5344_v44  ;;  %v715_v39 = vmul.f32 %v8309_v47, %v583_v59  ;;  %v716_v44 = vmul.f32 %v8310_v8, %v583_v59  ;;  %v8313_v22 = vrot.slane %v4100_v27, %v4241_v12  ;;  %v8314_v23 = vrot.slane %v4103_v28, %v4241_v12 }
  0xf2   : > { %v717_v17 = vmul.f32 %v8311_v3, %v583_v59  ;;  %v718_v38 = vmul.f32 %v8312_v40, %v583_v59  ;;  %v8315_v24 = vrot.slane %v4106_v29, %v4241_v12  ;;  %v8316_v25 = vrot.slane %v4109_v30, %v4241_v12 }
  0xf3   : > { %v719_v51 = vmul.f32 %v8313_v22, %v583_v59  ;;  %v720_v47 = vmul.f32 %v8314_v23, %v583_v59  ;;  %v8317_v26 = vrot.slane %v4112_v31, %v4241_v12  ;;  %v8318_v27 = vrot.slane %v4116_v32, %v4241_v12 }
  0xf4   : > { %v721_v8 = vmul.f32 %v8315_v24, %v583_v59  ;;  %v722_v3 = vmul.f32 %v8316_v25, %v583_v59  ;;  %v8319_v28 = vrot.slane %v4119_v33, %v4241_v12  ;;  %v8320_v29 = vrot.slane %v4122_v34, %v4241_v12 }
  0xf5   : > { %v723_v40 = vmul.f32 %v8317_v26, %v583_v59  ;;  %v724_v22 = vmul.f32 %v8318_v27, %v583_v59  ;;  %v8321_v30 = vrot.slane %v4125_v35, %v4241_v12  ;;  %v8322_v31 = vrot.slane %v4128_v36, %v4241_v12 }
  0xf6   : > { %v725_v23 = vmul.f32 %v8319_v28, %v583_v59  ;;  %v726_v24 = vmul.f32 %v8320_v29, %v583_v59  ;;  %v8323_v32 = vrot.slane %v4131_v37, %v4241_v12  ;;  %v8324_v33 = vrot.slane %v4142_v41, %v4241_v12 }
  0xf7   : > { %v727_v25 = vmul.f32 %v8321_v30, %v583_v59  ;;  %v728_v26 = vmul.f32 %v8322_v31, %v583_v59  ;;  %v8325_v34 = vrot.slane %v4145_v42, %v4241_v12  ;;  %v8326_v35 = vrot.slane %v4148_v43, %v4241_v12 }
  0xf8   : > { %v729_v27 = vmul.f32 %v8323_v32, %v583_v59  ;;  %v730_v28 = vmul.f32 %v8324_v33, %v583_v59  ;;  %v8327_v36 = vrot.slane %v4159_v48, %v4241_v12  ;;  %v8328_v37 = vrot.slane %v4162_v49, %v4241_v12 }
  0xf9   : > { %v731_v29 = vmul.f32 %v8325_v34, %v583_v59  ;;  %v732_v30 = vmul.f32 %v8326_v35, %v583_v59  ;;  %v8329_v41 = vrot.slane %v4165_v50, %v4241_v12  ;;  %v8330_v42 = vrot.slane %v4176_v55, %v4241_v12 }
  0xfa   : > { %v733_v31 = vmul.f32 %v8327_v36, %v583_v59  ;;  %v734_v32 = vmul.f32 %v8328_v37, %v583_v59  ;;  %v8331_v43 = vrot.slane %v4179_v56, %v4241_v12  ;;  %v8332_v48 = vrot.slane %v4182_v57, %v4241_v12 }
  0xfb   : > { %v735_v33 = vmul.f32 %v8329_v41, %v583_v59  ;;  %v736_v34 = vmul.f32 %v8330_v42, %v583_v59  ;;  %v8333_v49 = vrot.slane %v4193_v62, %v4241_v12  ;;  %v8334_v50 = vrot.slane %v4196_v63, %v4241_v12 }
  0xfc   : > { %v737_v35 = vmul.f32 %v8331_v43, %v583_v59  ;;  %v738_v36 = vmul.f32 %v8332_v48, %v583_v59  ;;  %v8335_v55 = vrot.slane %v4199_v0, %v4241_v12  ;;  %v8336_v56 = vrot.slane %v4210_v5, %v4241_v12 }
  0xfd   : > { %v739_v37 = vmul.f32 %v8333_v49, %v583_v59  ;;  %v740_v41 = vmul.f32 %v8334_v50, %v583_v59  ;;  %v8337_v57 = vrot.slane %v4213_v6, %v4241_v12  ;;  %v8338_v62 = vrot.slane %v4216_v7, %v4241_v12 }
  0xfe   : > { %v741_v42 = vmul.f32 %v8335_v55, %v583_v59  ;;  %v742_v43 = vmul.f32 %v8336_v56, %v583_v59  ;;  %v745_v20 = vadd.f32 %v713_v9, %v5034_v14  ;;  %v746_v50 = vadd.f32 %v714_v1, %v5039_v45  ;;  %v8339_v1 = vld [vmem:[#allocation106_spill] sm:$0xff] }
  0xff   : > { %v743_v48 = vmul.f32 %v8337_v57, %v583_v59  ;;  %v744_v49 = vmul.f32 %v8338_v62, %v583_v59  ;;  %v747_v63 = vadd.f32 %v715_v39, %v5044_v46  ;;  %v748_v55 = vadd.f32 %v716_v44, %v5049_v16  ;;  %v8340_v59 = vld [vmem:[#allocation107_spill] sm:$0xff]  ;;  %v8341_v39 = vld [vmem:[#allocation108_spill] sm:$0xff]  ;;  %v8342_v44 = vld [vmem:[#allocation109_spill] sm:$0xff] }
 0x100   : > { %v749_v0 = vadd.f32 %v717_v17, %v5054_v53  ;;  %v750_v56 = vadd.f32 %v718_v38, %v5059_v60  ;;  %v751_v5 = vadd.f32 %v719_v51, %v5064_v11  ;;  %v752_v57 = vadd.f32 %v720_v47, %v5069_v19  ;;  %v8343_v9 = vld [vmem:[#allocation110_spill] sm:$0xff]  ;;  %v8344_v17 = vld [vmem:[#allocation111_spill] sm:$0xff]  ;;  %v8345_v38 = vld [vmem:[#allocation112_spill] sm:$0xff] }
 0x101   : > { %v753_v6 = vadd.f32 %v721_v8, %v5074_v21  ;;  %v754_v62 = vadd.f32 %v722_v3, %v5079_v52  ;;  %v755_v14 = vadd.f32 %v723_v40, %v5084_v18  ;;  %v756_v45 = vadd.f32 %v724_v22, %v5089_v13  ;;  %v8346_v51 = vld [vmem:[#allocation113_spill] sm:$0xff]  ;;  %v8347_v47 = vld [vmem:[#allocation114_spill] sm:$0xff]  ;;  %v8348_v8 = vld [vmem:[#allocation115_spill] sm:$0xff] }
 0x102   : > { %v757_v46 = vadd.f32 %v725_v23, %v5094_v4  ;;  %v758_v16 = vadd.f32 %v726_v24, %v5099_v10  ;;  %v759_v53 = vadd.f32 %v727_v25, %v5104_v15  ;;  %v760_v60 = vadd.f32 %v728_v26, %v5109_v61  ;;  %v8349_v3 = vld [vmem:[#allocation116_spill] sm:$0xff]  ;;  %v8350_v22 = vld [vmem:[#allocation117_spill] sm:$0xff]  ;;  %v8351_v24 = vld [vmem:[#allocation118_spill] sm:$0xff] }
 0x103   : > { %v761_v11 = vadd.f32 %v729_v27, %v5114_v2  ;;  %v762_v19 = vadd.f32 %v730_v28, %v5119_v58  ;;  %v763_v21 = vadd.f32 %v731_v29, %v8339_v1  ;;  %v764_v52 = vadd.f32 %v732_v30, %v8340_v59  ;;  %v8352_v26 = vld [vmem:[#allocation119_spill] sm:$0xff]  ;;  %v8353_v28 = vld [vmem:[#allocation74_spill] sm:$0xff]  ;;  %v8359_v59 = vld [vmem:[#allocation80_spill] sm:$0xff] }
 0x104   : > { %v765_v18 = vadd.f32 %v733_v31, %v8341_v39  ;;  %v766_v13 = vadd.f32 %v734_v32, %v8342_v44  ;;  %v767_v4 = vadd.f32 %v735_v33, %v8343_v9  ;;  %v768_v10 = vadd.f32 %v736_v34, %v8344_v17  ;;  %v8354_v30 = vld [vmem:[#allocation75_spill] sm:$0xff]  ;;  %v8355_v32 = vld [vmem:[#allocation76_spill] sm:$0xff]  ;;  %v8356_v34 = vld [vmem:[#allocation77_spill] sm:$0xff] }
 0x105   : > { %v769_v15 = vadd.f32 %v737_v35, %v8345_v38  ;;  %v770_v61 = vadd.f32 %v738_v36, %v8346_v51  ;;  %v771_v2 = vadd.f32 %v739_v37, %v8347_v47  ;;  %v772_v58 = vadd.f32 %v740_v41, %v8348_v8  ;;  %v8357_v36 = vld [vmem:[#allocation78_spill] sm:$0xff]  ;;  %v8358_v1 = vld [vmem:[#allocation79_spill] sm:$0xff]  ;;  %v8360_v39 = vld [vmem:[#allocation81_spill] sm:$0xff] }
 0x106   : > { %v773_v40 = vadd.f32 %v741_v42, %v8349_v3  ;;  %v774_v23 = vadd.f32 %v742_v43, %v8350_v22  ;;  %v775_v25 = vadd.f32 %v743_v48, %v8351_v24  ;;  %v776_v27 = vadd.f32 %v744_v49, %v8352_v26  ;;  %v8361_v44 = vld [vmem:[#allocation82_spill] sm:$0xff]  ;;  %v8362_v9 = vld [vmem:[#allocation83_spill] sm:$0xff]  ;;  %v8363_v17 = vld [vmem:[#allocation84_spill] sm:$0xff] }
 0x107   : > { %v941_v29 = vadd.f32 %v8353_v28, %v745_v20  ;;  %v942_v31 = vadd.f32 %v8354_v30, %v746_v50  ;;  %v943_v33 = vadd.f32 %v8355_v32, %v747_v63  ;;  %v944_v35 = vadd.f32 %v8356_v34, %v748_v55  ;;  %v8364_v38 = vld [vmem:[#allocation85_spill] sm:$0xff]  ;;  %v8365_v51 = vld [vmem:[#allocation86_spill] sm:$0xff]  ;;  %v8366_v47 = vld [vmem:[#allocation87_spill] sm:$0xff] }
 0x108   : > { %v945_v37 = vadd.f32 %v8357_v36, %v749_v0  ;;  %v946_v41 = vadd.f32 %v8358_v1, %v750_v56  ;;  %v947_v42 = vadd.f32 %v8359_v59, %v751_v5  ;;  %v948_v43 = vadd.f32 %v8360_v39, %v752_v57  ;;  %v8367_v8 = vld [vmem:[#allocation88_spill] sm:$0xff]  ;;  %v8368_v3 = vld [vmem:[#allocation89_spill] sm:$0xff]  ;;  %v8369_v22 = vld [vmem:[#allocation90_spill] sm:$0xff] }
 0x109   : > { %v949_v48 = vadd.f32 %v8361_v44, %v753_v6  ;;  %v950_v49 = vadd.f32 %v8362_v9, %v754_v62  ;;  %v951_v20 = vadd.f32 %v8363_v17, %v755_v14  ;;  %v952_v50 = vadd.f32 %v8364_v38, %v756_v45  ;;  %v8370_v24 = vld [vmem:[#allocation91_spill] sm:$0xff]  ;;  %v8371_v26 = vld [vmem:[#allocation92_spill] sm:$0xff]  ;;  %v8372_v28 = vld [vmem:[#allocation93_spill] sm:$0xff] }
 0x10a   : > { %v953_v63 = vadd.f32 %v8365_v51, %v757_v46  ;;  %v954_v55 = vadd.f32 %v8366_v47, %v758_v16  ;;  %v955_v0 = vadd.f32 %v8367_v8, %v759_v53  ;;  %v956_v56 = vadd.f32 %v8368_v3, %v760_v60  ;;  %v8373_v30 = vld [vmem:[#allocation94_spill] sm:$0xff]  ;;  %v8374_v32 = vld [vmem:[#allocation95_spill] sm:$0xff]  ;;  %v8375_v34 = vld [vmem:[#allocation96_spill] sm:$0xff] }
 0x10b   : > { %v957_v5 = vadd.f32 %v8369_v22, %v761_v11  ;;  %v958_v57 = vadd.f32 %v8370_v24, %v762_v19  ;;  %v959_v6 = vadd.f32 %v8371_v26, %v763_v21  ;;  %v960_v62 = vadd.f32 %v8372_v28, %v764_v52  ;;  %v8376_v36 = vld [vmem:[#allocation97_spill] sm:$0xff]  ;;  %v8377_v1 = vld [vmem:[#allocation98_spill] sm:$0xff]  ;;  %v8378_v59 = vld [vmem:[#allocation99_spill] sm:$0xff] }
 0x10c   : > { %v961_v14 = vadd.f32 %v8373_v30, %v765_v18  ;;  %v962_v45 = vadd.f32 %v8374_v32, %v766_v13  ;;  %v963_v46 = vadd.f32 %v8375_v34, %v767_v4  ;;  %v964_v16 = vadd.f32 %v8376_v36, %v768_v10  ;;  %v8379_v39 = vld [vmem:[#allocation100_spill] sm:$0xff]  ;;  %v8380_v44 = vld [vmem:[#allocation101_spill] sm:$0xff]  ;;  %v8381_v9 = vld [vmem:[#allocation102_spill] sm:$0xff] }
 0x10d   : > { %v965_v53 = vadd.f32 %v8377_v1, %v769_v15  ;;  %v966_v60 = vadd.f32 %v8378_v59, %v770_v61  ;;  %v967_v11 = vadd.f32 %v8379_v39, %v771_v2  ;;  %v968_v19 = vadd.f32 %v8380_v44, %v772_v58  ;;  %v8382_v17 = vld [vmem:[#allocation103_spill] sm:$0xff]  ;;  %v8383_v38 = vld [vmem:[#allocation104_spill] sm:$0xff]  ;;  %v8384_v51 = vld [vmem:[#allocation105_spill] sm:$0xff] }
 0x10e   : > { %v969_v21 = vadd.f32 %v8381_v9, %v773_v40  ;;  %v970_v52 = vadd.f32 %v8382_v17, %v774_v23  ;;  %v971_v18 = vadd.f32 %v8383_v38, %v775_v25  ;;  %v972_v13 = vadd.f32 %v8384_v51, %v776_v27  ;;  %v8385_v47 = vld [vmem:[#allocation120_spill] sm:$0xff]  ;;  %v8386_v10 = vld [vmem:[#allocation121_spill] sm:$0xff]  ;;  %v8387_v15 = vld [vmem:[#allocation122_spill] sm:$0xff] }
 0x10f   : > { %v5512_v4 = vadd.f32 %v8385_v47, %v941_v29  ;;  %v5515_v8 = vadd.f32 %v8386_v10, %v942_v31  ;;  %v5518_v61 = vadd.f32 %v8387_v15, %v943_v33  ;;  %v8388_v2 = vld [vmem:[#allocation123_spill] sm:$0xff]  ;;  %v8389_v58 = vld [vmem:[#allocation124_spill] sm:$0xff]  ;;  %v8390_v23 = vld [vmem:[#allocation125_spill] sm:$0xff] }
 0x110   : > { %v5521_v3 = vadd.f32 %v8388_v2, %v944_v35  ;;  %v5524_v40 = vadd.f32 %v8389_v58, %v945_v37  ;;  %v5527_v22 = vadd.f32 %v8390_v23, %v946_v41  ;;  %v8391_v25 = vld [vmem:[#allocation126_spill] sm:$0xff]  ;;  %v8392_v29 = vld [vmem:[#allocation127_spill] sm:$0xff]  ;;  %v8393_v31 = vld [vmem:[#allocation128_spill] sm:$0xff] }
 0x111   : > { %v5530_v27 = vadd.f32 %v8391_v25, %v947_v42  ;;  %v5533_v24 = vadd.f32 %v8392_v29, %v948_v43  ;;  %v5536_v26 = vadd.f32 %v8393_v31, %v949_v48  ;;  %v8394_v33 = vld [vmem:[#allocation129_spill] sm:$0xff]  ;;  %v8395_v35 = vld [vmem:[#allocation130_spill] sm:$0xff]  ;;  %v8396_v37 = vld [vmem:[#allocation131_spill] sm:$0xff] }
 0x112   : > { %v5539_v28 = vadd.f32 %v8394_v33, %v950_v49  ;;  %v5542_v30 = vadd.f32 %v8395_v35, %v951_v20  ;;  %v5545_v32 = vadd.f32 %v8396_v37, %v952_v50  ;;  %v8397_v41 = vld [vmem:[#allocation132_spill] sm:$0xff]  ;;  %v8398_v42 = vld [vmem:[#allocation133_spill] sm:$0xff]  ;;  %v8399_v43 = vld [vmem:[#allocation134_spill] sm:$0xff] }
 0x113   : > { %v5548_v34 = vadd.f32 %v8397_v41, %v953_v63  ;;  %v5551_v36 = vadd.f32 %v8398_v42, %v954_v55  ;;  %v5554_v1 = vadd.f32 %v8399_v43, %v955_v0  ;;  %v8400_v48 = vld [vmem:[#allocation135_spill] sm:$0xff]  ;;  %v8401_v49 = vld [vmem:[#allocation136_spill] sm:$0xff]  ;;  %v8402_v20 = vld [vmem:[#allocation137_spill] sm:$0xff]  ;;  %v1171_v55 = vpop.permute.xlu1 %1170 }
 0x114   : > { %v5557_v59 = vadd.f32 %v8400_v48, %v956_v56  ;;  %v5560_v39 = vadd.f32 %v8401_v49, %v957_v5  ;;  %v5563_v44 = vadd.f32 %v8402_v20, %v958_v57  ;;  %v8403_v50 = vld [vmem:[#allocation138_spill] sm:$0xff]  ;;  %v8404_v63 = vld [vmem:[#allocation139_spill] sm:$0xff]  ;;  %v8406_v38 = vld [vmem:[#allocation140_spill] sm:$0xff] }
 0x115   : > { %v5566_v9 = vadd.f32 %v8403_v50, %v959_v6  ;;  %v5569_v17 = vadd.f32 %v8404_v63, %v960_v62  ;;  %v5572_v51 = vadd.f32 %v8406_v38, %v961_v14  ;;  %v8408_v0 = vld [vmem:[#allocation141_spill] sm:$0xff]  ;;  %v8410_v56 = vld [vmem:[#allocation142_spill] sm:$0xff]  ;;  %v8412_v5 = vld [vmem:[#allocation143_spill] sm:$0xff] }
 0x116   : > { %v5575_v47 = vadd.f32 %v8408_v0, %v962_v45  ;;  %v5578_v10 = vadd.f32 %v8410_v56, %v963_v46  ;;  %v5581_v15 = vadd.f32 %v8412_v5, %v964_v16  ;;  %v8414_v57 = vld [vmem:[#allocation144_spill] sm:$0xff]  ;;  %v8416_v6 = vld [vmem:[#allocation145_spill] sm:$0xff]  ;;  %v8418_v62 = vld [vmem:[#allocation146_spill] sm:$0xff] }
 0x117   : > { %8405 = vst [vmem:[#allocation106_spill] sm:$0xff] %v5569_v17  ;;  %8407 = vst [vmem:[#allocation107_spill] sm:$0xff] %v5572_v51  ;;  %v5584_v2 = vadd.f32 %v8414_v57, %v965_v53  ;;  %v5587_v58 = vadd.f32 %v8416_v6, %v966_v60  ;;  %v5590_v23 = vadd.f32 %v8418_v62, %v967_v11  ;;  %v8420_v14 = vld [vmem:[#allocation147_spill] sm:$0xff]  ;;  %v8422_v45 = vld [vmem:[#allocation148_spill] sm:$0xff] }
 0x118   : > { %8409 = vst [vmem:[#allocation108_spill] sm:$0xff] %v5575_v47  ;;  %8411 = vst [vmem:[#allocation109_spill] sm:$0xff] %v5578_v10  ;;  %v5593_v25 = vadd.f32 %v8420_v14, %v968_v19  ;;  %v5596_v29 = vadd.f32 %v8422_v45, %v969_v21  ;;  %v8424_v46 = vld [vmem:[#allocation149_spill] sm:$0xff]  ;;  %v8426_v16 = vld [vmem:[#allocation150_spill] sm:$0xff]  ;;  %v5605_v53 = vadd.f32 %v5349_v54, %v972_v13 }
 0x119   : > { %8413 = vst [vmem:[#allocation110_spill] sm:$0xff] %v5581_v15  ;;  %8415 = vst [vmem:[#allocation111_spill] sm:$0xff] %v5584_v2  ;;  %v5599_v31 = vadd.f32 %v8424_v46, %v970_v52  ;;  %v5602_v33 = vadd.f32 %v8426_v16, %v971_v18  ;;  %v8429_v60 = vld [vmem:[#allocation3_spill] sm:$0xff]  ;;  %v8430_v35 = vld [vmem:[#allocation38_spill] sm:$0xff] }
 0x11a   : > { %8417 = vst [vmem:[#allocation112_spill] sm:$0xff] %v5587_v58  ;;  %8419 = vst [vmem:[#allocation113_spill] sm:$0xff] %v5590_v23  ;;  %v8431_v37 = vrot.slane %v8429_v60, %v8430_v35  ;;  %v8432_v41 = vld [vmem:[#allocation5_spill] sm:$0xff]  ;;  %v8434_v43 = vld [vmem:[#allocation6_spill] sm:$0xff] }
 0x11b   : > { %8421 = vst [vmem:[#allocation114_spill] sm:$0xff] %v5593_v25  ;;  %8423 = vst [vmem:[#allocation115_spill] sm:$0xff] %v5596_v29  ;;  %v8433_v19 = vrot.slane %v8432_v41, %v8430_v35  ;;  %v8435_v21 = vrot.slane %v8434_v43, %v8430_v35  ;;  %v8436_v52 = vld [vmem:[#allocation7_spill] sm:$0xff]  ;;  %v8438_v20 = vld [vmem:[#allocation8_spill] sm:$0xff] }
 0x11c   : > { %8425 = vst [vmem:[#allocation116_spill] sm:$0xff] %v5599_v31  ;;  %8427 = vst [vmem:[#allocation117_spill] sm:$0xff] %v5602_v33  ;;  %v1301_v11 = vmul.f32 %v8431_v37, %v1171_v55  ;;  %v8437_v49 = vrot.slane %v8436_v52, %v8430_v35  ;;  %v8439_v54 = vrot.slane %v8438_v20, %v8430_v35  ;;  %v8440_v50 = vld [vmem:[#allocation9_spill] sm:$0xff]  ;;  %v8442_v0 = vld [vmem:[#allocation10_spill] sm:$0xff] }
 0x11d   : > { %8428 = vst [vmem:[#allocation118_spill] sm:$0xff] %v5605_v53  ;;  %v1302_v42 = vmul.f32 %v8433_v19, %v1171_v55  ;;  %v1303_v48 = vmul.f32 %v8435_v21, %v1171_v55  ;;  %v8441_v63 = vrot.slane %v8440_v50, %v8430_v35  ;;  %v8443_v56 = vrot.slane %v8442_v0, %v8430_v35  ;;  %v8444_v57 = vld [vmem:[#allocation11_spill] sm:$0xff]  ;;  %v8446_v14 = vld [vmem:[#allocation12_spill] sm:$0xff]  ;;  %v8448_v16 = vld [vmem:[#allocation13_spill] sm:$0xff] }
 0x11e   : > { %v1304_v18 = vmul.f32 %v8437_v49, %v1171_v55  ;;  %v1305_v13 = vmul.f32 %v8439_v54, %v1171_v55  ;;  %v8445_v6 = vrot.slane %v8444_v57, %v8430_v35  ;;  %v8447_v45 = vrot.slane %v8446_v14, %v8430_v35  ;;  %v8450_v21 = vld [vmem:[#allocation14_spill] sm:$0xff]  ;;  %v8454_v0 = vld [vmem:[#allocation16_spill] sm:$0xff]  ;;  %v8456_v50 = vld [vmem:[#allocation17_spill] sm:$0xff] }
 0x11f   : > { %v1306_v38 = vmul.f32 %v8441_v63, %v1171_v55  ;;  %v1307_v5 = vmul.f32 %v8443_v56, %v1171_v55  ;;  %v8449_v37 = vrot.slane %v8448_v16, %v8430_v35  ;;  %v8451_v49 = vrot.slane %v8450_v21, %v8430_v35  ;;  %v8452_v63 = vld [vmem:[#allocation15_spill] sm:$0xff]  ;;  %v8458_v20 = vld [vmem:[#allocation18_spill] sm:$0xff]  ;;  %v8462_v43 = vld [vmem:[#allocation20_spill] sm:$0xff] }
 0x120   : > { %v1308_v62 = vmul.f32 %v8445_v6, %v1171_v55  ;;  %v1309_v46 = vmul.f32 %v8447_v45, %v1171_v55  ;;  %v8453_v12 = vrot.slane %v8452_v63, %v8430_v35  ;;  %v8455_v57 = vrot.slane %v8454_v0, %v8430_v35  ;;  %v8460_v52 = vld [vmem:[#allocation19_spill] sm:$0xff]  ;;  %v8466_v60 = vld [vmem:[#allocation24_spill] sm:$0xff]  ;;  %v8468_v53 = vld [vmem:[#allocation25_spill] sm:$0xff] }
 0x121   : > { %v1310_v19 = vmul.f32 %v8449_v37, %v1171_v55  ;;  %v1311_v54 = vmul.f32 %v8451_v49, %v1171_v55  ;;  %v8457_v14 = vrot.slane %v8456_v50, %v8430_v35  ;;  %v8459_v16 = vrot.slane %v8458_v20, %v8430_v35  ;;  %v8464_v41 = vld [vmem:[#allocation23_spill] sm:$0xff]  ;;  %v8470_v33 = vld [vmem:[#allocation26_spill] sm:$0xff]  ;;  %v8474_v29 = vld [vmem:[#allocation28_spill] sm:$0xff] }
 0x122   : > { %v1312_v56 = vmul.f32 %v8453_v12, %v1171_v55  ;;  %v1313_v6 = vmul.f32 %v8455_v57, %v1171_v55  ;;  %v8461_v21 = vrot.slane %v8460_v52, %v8430_v35  ;;  %v8463_v63 = vrot.slane %v8462_v43, %v8430_v35  ;;  %v8472_v31 = vld [vmem:[#allocation27_spill] sm:$0xff]  ;;  %v8476_v25 = vld [vmem:[#allocation29_spill] sm:$0xff]  ;;  %v8478_v23 = vld [vmem:[#allocation30_spill] sm:$0xff] }
 0x123   : > { %v1314_v45 = vmul.f32 %v8457_v14, %v1171_v55  ;;  %v1315_v37 = vmul.f32 %v8459_v16, %v1171_v55  ;;  %v8465_v0 = vrot.slane %v8464_v41, %v8430_v35  ;;  %v8467_v50 = vrot.slane %v8466_v60, %v8430_v35  ;;  %v8480_v58 = vld [vmem:[#allocation31_spill] sm:$0xff]  ;;  %v8482_v2 = vld [vmem:[#allocation32_spill] sm:$0xff]  ;;  %v8484_v15 = vld [vmem:[#allocation33_spill] sm:$0xff] }
 0x124   : > { %v1316_v49 = vmul.f32 %v8461_v21, %v1171_v55  ;;  %v1317_v12 = vmul.f32 %v8463_v63, %v1171_v55  ;;  %v8469_v20 = vrot.slane %v8468_v53, %v8430_v35  ;;  %v8471_v52 = vrot.slane %v8470_v33, %v8430_v35  ;;  %v8486_v10 = vld [vmem:[#allocation34_spill] sm:$0xff]  ;;  %v8488_v47 = vld [vmem:[#allocation35_spill] sm:$0xff]  ;;  %v8490_v51 = vld [vmem:[#allocation36_spill] sm:$0xff] }
 0x125   : > { %v1318_v57 = vmul.f32 %v8465_v0, %v1171_v55  ;;  %v1319_v14 = vmul.f32 %v8467_v50, %v1171_v55  ;;  %v8473_v43 = vrot.slane %v8472_v31, %v8430_v35  ;;  %v8475_v41 = vrot.slane %v8474_v29, %v8430_v35 }
 0x126   : > { %v1320_v16 = vmul.f32 %v8469_v20, %v1171_v55  ;;  %v1321_v21 = vmul.f32 %v8471_v52, %v1171_v55  ;;  %v8477_v60 = vrot.slane %v8476_v25, %v8430_v35  ;;  %v8479_v53 = vrot.slane %v8478_v23, %v8430_v35 }
 0x127   : > { %v1322_v63 = vmul.f32 %v8473_v43, %v1171_v55  ;;  %v1323_v0 = vmul.f32 %v8475_v41, %v1171_v55  ;;  %v8481_v33 = vrot.slane %v8480_v58, %v8430_v35  ;;  %v8483_v31 = vrot.slane %v8482_v2, %v8430_v35 }
 0x128   : > { %v1324_v50 = vmul.f32 %v8477_v60, %v1171_v55  ;;  %v1325_v20 = vmul.f32 %v8479_v53, %v1171_v55  ;;  %v8485_v29 = vrot.slane %v8484_v15, %v8430_v35  ;;  %v8487_v25 = vrot.slane %v8486_v10, %v8430_v35 }
 0x129   : > { %v1326_v52 = vmul.f32 %v8481_v33, %v1171_v55  ;;  %v1327_v43 = vmul.f32 %v8483_v31, %v1171_v55  ;;  %v8489_v23 = vrot.slane %v8488_v47, %v8430_v35  ;;  %v8491_v58 = vrot.slane %v8490_v51, %v8430_v35 }
 0x12a   : > { %v1328_v41 = vmul.f32 %v8485_v29, %v1171_v55  ;;  %v1329_v60 = vmul.f32 %v8487_v25, %v1171_v55  ;;  %v8492_v2 = vrot.slane %v4216_v7, %v8430_v35  ;;  %v5704_v17 = vadd.f32 %v1301_v11, %v5512_v4  ;;  %v8540_v35 = vld [vmem:[#allocation14_spill] sm:$0xff] }
 0x12b   : > { %v1330_v53 = vmul.f32 %v8489_v23, %v1171_v55  ;;  %v1331_v33 = vmul.f32 %v8491_v58, %v1171_v55  ;;  %v5707_v29 = vadd.f32 %v1302_v42, %v5515_v8  ;;  %v5710_v25 = vadd.f32 %v1303_v48, %v5518_v61 }
 0x12c   : > { %v1332_v31 = vmul.f32 %v8492_v2, %v1171_v55  ;;  %v5713_v47 = vadd.f32 %v1304_v18, %v5521_v3  ;;  %v5716_v23 = vadd.f32 %v1305_v13, %v5524_v40  ;;  %v5719_v58 = vadd.f32 %v1306_v38, %v5527_v22  ;;  %v8503_v13 = vld [vmem:[#allocation111_spill] sm:$0xff] }
 0x12d   : > { %v5722_v55 = vadd.f32 %v1307_v5, %v5530_v27  ;;  %v5725_v4 = vadd.f32 %v1308_v62, %v5533_v24  ;;  %v5728_v8 = vadd.f32 %v1309_v46, %v5536_v26  ;;  %v5731_v61 = vadd.f32 %v1310_v19, %v5539_v28  ;;  %v8507_v62 = vld [vmem:[#allocation113_spill] sm:$0xff]  ;;  %v8509_v19 = vld [vmem:[#allocation114_spill] sm:$0xff] }
 0x12e   : > { %v5734_v3 = vadd.f32 %v1311_v54, %v5542_v30  ;;  %v5737_v40 = vadd.f32 %v1312_v56, %v5545_v32  ;;  %v5740_v22 = vadd.f32 %v1313_v6, %v5548_v34  ;;  %v5743_v27 = vadd.f32 %v1314_v45, %v5551_v36  ;;  %v8493_v34 = vld [vmem:[#allocation106_spill] sm:$0xff]  ;;  %v8495_v36 = vld [vmem:[#allocation107_spill] sm:$0xff]  ;;  %v8513_v45 = vld [vmem:[#allocation116_spill] sm:$0xff] }
 0x12f   : > { %v5746_v24 = vadd.f32 %v1315_v37, %v5554_v1  ;;  %v5749_v26 = vadd.f32 %v1316_v49, %v5557_v59  ;;  %v5752_v28 = vadd.f32 %v1317_v12, %v5560_v39  ;;  %v5755_v30 = vadd.f32 %v1318_v57, %v5563_v44  ;;  %v8497_v1 = vld [vmem:[#allocation108_spill] sm:$0xff]  ;;  %v8499_v59 = vld [vmem:[#allocation109_spill] sm:$0xff]  ;;  %v8501_v39 = vld [vmem:[#allocation110_spill] sm:$0xff]  ;;  %v1367_v44 = vpop.permute.xlu0 %1366 }
 0x130   : > { %v5758_v32 = vadd.f32 %v1319_v14, %v5566_v9  ;;  %v5761_v2 = vadd.f32 %v1320_v16, %v8493_v34  ;;  %v5764_v11 = vadd.f32 %v1321_v21, %v8495_v36  ;;  %v5767_v42 = vadd.f32 %v1322_v63, %v8497_v1  ;;  %v8505_v9 = vld [vmem:[#allocation112_spill] sm:$0xff]  ;;  %v8511_v56 = vld [vmem:[#allocation115_spill] sm:$0xff]  ;;  %v8515_v49 = vld [vmem:[#allocation117_spill] sm:$0xff] }
 0x131   : > { %v5770_v48 = vadd.f32 %v1323_v0, %v8499_v59  ;;  %v5773_v18 = vadd.f32 %v1324_v50, %v8501_v39  ;;  %v5776_v38 = vadd.f32 %v1325_v20, %v8503_v13  ;;  %v5779_v5 = vadd.f32 %v1326_v52, %v8505_v9  ;;  %v8517_v57 = vld [vmem:[#allocation118_spill] sm:$0xff]  ;;  %v8519_v16 = vld [vmem:[#allocation3_spill] sm:$0xff]  ;;  %v8522_v50 = vld [vmem:[#allocation5_spill] sm:$0xff] }
 0x132   : > { %8494 = vst [vmem:[#allocation119_spill] sm:$0xff] %v5761_v2  ;;  %8496 = vst [vmem:[#allocation74_spill] sm:$0xff] %v5764_v11  ;;  %v5782_v46 = vadd.f32 %v1327_v43, %v8507_v62  ;;  %v5785_v54 = vadd.f32 %v1328_v41, %v8509_v19  ;;  %v5788_v6 = vadd.f32 %v1329_v60, %v8511_v56  ;;  %v8520_v21 = vld [vmem:[#allocation39_spill] sm:$0xff]  ;;  %v8524_v43 = vld [vmem:[#allocation6_spill] sm:$0xff] }
 0x133   : > { %8498 = vst [vmem:[#allocation75_spill] sm:$0xff] %v5767_v42  ;;  %8500 = vst [vmem:[#allocation76_spill] sm:$0xff] %v5770_v48  ;;  %v5791_v37 = vadd.f32 %v1330_v53, %v8513_v45  ;;  %v5794_v12 = vadd.f32 %v1331_v33, %v8515_v49  ;;  %v5797_v14 = vadd.f32 %v1332_v31, %v8517_v57  ;;  %v8526_v53 = vld [vmem:[#allocation7_spill] sm:$0xff]  ;;  %v8528_v36 = vld [vmem:[#allocation8_spill] sm:$0xff] }
 0x134   : > { %8502 = vst [vmem:[#allocation77_spill] sm:$0xff] %v5773_v18  ;;  %8504 = vst [vmem:[#allocation78_spill] sm:$0xff] %v5776_v38  ;;  %v8521_v63 = vrot.slane %v8519_v16, %v8520_v21  ;;  %v8523_v20 = vrot.slane %v8522_v50, %v8520_v21  ;;  %v8525_v41 = vrot.slane %v8524_v43, %v8520_v21  ;;  %v8530_v59 = vld [vmem:[#allocation9_spill] sm:$0xff]  ;;  %v8532_v9 = vld [vmem:[#allocation10_spill] sm:$0xff] }
 0x135   : > { %8506 = vst [vmem:[#allocation79_spill] sm:$0xff] %v5779_v5  ;;  %8508 = vst [vmem:[#allocation80_spill] sm:$0xff] %v5782_v46  ;;  %v8527_v34 = vrot.slane %v8526_v53, %v8520_v21  ;;  %v8529_v31 = vrot.slane %v8528_v36, %v8520_v21  ;;  %v8531_v39 = vrot.slane %v8530_v59, %v8520_v21  ;;  %v8534_v56 = vld [vmem:[#allocation11_spill] sm:$0xff]  ;;  %v8536_v57 = vld [vmem:[#allocation12_spill] sm:$0xff] }
 0x136   : > { %8510 = vst [vmem:[#allocation81_spill] sm:$0xff] %v5785_v54  ;;  %8512 = vst [vmem:[#allocation82_spill] sm:$0xff] %v5788_v6  ;;  %v1497_v0 = vmul.f32 %v8521_v63, %v1367_v44  ;;  %v1498_v52 = vmul.f32 %v8523_v20, %v1367_v44  ;;  %v1499_v60 = vmul.f32 %v8525_v41, %v1367_v44  ;;  %v8538_v41 = vld [vmem:[#allocation13_spill] sm:$0xff]  ;;  %v8542_v36 = vld [vmem:[#allocation15_spill] sm:$0xff] }
 0x137   : > { %8514 = vst [vmem:[#allocation83_spill] sm:$0xff] %v5791_v37  ;;  %8516 = vst [vmem:[#allocation84_spill] sm:$0xff] %v5794_v12  ;;  %v1500_v33 = vmul.f32 %v8527_v34, %v1367_v44  ;;  %v1501_v1 = vmul.f32 %v8529_v31, %v1367_v44  ;;  %v1502_v13 = vmul.f32 %v8531_v39, %v1367_v44  ;;  %v8544_v53 = vld [vmem:[#allocation16_spill] sm:$0xff]  ;;  %v8546_v43 = vld [vmem:[#allocation17_spill] sm:$0xff] }
 0x138   : > { %8518 = vst [vmem:[#allocation85_spill] sm:$0xff] %v5797_v14  ;;  %v8533_v62 = vrot.slane %v8532_v9, %v8520_v21  ;;  %v8535_v45 = vrot.slane %v8534_v56, %v8520_v21  ;;  %v8537_v63 = vrot.slane %v8536_v57, %v8520_v21  ;;  %v8539_v34 = vrot.slane %v8538_v41, %v8520_v21  ;;  %v8548_v50 = vld [vmem:[#allocation18_spill] sm:$0xff]  ;;  %v8550_v16 = vld [vmem:[#allocation19_spill] sm:$0xff]  ;;  %v8552_v14 = vld [vmem:[#allocation20_spill] sm:$0xff] }
 0x139   : > { %v8541_v59 = vrot.slane %v8540_v35, %v8520_v21  ;;  %v8543_v9 = vrot.slane %v8542_v36, %v8520_v21  ;;  %v8545_v56 = vrot.slane %v8544_v53, %v8520_v21  ;;  %v8547_v57 = vrot.slane %v8546_v43, %v8520_v21  ;;  %v8554_v12 = vld [vmem:[#allocation23_spill] sm:$0xff]  ;;  %v8556_v37 = vld [vmem:[#allocation24_spill] sm:$0xff]  ;;  %v8558_v6 = vld [vmem:[#allocation25_spill] sm:$0xff] }
 0x13a   : > { %v1503_v19 = vmul.f32 %v8533_v62, %v1367_v44  ;;  %v1504_v49 = vmul.f32 %v8535_v45, %v1367_v44  ;;  %v1505_v20 = vmul.f32 %v8537_v63, %v1367_v44  ;;  %v1506_v31 = vmul.f32 %v8539_v34, %v1367_v44  ;;  %v8560_v54 = vld [vmem:[#allocation26_spill] sm:$0xff]  ;;  %v8562_v46 = vld [vmem:[#allocation27_spill] sm:$0xff]  ;;  %v8564_v5 = vld [vmem:[#allocation28_spill] sm:$0xff] }
 0x13b   : > { %v1507_v39 = vmul.f32 %v8541_v59, %v1367_v44  ;;  %v1508_v62 = vmul.f32 %v8543_v9, %v1367_v44  ;;  %v1509_v45 = vmul.f32 %v8545_v56, %v1367_v44  ;;  %v1510_v63 = vmul.f32 %v8547_v57, %v1367_v44  ;;  %v8566_v38 = vld [vmem:[#allocation29_spill] sm:$0xff]  ;;  %v8568_v18 = vld [vmem:[#allocation30_spill] sm:$0xff]  ;;  %v8570_v48 = vld [vmem:[#allocation31_spill] sm:$0xff] }
 0x13c   : > { %v8549_v41 = vrot.slane %v8548_v50, %v8520_v21  ;;  %v8551_v35 = vrot.slane %v8550_v16, %v8520_v21  ;;  %v8553_v36 = vrot.slane %v8552_v14, %v8520_v21  ;;  %v8555_v53 = vrot.slane %v8554_v12, %v8520_v21  ;;  %v8572_v42 = vld [vmem:[#allocation32_spill] sm:$0xff]  ;;  %v8576_v11 = vld [vmem:[#allocation35_spill] sm:$0xff] }
 0x13d   : > { %v8557_v43 = vrot.slane %v8556_v37, %v8520_v21  ;;  %v8559_v50 = vrot.slane %v8558_v6, %v8520_v21  ;;  %v8561_v16 = vrot.slane %v8560_v54, %v8520_v21  ;;  %v8563_v14 = vrot.slane %v8562_v46, %v8520_v21 }
 0x13e   : > { %v1511_v34 = vmul.f32 %v8549_v41, %v1367_v44  ;;  %v1512_v59 = vmul.f32 %v8551_v35, %v1367_v44  ;;  %v1513_v9 = vmul.f32 %v8553_v36, %v1367_v44  ;;  %v1514_v56 = vmul.f32 %v8555_v53, %v1367_v44 }
 0x13f   : > { %v1515_v57 = vmul.f32 %v8557_v43, %v1367_v44  ;;  %v1516_v41 = vmul.f32 %v8559_v50, %v1367_v44  ;;  %v1517_v35 = vmul.f32 %v8561_v16, %v1367_v44  ;;  %v1518_v36 = vmul.f32 %v8563_v14, %v1367_v44 }
 0x140   : > { %v8565_v12 = vrot.slane %v8564_v5, %v8520_v21  ;;  %v8567_v37 = vrot.slane %v8566_v38, %v8520_v21  ;;  %v8569_v6 = vrot.slane %v8568_v18, %v8520_v21  ;;  %v8571_v54 = vrot.slane %v8570_v48, %v8520_v21 }
 0x141   : > { %v8573_v46 = vrot.slane %v8572_v42, %v8520_v21  ;;  %v8574_v5 = vrot.slane %v8484_v15, %v8520_v21  ;;  %v8575_v38 = vrot.slane %v8486_v10, %v8520_v21  ;;  %v8577_v18 = vrot.slane %v8576_v11, %v8520_v21 }
 0x142   : > { %v1519_v53 = vmul.f32 %v8565_v12, %v1367_v44  ;;  %v1520_v43 = vmul.f32 %v8567_v37, %v1367_v44  ;;  %v1521_v50 = vmul.f32 %v8569_v6, %v1367_v44  ;;  %v1522_v16 = vmul.f32 %v8571_v54, %v1367_v44 }
 0x143   : > { %v1523_v14 = vmul.f32 %v8573_v46, %v1367_v44  ;;  %v1524_v12 = vmul.f32 %v8574_v5, %v1367_v44  ;;  %v1525_v37 = vmul.f32 %v8575_v38, %v1367_v44  ;;  %v1526_v6 = vmul.f32 %v8577_v18, %v1367_v44 }
 0x144   : > { %v8578_v48 = vrot.slane %v8490_v51, %v8520_v21  ;;  %v8579_v42 = vrot.slane %v4216_v7, %v8520_v21  ;;  %v5896_v2 = vadd.f32 %v1497_v0, %v5704_v17  ;;  %v5899_v5 = vadd.f32 %v1498_v52, %v5707_v29 }
 0x145   : > { %v5902_v38 = vadd.f32 %v1499_v60, %v5710_v25  ;;  %v5905_v11 = vadd.f32 %v1500_v33, %v5713_v47  ;;  %v5908_v18 = vadd.f32 %v1501_v1, %v5716_v23  ;;  %v5917_v17 = vadd.f32 %v1504_v49, %v5725_v4  ;;  %v8599_v1 = vld [vmem:[#allocation78_spill] sm:$0xff]  ;;  %v8603_v49 = vld [vmem:[#allocation80_spill] sm:$0xff] }
 0x146   : > { %v1527_v54 = vmul.f32 %v8578_v48, %v1367_v44  ;;  %v1528_v46 = vmul.f32 %v8579_v42, %v1367_v44  ;;  %v5911_v48 = vadd.f32 %v1502_v13, %v5719_v58  ;;  %v5914_v42 = vadd.f32 %v1503_v19, %v5722_v55 }
 0x147   : > { %v5920_v29 = vadd.f32 %v1505_v20, %v5728_v8  ;;  %v5923_v25 = vadd.f32 %v1506_v31, %v5731_v61  ;;  %v5926_v47 = vadd.f32 %v1507_v39, %v5734_v3  ;;  %v5929_v23 = vadd.f32 %v1508_v62, %v5737_v40  ;;  %v8605_v31 = vld [vmem:[#allocation81_spill] sm:$0xff]  ;;  %v8607_v62 = vld [vmem:[#allocation82_spill] sm:$0xff] }
 0x148   : > { %v5932_v58 = vadd.f32 %v1509_v45, %v5740_v22  ;;  %v5935_v55 = vadd.f32 %v1510_v63, %v5743_v27  ;;  %v5938_v4 = vadd.f32 %v1511_v34, %v5746_v24  ;;  %v5941_v8 = vadd.f32 %v1512_v59, %v5749_v26  ;;  %v8589_v22 = vld [vmem:[#allocation119_spill] sm:$0xff]  ;;  %v8591_v27 = vld [vmem:[#allocation74_spill] sm:$0xff]  ;;  %v8595_v26 = vld [vmem:[#allocation76_spill] sm:$0xff] }
 0x149   : > { %8580 = vst [vmem:[#allocation86_spill] sm:$0xff] %v5926_v47  ;;  %8581 = vst [vmem:[#allocation87_spill] sm:$0xff] %v5929_v23  ;;  %v5944_v61 = vadd.f32 %v1513_v9, %v5752_v28  ;;  %v5947_v3 = vadd.f32 %v1514_v56, %v5755_v30  ;;  %v5950_v40 = vadd.f32 %v1515_v57, %v5758_v32  ;;  %v8593_v24 = vld [vmem:[#allocation75_spill] sm:$0xff]  ;;  %v8597_v28 = vld [vmem:[#allocation77_spill] sm:$0xff]  ;;  %v1563_v30 = vpop.permute.xlu1 %1562 }
 0x14a   : > { %8582 = vst [vmem:[#allocation88_spill] sm:$0xff] %v5932_v58  ;;  %8583 = vst [vmem:[#allocation89_spill] sm:$0xff] %v5935_v55  ;;  %v5953_v44 = vadd.f32 %v1516_v41, %v8589_v22  ;;  %v5956_v0 = vadd.f32 %v1517_v35, %v8591_v27  ;;  %v5959_v52 = vadd.f32 %v1518_v36, %v8593_v24  ;;  %v8601_v32 = vld [vmem:[#allocation79_spill] sm:$0xff]  ;;  %v8611_v59 = vld [vmem:[#allocation84_spill] sm:$0xff] }
 0x14b   : > { %8584 = vst [vmem:[#allocation90_spill] sm:$0xff] %v5938_v4  ;;  %8585 = vst [vmem:[#allocation91_spill] sm:$0xff] %v5941_v8  ;;  %v5962_v60 = vadd.f32 %v1519_v53, %v8595_v26  ;;  %v5965_v33 = vadd.f32 %v1520_v43, %v8597_v28  ;;  %v5968_v13 = vadd.f32 %v1521_v50, %v8599_v1  ;;  %v8609_v63 = vld [vmem:[#allocation83_spill] sm:$0xff]  ;;  %v8613_v56 = vld [vmem:[#allocation85_spill] sm:$0xff] }
 0x14c   : > { %8586 = vst [vmem:[#allocation92_spill] sm:$0xff] %v5944_v61  ;;  %8587 = vst [vmem:[#allocation93_spill] sm:$0xff] %v5947_v3  ;;  %v5971_v19 = vadd.f32 %v1522_v16, %v8601_v32  ;;  %v5974_v20 = vadd.f32 %v1523_v14, %v8603_v49  ;;  %v5977_v39 = vadd.f32 %v1524_v12, %v8605_v31  ;;  %v8615_v41 = vld [vmem:[#allocation3_spill] sm:$0xff]  ;;  %v8616_v35 = vld [vmem:[#allocation40_spill] sm:$0xff] }
 0x14d   : > { %8588 = vst [vmem:[#allocation94_spill] sm:$0xff] %v5950_v40  ;;  %8590 = vst [vmem:[#allocation95_spill] sm:$0xff] %v5953_v44  ;;  %v5980_v45 = vadd.f32 %v1525_v37, %v8607_v62  ;;  %v5983_v34 = vadd.f32 %v1526_v6, %v8609_v63  ;;  %v5986_v9 = vadd.f32 %v1527_v54, %v8611_v59  ;;  %v8618_v43 = vld [vmem:[#allocation5_spill] sm:$0xff]  ;;  %v8620_v14 = vld [vmem:[#allocation6_spill] sm:$0xff] }
 0x14e   : > { %8592 = vst [vmem:[#allocation96_spill] sm:$0xff] %v5956_v0  ;;  %8594 = vst [vmem:[#allocation97_spill] sm:$0xff] %v5959_v52  ;;  %v5989_v57 = vadd.f32 %v1528_v46, %v8613_v56  ;;  %v8617_v36 = vrot.slane %v8615_v41, %v8616_v35  ;;  %v8619_v50 = vrot.slane %v8618_v43, %v8616_v35  ;;  %v8622_v6 = vld [vmem:[#allocation7_spill] sm:$0xff]  ;;  %v8624_v22 = vld [vmem:[#allocation8_spill] sm:$0xff] }
 0x14f   : > { %8596 = vst [vmem:[#allocation98_spill] sm:$0xff] %v5962_v60  ;;  %8598 = vst [vmem:[#allocation99_spill] sm:$0xff] %v5965_v33  ;;  %v8621_v12 = vrot.slane %v8620_v14, %v8616_v35  ;;  %v8623_v54 = vrot.slane %v8622_v6, %v8616_v35  ;;  %v8625_v27 = vrot.slane %v8624_v22, %v8616_v35  ;;  %v8626_v26 = vld [vmem:[#allocation9_spill] sm:$0xff]  ;;  %v8628_v32 = vld [vmem:[#allocation10_spill] sm:$0xff] }
 0x150   : > { %8600 = vst [vmem:[#allocation100_spill] sm:$0xff] %v5968_v13  ;;  %8602 = vst [vmem:[#allocation101_spill] sm:$0xff] %v5971_v19  ;;  %v5994_v53 = vmul.f32 %v8617_v36, %v1563_v30  ;;  %v5999_v16 = vmul.f32 %v8619_v50, %v1563_v30  ;;  %v8627_v28 = vrot.slane %v8626_v26, %v8616_v35  ;;  %v8630_v62 = vld [vmem:[#allocation11_spill] sm:$0xff]  ;;  %v8632_v56 = vld [vmem:[#allocation12_spill] sm:$0xff] }
 0x151   : > { %8604 = vst [vmem:[#allocation102_spill] sm:$0xff] %v5974_v20  ;;  %8606 = vst [vmem:[#allocation103_spill] sm:$0xff] %v5977_v39  ;;  %v6004_v37 = vmul.f32 %v8621_v12, %v1563_v30  ;;  %v6009_v46 = vmul.f32 %v8623_v54, %v1563_v30  ;;  %v6014_v24 = vmul.f32 %v8625_v27, %v1563_v30  ;;  %v8634_v12 = vld [vmem:[#allocation13_spill] sm:$0xff]  ;;  %v8649_v19 = vld [vmem:[#allocation18_spill] sm:$0xff] }
 0x152   : > { %8608 = vst [vmem:[#allocation104_spill] sm:$0xff] %v5980_v45  ;;  %8610 = vst [vmem:[#allocation105_spill] sm:$0xff] %v5983_v34  ;;  %v6019_v1 = vmul.f32 %v8627_v28, %v1563_v30  ;;  %v8629_v49 = vrot.slane %v8628_v32, %v8616_v35  ;;  %v8631_v63 = vrot.slane %v8630_v62, %v8616_v35  ;;  %v8637_v28 = vld [vmem:[#allocation14_spill] sm:$0xff]  ;;  %v8643_v34 = vld [vmem:[#allocation16_spill] sm:$0xff] }
 0x153   : > { %8612 = vst [vmem:[#allocation120_spill] sm:$0xff] %v5986_v9  ;;  %8614 = vst [vmem:[#allocation121_spill] sm:$0xff] %v5989_v57  ;;  %v8633_v36 = vrot.slane %v8632_v56, %v8616_v35  ;;  %v8635_v54 = vrot.slane %v8634_v12, %v8616_v35  ;;  %v8638_v21 = vrot.slane %v8637_v28, %v8616_v35  ;;  %v8640_v57 = vld [vmem:[#allocation15_spill] sm:$0xff]  ;;  %v8646_v39 = vld [vmem:[#allocation17_spill] sm:$0xff] }
 0x154   : > { %v6024_v31 = vmul.f32 %v8629_v49, %v1563_v30  ;;  %v6029_v59 = vmul.f32 %v8631_v63, %v1563_v30  ;;  %v8641_v9 = vrot.slane %v8640_v57, %v8616_v35  ;;  %v8644_v45 = vrot.slane %v8643_v34, %v8616_v35  ;;  %v8652_v33 = vld [vmem:[#allocation19_spill] sm:$0xff]  ;;  %v8655_v52 = vld [vmem:[#allocation20_spill] sm:$0xff]  ;;  %v8664_v8 = vld [vmem:[#allocation25_spill] sm:$0xff] }
 0x155   : > { %v6034_v50 = vmul.f32 %v8633_v36, %v1563_v30  ;;  %v6039_v27 = vmul.f32 %v8635_v54, %v1563_v30  ;;  %v6044_v49 = vmul.f32 %v8638_v21, %v1563_v30  ;;  %v8647_v20 = vrot.slane %v8646_v39, %v8616_v35  ;;  %v8658_v44 = vld [vmem:[#allocation23_spill] sm:$0xff]  ;;  %v8661_v3 = vld [vmem:[#allocation24_spill] sm:$0xff]  ;;  %v8679_v58 = vld [vmem:[#allocation30_spill] sm:$0xff] }
 0x156   : > { %v6049_v63 = vmul.f32 %v8641_v9, %v1563_v30  ;;  %v6054_v36 = vmul.f32 %v8644_v45, %v1563_v30  ;;  %v8650_v13 = vrot.slane %v8649_v19, %v8616_v35  ;;  %v8653_v60 = vrot.slane %v8652_v33, %v8616_v35  ;;  %v8685_v23 = vld [vmem:[#allocation32_spill] sm:$0xff] }
 0x157   : > { %8636 = vst [vmem:[#allocation122_spill] sm:$0xff] %v6039_v27  ;;  %8639 = vst [vmem:[#allocation123_spill] sm:$0xff] %v6044_v49  ;;  %v6059_v54 = vmul.f32 %v8647_v20, %v1563_v30  ;;  %v8656_v0 = vrot.slane %v8655_v52, %v8616_v35  ;;  %v8659_v40 = vrot.slane %v8658_v44, %v8616_v35 }
 0x158   : > { %8642 = vst [vmem:[#allocation124_spill] sm:$0xff] %v6049_v63  ;;  %8645 = vst [vmem:[#allocation125_spill] sm:$0xff] %v6054_v36  ;;  %v6064_v21 = vmul.f32 %v8650_v13, %v1563_v30  ;;  %v6069_v9 = vmul.f32 %v8653_v60, %v1563_v30  ;;  %v8662_v61 = vrot.slane %v8661_v3, %v8616_v35  ;;  %v8682_v63 = vld [vmem:[#allocation31_spill] sm:$0xff] }
 0x159   : > { %8648 = vst [vmem:[#allocation126_spill] sm:$0xff] %v6059_v54  ;;  %v6074_v45 = vmul.f32 %v8656_v0, %v1563_v30  ;;  %v6079_v20 = vmul.f32 %v8659_v40, %v1563_v30  ;;  %v8690_v49 = vrot.slane %v8486_v10, %v8616_v35 }
 0x15a   : > { %8651 = vst [vmem:[#allocation127_spill] sm:$0xff] %v6064_v21  ;;  %8654 = vst [vmem:[#allocation128_spill] sm:$0xff] %v6069_v9  ;;  %v6084_v13 = vmul.f32 %v8662_v61, %v1563_v30  ;;  %v8665_v21 = vrot.slane %v8664_v8, %v8616_v35  ;;  %v8667_v9 = vld [vmem:[#allocation26_spill] sm:$0xff] }
 0x15b   : > { %8657 = vst [vmem:[#allocation129_spill] sm:$0xff] %v6074_v45  ;;  %8660 = vst [vmem:[#allocation130_spill] sm:$0xff] %v6079_v20  ;;  %v8668_v4 = vrot.slane %v8667_v9, %v8616_v35  ;;  %v8670_v45 = vld [vmem:[#allocation27_spill] sm:$0xff]  ;;  %v8673_v20 = vld [vmem:[#allocation28_spill] sm:$0xff] }
 0x15c   : > { %8663 = vst [vmem:[#allocation131_spill] sm:$0xff] %v6084_v13  ;;  %v6089_v60 = vmul.f32 %v8665_v21, %v1563_v30  ;;  %v8671_v54 = vrot.slane %v8670_v45, %v8616_v35  ;;  %v8674_v55 = vrot.slane %v8673_v20, %v8616_v35  ;;  %v8676_v13 = vld [vmem:[#allocation29_spill] sm:$0xff] }
 0x15d   : > { %v6094_v0 = vmul.f32 %v8668_v4, %v1563_v30  ;;  %v8677_v36 = vrot.slane %v8676_v13, %v8616_v35  ;;  %v8680_v4 = vrot.slane %v8679_v58, %v8616_v35 }
 0x15e   : > { %8666 = vst [vmem:[#allocation132_spill] sm:$0xff] %v6089_v60  ;;  %v6099_v40 = vmul.f32 %v8671_v54, %v1563_v30  ;;  %v6104_v61 = vmul.f32 %v8674_v55, %v1563_v30  ;;  %v1759_v60 = vpop.permute.xlu1 %1758  ;;  %v8683_v54 = vrot.slane %v8682_v63, %v8616_v35  ;;  %v8686_v55 = vrot.slane %v8685_v23, %v8616_v35 }
 0x15f   : > { %8669 = vst [vmem:[#allocation133_spill] sm:$0xff] %v6094_v0  ;;  %v6109_v21 = vmul.f32 %v8677_v36, %v1563_v30  ;;  %v6114_v0 = vmul.f32 %v8680_v4, %v1563_v30  ;;  %v8688_v36 = vrot.slane %v8484_v15, %v8616_v35  ;;  %v6134_v4 = vmul.f32 %v8690_v49, %v1563_v30 }
 0x160   : > { %8672 = vst [vmem:[#allocation134_spill] sm:$0xff] %v6099_v40  ;;  %8675 = vst [vmem:[#allocation135_spill] sm:$0xff] %v6104_v61  ;;  %v6119_v40 = vmul.f32 %v8683_v54, %v1563_v30  ;;  %v6124_v61 = vmul.f32 %v8686_v55, %v1563_v30 }
 0x161   : > { %8678 = vst [vmem:[#allocation136_spill] sm:$0xff] %v6109_v21  ;;  %8681 = vst [vmem:[#allocation137_spill] sm:$0xff] %v6114_v0  ;;  %v6129_v21 = vmul.f32 %v8688_v36, %v1563_v30  ;;  %v8692_v0 = vld [vmem:[#allocation35_spill] sm:$0xff] }
 0x162   : > { %8684 = vst [vmem:[#allocation138_spill] sm:$0xff] %v6119_v40  ;;  %8687 = vst [vmem:[#allocation139_spill] sm:$0xff] %v6124_v61  ;;  %v8693_v47 = vrot.slane %v8692_v0, %v8616_v35  ;;  %v8695_v40 = vrot.slane %v8490_v51, %v8616_v35  ;;  %v8696_v61 = vrot.slane %v4216_v7, %v8616_v35 }
 0x163   : > { %8689 = vst [vmem:[#allocation140_spill] sm:$0xff] %v6129_v21  ;;  %8691 = vst [vmem:[#allocation141_spill] sm:$0xff] %v6134_v4  ;;  %v8697_v21 = vld [vmem:[#allocation41_spill] sm:$0xff] }
 0x164   : > { %v6139_v54 = vmul.f32 %v8693_v47, %v1563_v30  ;;  %v6144_v55 = vmul.f32 %v8695_v40, %v1563_v30  ;;  %v6149_v36 = vmul.f32 %v8696_v61, %v1563_v30  ;;  %v8698_v27 = vrot.slane %v8615_v41, %v8697_v21 }
 0x165   : > { %v8699_v4 = vrot.slane %v8618_v43, %v8697_v21  ;;  %v8701_v35 = vrot.slane %v8622_v6, %v8697_v21  ;;  %v8702_v41 = vrot.slane %v8624_v22, %v8697_v21  ;;  %v8703_v43 = vrot.slane %v8626_v26, %v8697_v21 }
 0x166   : > { %8694 = vst [vmem:[#allocation142_spill] sm:$0xff] %v6139_v54  ;;  %v6154_v49 = vmul.f32 %v8698_v27, %v1759_v60  ;;  %v8700_v54 = vrot.slane %v8620_v14, %v8697_v21  ;;  %v8704_v14 = vrot.slane %v8628_v32, %v8697_v21  ;;  %v8705_v6 = vrot.slane %v8630_v62, %v8697_v21 }
 0x167   : > { %v6159_v47 = vmul.f32 %v8699_v4, %v1759_v60  ;;  %v6169_v30 = vmul.f32 %v8701_v35, %v1759_v60  ;;  %v6174_v27 = vmul.f32 %v8702_v41, %v1759_v60  ;;  %v6179_v61 = vmul.f32 %v8703_v43, %v1759_v60 }
 0x168   : > { %v6164_v40 = vmul.f32 %v8700_v54, %v1759_v60  ;;  %v6184_v4 = vmul.f32 %v8704_v14, %v1759_v60  ;;  %v6189_v35 = vmul.f32 %v8705_v6, %v1759_v60  ;;  %v8706_v22 = vrot.slane %v8632_v56, %v8697_v21 }
 0x169   : > { %v8707_v26 = vrot.slane %v8634_v12, %v8697_v21  ;;  %v8708_v32 = vrot.slane %v8637_v28, %v8697_v21  ;;  %v8709_v62 = vrot.slane %v8640_v57, %v8697_v21  ;;  %v8710_v56 = vrot.slane %v8643_v34, %v8697_v21 }
 0x16a   : > { %v6194_v54 = vmul.f32 %v8706_v22, %v1759_v60  ;;  %v8711_v12 = vrot.slane %v8646_v39, %v8697_v21  ;;  %v8712_v28 = vrot.slane %v8649_v19, %v8697_v21  ;;  %v8713_v57 = vrot.slane %v8652_v33, %v8697_v21 }
 0x16b   : > { %v6199_v41 = vmul.f32 %v8707_v26, %v1759_v60  ;;  %v6204_v43 = vmul.f32 %v8708_v32, %v1759_v60  ;;  %v6209_v14 = vmul.f32 %v8709_v62, %v1759_v60  ;;  %v6214_v6 = vmul.f32 %v8710_v56, %v1759_v60 }
 0x16c   : > { %v6219_v22 = vmul.f32 %v8711_v12, %v1759_v60  ;;  %v6224_v26 = vmul.f32 %v8712_v28, %v1759_v60  ;;  %v6229_v32 = vmul.f32 %v8713_v57, %v1759_v60  ;;  %v8714_v34 = vrot.slane %v8655_v52, %v8697_v21 }
 0x16d   : > { %v8715_v39 = vrot.slane %v8658_v44, %v8697_v21  ;;  %v8717_v19 = vrot.slane %v8661_v3, %v8697_v21  ;;  %v8719_v33 = vrot.slane %v8664_v8, %v8697_v21  ;;  %v8721_v52 = vrot.slane %v8667_v9, %v8697_v21 }
 0x16e   : > { %v6234_v62 = vmul.f32 %v8714_v34, %v1759_v60  ;;  %v8723_v44 = vrot.slane %v8670_v45, %v8697_v21  ;;  %v8725_v3 = vrot.slane %v8673_v20, %v8697_v21  ;;  %v8727_v8 = vrot.slane %v8676_v13, %v8697_v21 }
 0x16f   : > { %v6239_v56 = vmul.f32 %v8715_v39, %v1759_v60  ;;  %v6244_v12 = vmul.f32 %v8717_v19, %v1759_v60  ;;  %v6249_v28 = vmul.f32 %v8719_v33, %v1759_v60  ;;  %v6254_v57 = vmul.f32 %v8721_v52, %v1759_v60 }
 0x170   : > { %v6259_v34 = vmul.f32 %v8723_v44, %v1759_v60  ;;  %v6264_v39 = vmul.f32 %v8725_v3, %v1759_v60  ;;  %v6269_v19 = vmul.f32 %v8727_v8, %v1759_v60  ;;  %v8729_v9 = vrot.slane %v8679_v58, %v8697_v21 }
 0x171   : > { %8716 = vst [vmem:[#allocation143_spill] sm:$0xff] %v6239_v56  ;;  %8718 = vst [vmem:[#allocation144_spill] sm:$0xff] %v6244_v12  ;;  %v8731_v45 = vrot.slane %v8682_v63, %v8697_v21  ;;  %v8733_v20 = vrot.slane %v8685_v23, %v8697_v21  ;;  %v8735_v13 = vrot.slane %v8484_v15, %v8697_v21  ;;  %v8784_v12 = vld [vmem:[#allocation105_spill] sm:$0xff]  ;;  %v8786_v56 = vld [vmem:[#allocation120_spill] sm:$0xff] }
 0x172   : > { %8720 = vst [vmem:[#allocation145_spill] sm:$0xff] %v6249_v28  ;;  %8722 = vst [vmem:[#allocation146_spill] sm:$0xff] %v6254_v57  ;;  %v6274_v33 = vmul.f32 %v8729_v9, %v1759_v60  ;;  %v8737_v58 = vrot.slane %v8486_v10, %v8697_v21  ;;  %v8739_v63 = vrot.slane %v8692_v0, %v8697_v21  ;;  %v8780_v57 = vld [vmem:[#allocation103_spill] sm:$0xff]  ;;  %v8782_v28 = vld [vmem:[#allocation104_spill] sm:$0xff] }
 0x173   : > { %8724 = vst [vmem:[#allocation147_spill] sm:$0xff] %v6259_v34  ;;  %8726 = vst [vmem:[#allocation148_spill] sm:$0xff] %v6264_v39  ;;  %v6279_v52 = vmul.f32 %v8731_v45, %v1759_v60  ;;  %v6284_v44 = vmul.f32 %v8733_v20, %v1759_v60  ;;  %v6289_v3 = vmul.f32 %v8735_v13, %v1759_v60  ;;  %v8776_v39 = vld [vmem:[#allocation101_spill] sm:$0xff]  ;;  %v8778_v34 = vld [vmem:[#allocation102_spill] sm:$0xff] }
 0x174   : > { %8728 = vst [vmem:[#allocation149_spill] sm:$0xff] %v6269_v19  ;;  %8730 = vst [vmem:[#allocation150_spill] sm:$0xff] %v6274_v33  ;;  %v6294_v8 = vmul.f32 %v8737_v58, %v1759_v60  ;;  %v6299_v9 = vmul.f32 %v8739_v63, %v1759_v60  ;;  %v8741_v23 = vrot.slane %v8490_v51, %v8697_v21  ;;  %v8750_v63 = vld [vmem:[#allocation88_spill] sm:$0xff]  ;;  %v8772_v33 = vld [vmem:[#allocation99_spill] sm:$0xff] }
 0x175   : > { %8732 = vst [vmem:[#allocation33_spill] sm:$0xff] %v6279_v52  ;;  %8734 = vst [vmem:[#allocation34_spill] sm:$0xff] %v6284_v44  ;;  %v8743_v15 = vrot.slane %v4216_v7, %v8697_v21  ;;  %v1725_v10 = vadd.f32 %v5994_v53, %v5896_v2  ;;  %v1726_v13 = vadd.f32 %v5999_v16, %v5899_v5  ;;  %v8746_v16 = vld [vmem:[#allocation86_spill] sm:$0xff]  ;;  %v8756_v21 = vld [vmem:[#allocation91_spill] sm:$0xff] }
 0x176   : > { %8736 = vst [vmem:[#allocation36_spill] sm:$0xff] %v6289_v3  ;;  %8738 = vst [vmem:[#allocation106_spill] sm:$0xff] %v6294_v8  ;;  %v6304_v45 = vmul.f32 %v8741_v23, %v1759_v60  ;;  %v1727_v0 = vadd.f32 %v6004_v37, %v5902_v38  ;;  %v1728_v58 = vadd.f32 %v6009_v46, %v5905_v11  ;;  %v8745_v38 = vld [vmem:[#allocation122_spill] sm:$0xff]  ;;  %v8747_v11 = vld [vmem:[#allocation123_spill] sm:$0xff] }
 0x177   : > { %8740 = vst [vmem:[#allocation107_spill] sm:$0xff] %v6299_v9  ;;  %v6309_v20 = vmul.f32 %v8743_v15, %v1759_v60  ;;  %v1729_v51 = vadd.f32 %v6014_v24, %v5908_v18  ;;  %v1730_v7 = vadd.f32 %v6019_v1, %v5911_v48  ;;  %v1731_v60 = vadd.f32 %v6024_v31, %v5914_v42  ;;  %v8748_v46 = vld [vmem:[#allocation87_spill] sm:$0xff]  ;;  %v8749_v18 = vld [vmem:[#allocation124_spill] sm:$0xff]  ;;  %v8751_v48 = vld [vmem:[#allocation125_spill] sm:$0xff] }
 0x178   : > { %8742 = vst [vmem:[#allocation108_spill] sm:$0xff] %v6304_v45  ;;  %v1732_v2 = vadd.f32 %v6029_v59, %v5917_v17  ;;  %v1733_v5 = vadd.f32 %v6034_v50, %v5920_v29  ;;  %v1734_v53 = vadd.f32 %v8745_v38, %v5923_v25  ;;  %v1735_v37 = vadd.f32 %v8747_v11, %v8746_v16  ;;  %v8752_v23 = vld [vmem:[#allocation89_spill] sm:$0xff]  ;;  %v8753_v42 = vld [vmem:[#allocation126_spill] sm:$0xff]  ;;  %v8755_v17 = vld [vmem:[#allocation127_spill] sm:$0xff] }
 0x179   : > { %8744 = vst [vmem:[#allocation109_spill] sm:$0xff] %v6309_v20  ;;  %v1736_v24 = vadd.f32 %v8749_v18, %v8748_v46  ;;  %v1737_v1 = vadd.f32 %v8751_v48, %v8750_v63  ;;  %v1738_v31 = vadd.f32 %v8753_v42, %v8752_v23  ;;  %v8754_v15 = vld [vmem:[#allocation90_spill] sm:$0xff]  ;;  %v8757_v29 = vld [vmem:[#allocation128_spill] sm:$0xff]  ;;  %v8759_v25 = vld [vmem:[#allocation129_spill] sm:$0xff] }
 0x17a   : > { %v1739_v59 = vadd.f32 %v8755_v17, %v8754_v15  ;;  %v1740_v50 = vadd.f32 %v8757_v29, %v8756_v21  ;;  %v8758_v20 = vld [vmem:[#allocation92_spill] sm:$0xff]  ;;  %v8760_v45 = vld [vmem:[#allocation93_spill] sm:$0xff]  ;;  %v8761_v16 = vld [vmem:[#allocation130_spill] sm:$0xff] }
 0x17b   : > { %v1741_v38 = vadd.f32 %v8759_v25, %v8758_v20  ;;  %v1742_v11 = vadd.f32 %v8761_v16, %v8760_v45  ;;  %v8762_v9 = vld [vmem:[#allocation94_spill] sm:$0xff]  ;;  %v8763_v46 = vld [vmem:[#allocation131_spill] sm:$0xff]  ;;  %v8765_v63 = vld [vmem:[#allocation132_spill] sm:$0xff] }
 0x17c   : > { %v1743_v18 = vadd.f32 %v8763_v46, %v8762_v9  ;;  %v8764_v8 = vld [vmem:[#allocation95_spill] sm:$0xff]  ;;  %v8766_v3 = vld [vmem:[#allocation96_spill] sm:$0xff]  ;;  %v8767_v23 = vld [vmem:[#allocation133_spill] sm:$0xff] }
 0x17d   : > { %v1744_v48 = vadd.f32 %v8765_v63, %v8764_v8  ;;  %v1745_v42 = vadd.f32 %v8767_v23, %v8766_v3  ;;  %v8768_v44 = vld [vmem:[#allocation97_spill] sm:$0xff]  ;;  %v8769_v15 = vld [vmem:[#allocation134_spill] sm:$0xff]  ;;  %v8771_v21 = vld [vmem:[#allocation135_spill] sm:$0xff] }
 0x17e   : > { %v1746_v17 = vadd.f32 %v8769_v15, %v8768_v44  ;;  %v8770_v52 = vld [vmem:[#allocation98_spill] sm:$0xff]  ;;  %v8773_v20 = vld [vmem:[#allocation136_spill] sm:$0xff]  ;;  %v8775_v45 = vld [vmem:[#allocation137_spill] sm:$0xff] }
 0x17f   : > { %v1747_v29 = vadd.f32 %v8771_v21, %v8770_v52  ;;  %v1748_v25 = vadd.f32 %v8773_v20, %v8772_v33  ;;  %v8774_v19 = vld [vmem:[#allocation100_spill] sm:$0xff]  ;;  %v8777_v9 = vld [vmem:[#allocation138_spill] sm:$0xff]  ;;  %v8779_v8 = vld [vmem:[#allocation139_spill] sm:$0xff]  ;;  %v1755_v33 = vadd.f32 %v6144_v55, %v8786_v56  ;;  %v6391_v55 = vadd.f32 %v6179_v61, %v1730_v7 }
 0x180   : > { %v1749_v16 = vadd.f32 %v8775_v45, %v8774_v19  ;;  %v1750_v46 = vadd.f32 %v8777_v9, %v8776_v39  ;;  %v1751_v63 = vadd.f32 %v8779_v8, %v8778_v34  ;;  %v8781_v3 = vld [vmem:[#allocation140_spill] sm:$0xff]  ;;  %v8783_v44 = vld [vmem:[#allocation141_spill] sm:$0xff]  ;;  %v8785_v52 = vld [vmem:[#allocation142_spill] sm:$0xff]  ;;  %v6376_v39 = vadd.f32 %v6154_v49, %v1725_v10 }
 0x181   : > { %v1752_v23 = vadd.f32 %v8781_v3, %v8780_v57  ;;  %v1753_v15 = vadd.f32 %v8783_v44, %v8782_v28  ;;  %v1754_v21 = vadd.f32 %v8785_v52, %v8784_v12  ;;  %v8787_v20 = vld [vmem:[#allocation121_spill] sm:$0xff]  ;;  %v6379_v34 = vadd.f32 %v6159_v47, %v1726_v13  ;;  %v8821_v3 = vld [vmem:[#allocation44_spill] sm:$0xff] }
 0x182   : > { %v1756_v19 = vadd.f32 %v6149_v36, %v8787_v20  ;;  %v6382_v57 = vadd.f32 %v6164_v40, %v1727_v0  ;;  %v6385_v28 = vadd.f32 %v6169_v30, %v1728_v58  ;;  %v6388_v12 = vadd.f32 %v6174_v27, %v1729_v51  ;;  %v8792_v0 = vld [vmem:[#allocation146_spill] sm:$0xff]  ;;  %v8817_v45 = vld [vmem:[#allocation21_spill] sm:$0xff] }
 0x183   : > { %v6394_v36 = vadd.f32 %v6184_v4, %v1731_v60  ;;  %v6397_v49 = vadd.f32 %v6189_v35, %v1732_v2  ;;  %v6400_v47 = vadd.f32 %v6194_v54, %v1733_v5  ;;  %v6403_v40 = vadd.f32 %v6199_v41, %v1734_v53  ;;  %v8800_v2 = vld [vmem:[#allocation150_spill] sm:$0xff]  ;;  %v8802_v53 = vld [vmem:[#allocation33_spill] sm:$0xff] }
 0x184   : > { %v6406_v30 = vadd.f32 %v6204_v43, %v1735_v37  ;;  %v6409_v27 = vadd.f32 %v6209_v14, %v1736_v24  ;;  %v6412_v61 = vadd.f32 %v6214_v6, %v1737_v1  ;;  %v6415_v4 = vadd.f32 %v6219_v22, %v1738_v31  ;;  %v8788_v43 = vld [vmem:[#allocation143_spill] sm:$0xff]  ;;  %v8789_v14 = vld [vmem:[#allocation144_spill] sm:$0xff]  ;;  %v8790_v6 = vld [vmem:[#allocation145_spill] sm:$0xff]  ;;  %v1955_v22 = vpop.permute.xlu0 %1954 }
 0x185   : > { %v6418_v35 = vadd.f32 %v6224_v26, %v1739_v59  ;;  %v6421_v54 = vadd.f32 %v6229_v32, %v1740_v50  ;;  %v6424_v41 = vadd.f32 %v6234_v62, %v1741_v38  ;;  %v6427_v56 = vadd.f32 %v8788_v43, %v1742_v11  ;;  %v8794_v26 = vld [vmem:[#allocation147_spill] sm:$0xff]  ;;  %v8796_v32 = vld [vmem:[#allocation148_spill] sm:$0xff]  ;;  %v8798_v62 = vld [vmem:[#allocation149_spill] sm:$0xff] }
 0x186   : > { %v6430_v10 = vadd.f32 %v8789_v14, %v1743_v18  ;;  %v6433_v13 = vadd.f32 %v8790_v6, %v1744_v48  ;;  %v6436_v58 = vadd.f32 %v8792_v0, %v1745_v42  ;;  %v6439_v51 = vadd.f32 %v8794_v26, %v1746_v17  ;;  %v8804_v24 = vld [vmem:[#allocation34_spill] sm:$0xff]  ;;  %v8806_v31 = vld [vmem:[#allocation36_spill] sm:$0xff]  ;;  %v8810_v11 = vld [vmem:[#allocation107_spill] sm:$0xff] }
 0x187   : > { %v6442_v7 = vadd.f32 %v8796_v32, %v1747_v29  ;;  %v6445_v60 = vadd.f32 %v8798_v62, %v1748_v25  ;;  %v6448_v5 = vadd.f32 %v8800_v2, %v1749_v16  ;;  %v6451_v37 = vadd.f32 %v8802_v53, %v1750_v46  ;;  %v8808_v50 = vld [vmem:[#allocation106_spill] sm:$0xff]  ;;  %v8812_v48 = vld [vmem:[#allocation108_spill] sm:$0xff]  ;;  %v8814_v17 = vld [vmem:[#allocation109_spill] sm:$0xff] }
 0x188   : > { %8791 = vst [vmem:[#allocation110_spill] sm:$0xff] %v6433_v13  ;;  %8793 = vst [vmem:[#allocation111_spill] sm:$0xff] %v6436_v58  ;;  %v6454_v1 = vadd.f32 %v8804_v24, %v1751_v63  ;;  %v6457_v59 = vadd.f32 %v8806_v31, %v1752_v23  ;;  %v6460_v38 = vadd.f32 %v8808_v50, %v1753_v15  ;;  %v8816_v25 = vld [vmem:[#allocation42_spill] sm:$0xff]  ;;  %v8819_v46 = vld [vmem:[#allocation43_spill] sm:$0xff] }
 0x189   : > { %8795 = vst [vmem:[#allocation112_spill] sm:$0xff] %v6439_v51  ;;  %8797 = vst [vmem:[#allocation113_spill] sm:$0xff] %v6442_v7  ;;  %v6463_v18 = vadd.f32 %v8810_v11, %v1754_v21  ;;  %v6466_v42 = vadd.f32 %v8812_v48, %v1755_v33  ;;  %v6469_v29 = vadd.f32 %v8814_v17, %v1756_v19  ;;  %v8823_v15 = vld [vmem:[#allocation45_spill] sm:$0xff]  ;;  %v8825_v33 = vld [vmem:[#allocation46_spill] sm:$0xff] }
 0x18a   : > { %8799 = vst [vmem:[#allocation114_spill] sm:$0xff] %v6445_v60  ;;  %8801 = vst [vmem:[#allocation115_spill] sm:$0xff] %v6448_v5  ;;  %v8818_v16 = vrot.slane %v8816_v25, %v8817_v45  ;;  %v8820_v8 = vrot.slane %v8819_v46, %v8817_v45  ;;  %v8822_v23 = vrot.slane %v8821_v3, %v8817_v45  ;;  %v8827_v43 = vld [vmem:[#allocation47_spill] sm:$0xff]  ;;  %v8829_v0 = vld [vmem:[#allocation48_spill] sm:$0xff] }
 0x18b   : > { %8803 = vst [vmem:[#allocation116_spill] sm:$0xff] %v6451_v37  ;;  %8805 = vst [vmem:[#allocation117_spill] sm:$0xff] %v6454_v1  ;;  %v8824_v52 = vrot.slane %v8823_v15, %v8817_v45  ;;  %v8826_v20 = vrot.slane %v8825_v33, %v8817_v45  ;;  %v8828_v14 = vrot.slane %v8827_v43, %v8817_v45  ;;  %v8831_v62 = vld [vmem:[#allocation49_spill] sm:$0xff]  ;;  %v8833_v24 = vld [vmem:[#allocation50_spill] sm:$0xff] }
 0x18c   : > { %8807 = vst [vmem:[#allocation118_spill] sm:$0xff] %v6457_v59  ;;  %8809 = vst [vmem:[#allocation119_spill] sm:$0xff] %v6460_v38  ;;  %v2085_v9 = vmul.f32 %v8818_v16, %v1955_v22  ;;  %v2086_v63 = vmul.f32 %v8820_v8, %v1955_v22  ;;  %v2087_v44 = vmul.f32 %v8822_v23, %v1955_v22  ;;  %v8835_v11 = vld [vmem:[#allocation51_spill] sm:$0xff]  ;;  %v8837_v25 = vld [vmem:[#allocation52_spill] sm:$0xff] }
 0x18d   : > { %8811 = vst [vmem:[#allocation74_spill] sm:$0xff] %v6463_v18  ;;  %8813 = vst [vmem:[#allocation75_spill] sm:$0xff] %v6466_v42  ;;  %v2088_v21 = vmul.f32 %v8824_v52, %v1955_v22  ;;  %v2089_v19 = vmul.f32 %v8826_v20, %v1955_v22  ;;  %v2090_v6 = vmul.f32 %v8828_v14, %v1955_v22  ;;  %v8839_v8 = vld [vmem:[#allocation53_spill] sm:$0xff]  ;;  %v8841_v15 = vld [vmem:[#allocation54_spill] sm:$0xff] }
 0x18e   : > { %8815 = vst [vmem:[#allocation76_spill] sm:$0xff] %v6469_v29  ;;  %v8830_v26 = vrot.slane %v8829_v0, %v8817_v45  ;;  %v8832_v2 = vrot.slane %v8831_v62, %v8817_v45  ;;  %v8834_v31 = vrot.slane %v8833_v24, %v8817_v45  ;;  %v8836_v48 = vrot.slane %v8835_v11, %v8817_v45  ;;  %v8843_v20 = vld [vmem:[#allocation55_spill] sm:$0xff]  ;;  %v8845_v0 = vld [vmem:[#allocation56_spill] sm:$0xff]  ;;  %v8849_v11 = vld [vmem:[#allocation58_spill] sm:$0xff] }
 0x18f   : > { %v8838_v16 = vrot.slane %v8837_v25, %v8817_v45  ;;  %v8840_v3 = vrot.slane %v8839_v8, %v8817_v45  ;;  %v8842_v52 = vrot.slane %v8841_v15, %v8817_v45  ;;  %v8844_v43 = vrot.slane %v8843_v20, %v8817_v45  ;;  %v8853_v15 = vld [vmem:[#allocation60_spill] sm:$0xff]  ;;  %v8857_v29 = vld [vmem:[#allocation62_spill] sm:$0xff]  ;;  %v8859_v42 = vld [vmem:[#allocation63_spill] sm:$0xff] }
 0x190   : > { %v2091_v32 = vmul.f32 %v8830_v26, %v1955_v22  ;;  %v2092_v53 = vmul.f32 %v8832_v2, %v1955_v22  ;;  %v2093_v50 = vmul.f32 %v8834_v31, %v1955_v22  ;;  %v2094_v17 = vmul.f32 %v8836_v48, %v1955_v22  ;;  %v8847_v2 = vld [vmem:[#allocation57_spill] sm:$0xff]  ;;  %v8861_v18 = vld [vmem:[#allocation64_spill] sm:$0xff]  ;;  %v8865_v59 = vld [vmem:[#allocation66_spill] sm:$0xff] }
 0x191   : > { %v2095_v46 = vmul.f32 %v8838_v16, %v1955_v22  ;;  %v2096_v23 = vmul.f32 %v8840_v3, %v1955_v22  ;;  %v2097_v33 = vmul.f32 %v8842_v52, %v1955_v22  ;;  %v2098_v14 = vmul.f32 %v8844_v43, %v1955_v22  ;;  %v8851_v16 = vld [vmem:[#allocation59_spill] sm:$0xff]  ;;  %v8855_v43 = vld [vmem:[#allocation61_spill] sm:$0xff]  ;;  %v8869_v37 = vld [vmem:[#allocation68_spill] sm:$0xff] }
 0x192   : > { %v8846_v26 = vrot.slane %v8845_v0, %v8817_v45  ;;  %v8848_v24 = vrot.slane %v8847_v2, %v8817_v45  ;;  %v8850_v48 = vrot.slane %v8849_v11, %v8817_v45  ;;  %v8852_v8 = vrot.slane %v8851_v16, %v8817_v45  ;;  %v8863_v38 = vld [vmem:[#allocation65_spill] sm:$0xff]  ;;  %v8867_v1 = vld [vmem:[#allocation67_spill] sm:$0xff]  ;;  %v8873_v60 = vld [vmem:[#allocation70_spill] sm:$0xff] }
 0x193   : > { %v8854_v52 = vrot.slane %v8853_v15, %v8817_v45  ;;  %v8856_v0 = vrot.slane %v8855_v43, %v8817_v45  ;;  %v8858_v2 = vrot.slane %v8857_v29, %v8817_v45  ;;  %v8860_v11 = vrot.slane %v8859_v42, %v8817_v45  ;;  %v8871_v5 = vld [vmem:[#allocation69_spill] sm:$0xff]  ;;  %v8875_v7 = vld [vmem:[#allocation71_spill] sm:$0xff]  ;;  %v8877_v51 = vld [vmem:[#allocation72_spill] sm:$0xff] }
 0x194   : > { %v2099_v62 = vmul.f32 %v8846_v26, %v1955_v22  ;;  %v2100_v31 = vmul.f32 %v8848_v24, %v1955_v22  ;;  %v2101_v25 = vmul.f32 %v8850_v48, %v1955_v22  ;;  %v2102_v3 = vmul.f32 %v8852_v8, %v1955_v22  ;;  %v8879_v58 = vld [vmem:[#allocation73_spill] sm:$0xff] }
 0x195   : > { %v2103_v20 = vmul.f32 %v8854_v52, %v1955_v22  ;;  %v2104_v26 = vmul.f32 %v8856_v0, %v1955_v22  ;;  %v2105_v24 = vmul.f32 %v8858_v2, %v1955_v22  ;;  %v2106_v48 = vmul.f32 %v8860_v11, %v1955_v22 }
 0x196   : > { %v8862_v16 = vrot.slane %v8861_v18, %v8817_v45  ;;  %v8864_v15 = vrot.slane %v8863_v38, %v8817_v45  ;;  %v8866_v43 = vrot.slane %v8865_v59, %v8817_v45  ;;  %v8868_v29 = vrot.slane %v8867_v1, %v8817_v45 }
 0x197   : > { %v8870_v42 = vrot.slane %v8869_v37, %v8817_v45  ;;  %v8872_v18 = vrot.slane %v8871_v5, %v8817_v45  ;;  %v8874_v38 = vrot.slane %v8873_v60, %v8817_v45  ;;  %v8876_v59 = vrot.slane %v8875_v7, %v8817_v45 }
 0x198   : > { %v2107_v8 = vmul.f32 %v8862_v16, %v1955_v22  ;;  %v2108_v52 = vmul.f32 %v8864_v15, %v1955_v22  ;;  %v2109_v0 = vmul.f32 %v8866_v43, %v1955_v22  ;;  %v2110_v2 = vmul.f32 %v8868_v29, %v1955_v22 }
 0x199   : > { %v2111_v11 = vmul.f32 %v8870_v42, %v1955_v22  ;;  %v2112_v16 = vmul.f32 %v8872_v18, %v1955_v22  ;;  %v2113_v15 = vmul.f32 %v8874_v38, %v1955_v22  ;;  %v2114_v43 = vmul.f32 %v8876_v59, %v1955_v22  ;;  %v6689_v38 = vld [vmem:[%s4076_s6 + $0x128] sm:$0xff]  ;;  %v6694_v59 = vld [vmem:[%s4076_s6 + $0x130] sm:$0xff] }
 0x19a   : > { %v8878_v1 = vrot.slane %v8877_v51, %v8817_v45  ;;  %v8880_v37 = vrot.slane %v8879_v58, %v8817_v45  ;;  %v6568_v13 = vadd.f32 %v2085_v9, %v6376_v39  ;;  %v6571_v5 = vadd.f32 %v2086_v63, %v6379_v34  ;;  %v8892_v58 = vld [vmem:[#allocation111_spill] sm:$0xff]  ;;  %v8894_v45 = vld [vmem:[#allocation112_spill] sm:$0xff]  ;;  %v8898_v63 = vld [vmem:[#allocation114_spill] sm:$0xff]  ;;  %8922 = vst [vmem:[#allocation24_spill] sm:$0xff] %v6689_v38 }
 0x19b   : > { %v6574_v60 = vadd.f32 %v2087_v44, %v6382_v57  ;;  %v6577_v7 = vadd.f32 %v2088_v21, %v6385_v28  ;;  %v6580_v18 = vadd.f32 %v2089_v19, %v6388_v12  ;;  %v6583_v51 = vadd.f32 %v2090_v6, %v6391_v55  ;;  %v8902_v21 = vld [vmem:[#allocation116_spill] sm:$0xff]  ;;  %v8904_v6 = vld [vmem:[#allocation117_spill] sm:$0xff]  ;;  %8923 = vst [vmem:[#allocation25_spill] sm:$0xff] %v6694_v59 }
 0x19c   : > { %v2115_v29 = vmul.f32 %v8878_v1, %v1955_v22  ;;  %v2116_v42 = vmul.f32 %v8880_v37, %v1955_v22  ;;  %v6586_v22 = vadd.f32 %v2091_v32, %v6394_v36  ;;  %v6589_v39 = vadd.f32 %v2092_v53, %v6397_v49  ;;  %v8906_v53 = vld [vmem:[#allocation118_spill] sm:$0xff]  ;;  %v6704_v37 = vld [vmem:[%s4076_s6 + $0x140] sm:$0xff] }
 0x19d   : > { %v6592_v34 = vadd.f32 %v2093_v50, %v6400_v47  ;;  %v6595_v57 = vadd.f32 %v2094_v17, %v6403_v40  ;;  %v6598_v28 = vadd.f32 %v2095_v46, %v6406_v30  ;;  %v6601_v12 = vadd.f32 %v2096_v23, %v6409_v27  ;;  %v8908_v17 = vld [vmem:[#allocation119_spill] sm:$0xff]  ;;  %v8910_v23 = vld [vmem:[#allocation74_spill] sm:$0xff]  ;;  %8925 = vst [vmem:[#allocation27_spill] sm:$0xff] %v6704_v37 }
 0x19e   : > { %v6604_v55 = vadd.f32 %v2097_v33, %v6412_v61  ;;  %v6607_v36 = vadd.f32 %v2098_v14, %v6415_v4  ;;  %v6610_v49 = vadd.f32 %v2099_v62, %v6418_v35  ;;  %v6613_v47 = vadd.f32 %v2100_v31, %v6421_v54  ;;  %v8890_v61 = vld [vmem:[#allocation110_spill] sm:$0xff]  ;;  %v8912_v14 = vld [vmem:[#allocation75_spill] sm:$0xff]  ;;  %v8914_v31 = vld [vmem:[#allocation76_spill] sm:$0xff] }
 0x19f   : > { %8881 = vst [vmem:[#allocation77_spill] sm:$0xff] %v6598_v28  ;;  %8882 = vst [vmem:[#allocation78_spill] sm:$0xff] %v6601_v12  ;;  %v6616_v40 = vadd.f32 %v2101_v25, %v6424_v41  ;;  %v6619_v30 = vadd.f32 %v2102_v3, %v6427_v56  ;;  %v6622_v27 = vadd.f32 %v2103_v20, %v6430_v10  ;;  %v8896_v41 = vld [vmem:[#allocation113_spill] sm:$0xff]  ;;  %v8900_v10 = vld [vmem:[#allocation115_spill] sm:$0xff] }
 0x1a0   : > { %8883 = vst [vmem:[#allocation79_spill] sm:$0xff] %v6604_v55  ;;  %8884 = vst [vmem:[#allocation80_spill] sm:$0xff] %v6607_v36  ;;  %v6625_v4 = vadd.f32 %v2104_v26, %v8890_v61  ;;  %v6628_v35 = vadd.f32 %v2105_v24, %v8892_v58  ;;  %v6631_v54 = vadd.f32 %v2106_v48, %v8894_v45  ;;  %v6664_v3 = vld [vmem:[%s4076_s6 + $0x100] sm:$0xff]  ;;  %v8917_v20 = vld [vmem:[#allocation37_spill] sm:$0xff] }
 0x1a1   : > { %8885 = vst [vmem:[#allocation81_spill] sm:$0xff] %v6610_v49  ;;  %8886 = vst [vmem:[#allocation82_spill] sm:$0xff] %v6613_v47  ;;  %v6634_v9 = vadd.f32 %v2107_v8, %v8896_v41  ;;  %v6637_v56 = vadd.f32 %v2108_v52, %v8898_v63  ;;  %v6640_v44 = vadd.f32 %v2109_v0, %v8900_v10  ;;  %v6669_v24 = vld [vmem:[%s4076_s6 + $0x108] sm:$0xff]  ;;  %v6674_v8 = vld [vmem:[%s4076_s6 + $0x110] sm:$0xff] }
 0x1a2   : > { %8887 = vst [vmem:[#allocation83_spill] sm:$0xff] %v6616_v40  ;;  %8888 = vst [vmem:[#allocation84_spill] sm:$0xff] %v6619_v30  ;;  %v6643_v19 = vadd.f32 %v2110_v2, %v8902_v21  ;;  %v6646_v32 = vadd.f32 %v2111_v11, %v8904_v6  ;;  %v6649_v50 = vadd.f32 %v2112_v16, %v8906_v53  ;;  %v6679_v0 = vld [vmem:[%s4076_s6 + $0x118] sm:$0xff]  ;;  %v6684_v11 = vld [vmem:[%s4076_s6 + $0x120] sm:$0xff] }
 0x1a3   : > { %8889 = vst [vmem:[#allocation85_spill] sm:$0xff] %v6622_v27  ;;  %8891 = vst [vmem:[#allocation3_spill] sm:$0xff] %v6625_v4  ;;  %v6652_v46 = vadd.f32 %v2113_v15, %v8908_v17  ;;  %v6655_v33 = vadd.f32 %v2114_v43, %v8910_v23  ;;  %v6658_v62 = vadd.f32 %v2115_v29, %v8912_v14  ;;  %v6699_v1 = vld [vmem:[%s4076_s6 + $0x138] sm:$0xff]  ;;  %v6709_v61 = vld [vmem:[%s4076_s6 + $0x148] sm:$0xff] }
 0x1a4   : > { %8893 = vst [vmem:[#allocation5_spill] sm:$0xff] %v6628_v35  ;;  %8895 = vst [vmem:[#allocation6_spill] sm:$0xff] %v6631_v54  ;;  %v6661_v25 = vadd.f32 %v2116_v42, %v8914_v31  ;;  %v2164_v52 = vrot.slane %v6674_v8, %v8917_v20  ;;  %v2168_v2 = vrot.slane %v6679_v0, %v8917_v20  ;;  %v6714_v45 = vld [vmem:[%s4076_s6 + $0x150] sm:$0xff]  ;;  %v6719_v63 = vld [vmem:[%s4076_s6 + $0x158] sm:$0xff] }
 0x1a5   : > { %8897 = vst [vmem:[#allocation7_spill] sm:$0xff] %v6634_v9  ;;  %8899 = vst [vmem:[#allocation8_spill] sm:$0xff] %v6637_v56  ;;  %v2172_v16 = vrot.slane %v6684_v11, %v8917_v20  ;;  %v2176_v15 = vrot.slane %v6689_v38, %v8917_v20  ;;  %v2180_v43 = vrot.slane %v6694_v59, %v8917_v20  ;;  %v6724_v21 = vld [vmem:[%s4076_s6 + $0x160] sm:$0xff]  ;;  %v6729_v53 = vld [vmem:[%s4076_s6 + $0x168] sm:$0xff] }
 0x1a6   : > { %8901 = vst [vmem:[#allocation9_spill] sm:$0xff] %v6640_v44  ;;  %8903 = vst [vmem:[#allocation10_spill] sm:$0xff] %v6643_v19  ;;  %v2184_v29 = vrot.slane %v6699_v1, %v8917_v20  ;;  %v2188_v42 = vrot.slane %v6704_v37, %v8917_v20  ;;  %v2192_v58 = vrot.slane %v6709_v61, %v8917_v20  ;;  %v6734_v23 = vld [vmem:[%s4076_s6 + $0x170] sm:$0xff]  ;;  %v6739_v31 = vld [vmem:[%s4076_s6 + $0x178] sm:$0xff] }
 0x1a7   : > { %8905 = vst [vmem:[#allocation11_spill] sm:$0xff] %v6646_v32  ;;  %8907 = vst [vmem:[#allocation12_spill] sm:$0xff] %v6649_v50  ;;  %v2196_v41 = vrot.slane %v6714_v45, %v8917_v20  ;;  %v2200_v10 = vrot.slane %v6719_v63, %v8917_v20  ;;  %v2204_v6 = vrot.slane %v6724_v21, %v8917_v20  ;;  %v6744_v26 = vld [vmem:[%s4076_s6 + $0x180] sm:$0xff]  ;;  %v6774_v59 = vld [vmem:[%s4076_s6 + $0x1b0] sm:$0xff] }
 0x1a8   : > { %8909 = vst [vmem:[#allocation13_spill] sm:$0xff] %v6652_v46  ;;  %8911 = vst [vmem:[#allocation14_spill] sm:$0xff] %v6655_v33  ;;  %v2208_v17 = vrot.slane %v6729_v53, %v8917_v20  ;;  %v2212_v14 = vrot.slane %v6734_v23, %v8917_v20  ;;  %v2216_v48 = vrot.slane %v6739_v31, %v8917_v20  ;;  %v6764_v37 = vld [vmem:[%s4076_s6 + $0x1a0] sm:$0xff]  ;;  %v6779_v38 = vld [vmem:[%s4076_s6 + $0x1b8] sm:$0xff] }
 0x1a9   : > { %8913 = vst [vmem:[#allocation15_spill] sm:$0xff] %v6658_v62  ;;  %8915 = vst [vmem:[#allocation16_spill] sm:$0xff] %v6661_v25  ;;  %v6794_v25 = vld [vmem:[%s4076_s6 + $0x1d0] sm:$0xff]  ;;  %v6799_v62 = vld [vmem:[%s4076_s6 + $0x1d8] sm:$0xff]  ;;  %v8949_v19 = vrot.slane %v6664_v3, %v8917_v20 }
 0x1aa   : > { %8916 = vst [vmem:[#allocation17_spill] sm:$0xff] %v6664_v3  ;;  %8918 = vst [vmem:[#allocation18_spill] sm:$0xff] %v6669_v24  ;;  %v6804_v33 = vld [vmem:[%s4076_s6 + $0x1e0] sm:$0xff]  ;;  %v6809_v46 = vld [vmem:[%s4076_s6 + $0x1e8] sm:$0xff] }
 0x1ab   : > { %8919 = vst [vmem:[#allocation19_spill] sm:$0xff] %v6674_v8  ;;  %8920 = vst [vmem:[#allocation20_spill] sm:$0xff] %v6679_v0  ;;  %v6784_v0 = vld [vmem:[%s4076_s6 + $0x1c0] sm:$0xff]  ;;  %v6789_v8 = vld [vmem:[%s4076_s6 + $0x1c8] sm:$0xff] }
 0x1ac   : > { %8921 = vst [vmem:[#allocation23_spill] sm:$0xff] %v6684_v11  ;;  %8924 = vst [vmem:[#allocation26_spill] sm:$0xff] %v6699_v1  ;;  %v6769_v1 = vld [vmem:[%s4076_s6 + $0x1a8] sm:$0xff]  ;;  %v2248_v11 = vrot.slane %v6779_v38, %v8917_v20  ;;  %v6814_v50 = vld [vmem:[%s4076_s6 + $0x1f0] sm:$0xff] }
 0x1ad   : > { %8926 = vst [vmem:[#allocation28_spill] sm:$0xff] %v6709_v61  ;;  %8927 = vst [vmem:[#allocation29_spill] sm:$0xff] %v6714_v45  ;;  %v6819_v32 = vld [vmem:[%s4076_s6 + $0x1f8] sm:$0xff] }
 0x1ae   : > { %8928 = vst [vmem:[#allocation30_spill] sm:$0xff] %v6719_v63  ;;  %8929 = vst [vmem:[#allocation31_spill] sm:$0xff] %v6724_v21  ;;  %v2220_v21 = vrot.slane %v6744_v26, %v8917_v20 }
 0x1af   : > { %8930 = vst [vmem:[#allocation32_spill] sm:$0xff] %v6729_v53  ;;  %8931 = vst [vmem:[#allocation35_spill] sm:$0xff] %v6734_v23  ;;  %v6749_v53 = vld [vmem:[%s4076_s6 + $0x188] sm:$0xff]  ;;  %v6754_v23 = vld [vmem:[%s4076_s6 + $0x190] sm:$0xff] }
 0x1b0   : > { %8932 = vst [vmem:[#allocation122_spill] sm:$0xff] %v6739_v31  ;;  %8933 = vst [vmem:[#allocation86_spill] sm:$0xff] %v6744_v26  ;;  %v2224_v63 = vrot.slane %v6749_v53, %v8917_v20  ;;  %v2228_v45 = vrot.slane %v6754_v23, %v8917_v20  ;;  %v6759_v31 = vld [vmem:[%s4076_s6 + $0x198] sm:$0xff]  ;;  %v2151_v26 = vpop.permute.xlu1 %2150 }
 0x1b1   : > { %8934 = vst [vmem:[#allocation123_spill] sm:$0xff] %v6749_v53  ;;  %8935 = vst [vmem:[#allocation87_spill] sm:$0xff] %v6754_v23  ;;  %v2232_v61 = vrot.slane %v6759_v31, %v8917_v20  ;;  %v2236_v53 = vrot.slane %v6764_v37, %v8917_v20  ;;  %v2240_v23 = vrot.slane %v6769_v1, %v8917_v20 }
 0x1b2   : > { %8936 = vst [vmem:[#allocation124_spill] sm:$0xff] %v6759_v31  ;;  %8937 = vst [vmem:[#allocation88_spill] sm:$0xff] %v6764_v37  ;;  %v2244_v31 = vrot.slane %v6774_v59, %v8917_v20  ;;  %v2252_v37 = vrot.slane %v6784_v0, %v8917_v20  ;;  %v2281_v44 = vmul.f32 %v8949_v19, %v2151_v26 }
 0x1b3   : > { %8938 = vst [vmem:[#allocation125_spill] sm:$0xff] %v6769_v1  ;;  %8939 = vst [vmem:[#allocation89_spill] sm:$0xff] %v6774_v59  ;;  %v2256_v1 = vrot.slane %v6789_v8, %v8917_v20  ;;  %v2260_v59 = vrot.slane %v6794_v25, %v8917_v20  ;;  %v2283_v9 = vmul.f32 %v2164_v52, %v2151_v26 }
 0x1b4   : > { %8940 = vst [vmem:[#allocation126_spill] sm:$0xff] %v6779_v38  ;;  %8941 = vst [vmem:[#allocation90_spill] sm:$0xff] %v6784_v0  ;;  %v2264_v38 = vrot.slane %v6799_v62, %v8917_v20  ;;  %v2268_v0 = vrot.slane %v6804_v33, %v8917_v20  ;;  %v2285_v54 = vmul.f32 %v2172_v16, %v2151_v26 }
 0x1b5   : > { %8942 = vst [vmem:[#allocation127_spill] sm:$0xff] %v6789_v8  ;;  %8943 = vst [vmem:[#allocation91_spill] sm:$0xff] %v6794_v25  ;;  %v2272_v8 = vrot.slane %v6809_v46, %v8917_v20  ;;  %v2276_v25 = vrot.slane %v6814_v50, %v8917_v20  ;;  %v2286_v35 = vmul.f32 %v2176_v15, %v2151_v26 }
 0x1b6   : > { %8944 = vst [vmem:[#allocation128_spill] sm:$0xff] %v6799_v62  ;;  %8945 = vst [vmem:[#allocation92_spill] sm:$0xff] %v6804_v33  ;;  %v2280_v62 = vrot.slane %v6819_v32, %v8917_v20  ;;  %v8950_v33 = vrot.slane %v6669_v24, %v8917_v20  ;;  %v2287_v4 = vmul.f32 %v2180_v43, %v2151_v26 }
 0x1b7   : > { %8946 = vst [vmem:[#allocation129_spill] sm:$0xff] %v6809_v46  ;;  %8947 = vst [vmem:[#allocation93_spill] sm:$0xff] %v6814_v50  ;;  %v2284_v46 = vmul.f32 %v2168_v2, %v2151_v26  ;;  %v2288_v27 = vmul.f32 %v2184_v29, %v2151_v26  ;;  %v2289_v50 = vmul.f32 %v2188_v42, %v2151_v26 }
 0x1b8   : > { %8948 = vst [vmem:[#allocation130_spill] sm:$0xff] %v6819_v32  ;;  %v2282_v56 = vmul.f32 %v8950_v33, %v2151_v26  ;;  %v2290_v30 = vmul.f32 %v2192_v58, %v2151_v26  ;;  %v2291_v40 = vmul.f32 %v2196_v41, %v2151_v26  ;;  %v2292_v47 = vmul.f32 %v2200_v10, %v2151_v26 }
 0x1b9   : > { %v2293_v49 = vmul.f32 %v2204_v6, %v2151_v26  ;;  %v2294_v32 = vmul.f32 %v2208_v17, %v2151_v26  ;;  %v2295_v36 = vmul.f32 %v2212_v14, %v2151_v26  ;;  %v2296_v55 = vmul.f32 %v2216_v48, %v2151_v26  ;;  %v8987_v17 = vld [vmem:[#allocation13_spill] sm:$0xff]  ;;  %v8989_v14 = vld [vmem:[#allocation14_spill] sm:$0xff] }
 0x1ba   : > { %v2297_v3 = vmul.f32 %v2220_v21, %v2151_v26  ;;  %v2298_v19 = vmul.f32 %v2224_v63, %v2151_v26  ;;  %v2299_v12 = vmul.f32 %v2228_v45, %v2151_v26  ;;  %v2300_v28 = vmul.f32 %v2232_v61, %v2151_v26  ;;  %v8985_v21 = vld [vmem:[#allocation12_spill] sm:$0xff] }
 0x1bb   : > { %v2301_v20 = vmul.f32 %v2236_v53, %v2151_v26  ;;  %v2302_v33 = vmul.f32 %v2240_v23, %v2151_v26  ;;  %v2303_v52 = vmul.f32 %v2244_v31, %v2151_v26  ;;  %v2304_v2 = vmul.f32 %v2248_v11, %v2151_v26 }
 0x1bc   : > { %v2305_v16 = vmul.f32 %v2252_v37, %v2151_v26  ;;  %v2306_v15 = vmul.f32 %v2256_v1, %v2151_v26  ;;  %v2307_v43 = vmul.f32 %v2260_v59, %v2151_v26  ;;  %v2308_v29 = vmul.f32 %v2264_v38, %v2151_v26  ;;  %v8979_v59 = vld [vmem:[#allocation9_spill] sm:$0xff] }
 0x1bd   : > { %v2309_v42 = vmul.f32 %v2268_v0, %v2151_v26  ;;  %v2310_v58 = vmul.f32 %v2272_v8, %v2151_v26  ;;  %v2311_v41 = vmul.f32 %v2276_v25, %v2151_v26  ;;  %v2312_v10 = vmul.f32 %v2280_v62, %v2151_v26 }
 0x1be   : > { %v6830_v6 = vadd.f32 %v2281_v44, %v6568_v13  ;;  %v6833_v48 = vadd.f32 %v2282_v56, %v6571_v5  ;;  %v6836_v61 = vadd.f32 %v2283_v9, %v6574_v60  ;;  %v6839_v45 = vadd.f32 %v2284_v46, %v6577_v7  ;;  %v8951_v7 = vld [vmem:[#allocation77_spill] sm:$0xff] }
 0x1bf   : > { %v6842_v11 = vadd.f32 %v2285_v54, %v6580_v18  ;;  %v6845_v0 = vadd.f32 %v2286_v35, %v6583_v51  ;;  %v6848_v62 = vadd.f32 %v2287_v4, %v6586_v22  ;;  %v6851_v13 = vadd.f32 %v2288_v27, %v6589_v39  ;;  %v8953_v18 = vld [vmem:[#allocation78_spill] sm:$0xff]  ;;  %v8955_v51 = vld [vmem:[#allocation79_spill] sm:$0xff]  ;;  %v8957_v22 = vld [vmem:[#allocation80_spill] sm:$0xff] }
 0x1c0   : > { %v6854_v5 = vadd.f32 %v2289_v50, %v6592_v34  ;;  %v6857_v60 = vadd.f32 %v2290_v30, %v6595_v57  ;;  %v6860_v9 = vadd.f32 %v2291_v40, %v8951_v7  ;;  %v6863_v54 = vadd.f32 %v2292_v47, %v8953_v18  ;;  %v8959_v39 = vld [vmem:[#allocation81_spill] sm:$0xff]  ;;  %v8961_v34 = vld [vmem:[#allocation82_spill] sm:$0xff]  ;;  %v8963_v57 = vld [vmem:[#allocation83_spill] sm:$0xff] }
 0x1c1   : > { %v6866_v35 = vadd.f32 %v2293_v49, %v8955_v51  ;;  %v6869_v4 = vadd.f32 %v2294_v32, %v8957_v22  ;;  %v6872_v27 = vadd.f32 %v2295_v36, %v8959_v39  ;;  %v6875_v56 = vadd.f32 %v2296_v55, %v8961_v34  ;;  %v8965_v40 = vld [vmem:[#allocation84_spill] sm:$0xff]  ;;  %v8967_v47 = vld [vmem:[#allocation85_spill] sm:$0xff]  ;;  %v8969_v49 = vld [vmem:[#allocation3_spill] sm:$0xff] }
 0x1c2   : > { %8952 = vst [vmem:[#allocation94_spill] sm:$0xff] %v6860_v9  ;;  %8954 = vst [vmem:[#allocation131_spill] sm:$0xff] %v6863_v54  ;;  %v6878_v30 = vadd.f32 %v2297_v3, %v8963_v57  ;;  %v6881_v44 = vadd.f32 %v2298_v19, %v8965_v40  ;;  %v6884_v50 = vadd.f32 %v2299_v12, %v8967_v47  ;;  %v8971_v32 = vld [vmem:[#allocation5_spill] sm:$0xff]  ;;  %v8973_v36 = vld [vmem:[#allocation6_spill] sm:$0xff] }
 0x1c3   : > { %8956 = vst [vmem:[#allocation95_spill] sm:$0xff] %v6866_v35  ;;  %8958 = vst [vmem:[#allocation132_spill] sm:$0xff] %v6869_v4  ;;  %v6887_v46 = vadd.f32 %v2300_v28, %v8969_v49  ;;  %v6890_v25 = vadd.f32 %v2301_v20, %v8971_v32  ;;  %v6893_v26 = vadd.f32 %v2302_v33, %v8973_v36  ;;  %v8975_v55 = vld [vmem:[#allocation7_spill] sm:$0xff]  ;;  %v8977_v3 = vld [vmem:[#allocation8_spill] sm:$0xff] }
 0x1c4   : > { %8960 = vst [vmem:[#allocation96_spill] sm:$0xff] %v6872_v27  ;;  %8962 = vst [vmem:[#allocation133_spill] sm:$0xff] %v6875_v56  ;;  %v6896_v8 = vadd.f32 %v2303_v52, %v8975_v55  ;;  %v6899_v38 = vadd.f32 %v2304_v2, %v8977_v3  ;;  %v6902_v1 = vadd.f32 %v2305_v16, %v8979_v59  ;;  %v8981_v12 = vld [vmem:[#allocation10_spill] sm:$0xff]  ;;  %v8983_v28 = vld [vmem:[#allocation11_spill] sm:$0xff] }
 0x1c5   : > { %8964 = vst [vmem:[#allocation97_spill] sm:$0xff] %v6878_v30  ;;  %8966 = vst [vmem:[#allocation134_spill] sm:$0xff] %v6881_v44  ;;  %v6905_v37 = vadd.f32 %v2306_v15, %v8981_v12  ;;  %v6908_v63 = vadd.f32 %v2307_v43, %v8983_v28  ;;  %v6911_v53 = vadd.f32 %v2308_v29, %v8985_v21  ;;  %v8991_v19 = vld [vmem:[#allocation15_spill] sm:$0xff]  ;;  %v8993_v33 = vld [vmem:[#allocation16_spill] sm:$0xff] }
 0x1c6   : > { %8968 = vst [vmem:[#allocation98_spill] sm:$0xff] %v6884_v50  ;;  %8970 = vst [vmem:[#allocation135_spill] sm:$0xff] %v6887_v46  ;;  %v6914_v23 = vadd.f32 %v2309_v42, %v8987_v17  ;;  %v6917_v31 = vadd.f32 %v2310_v58, %v8989_v14  ;;  %v6920_v20 = vadd.f32 %v2311_v41, %v8991_v19  ;;  %v8995_v2 = vld [vmem:[#allocation4_spill] sm:$0xff]  ;;  %v8996_v16 = vld [vmem:[#allocation17_spill] sm:$0xff] }
 0x1c7   : > { %8972 = vst [vmem:[#allocation99_spill] sm:$0xff] %v6890_v25  ;;  %8974 = vst [vmem:[#allocation136_spill] sm:$0xff] %v6893_v26  ;;  %v6923_v52 = vadd.f32 %v2312_v10, %v8993_v33  ;;  %v2352_v15 = vrot.slane %v8996_v16, %v8995_v2  ;;  %v2356_v43 = vrot.slane %v6669_v24, %v8995_v2  ;;  %v8997_v29 = vld [vmem:[#allocation19_spill] sm:$0xff]  ;;  %v8998_v42 = vld [vmem:[#allocation20_spill] sm:$0xff] }
 0x1c8   : > { %8976 = vst [vmem:[#allocation100_spill] sm:$0xff] %v6896_v8  ;;  %8978 = vst [vmem:[#allocation137_spill] sm:$0xff] %v6899_v38  ;;  %v2360_v7 = vrot.slane %v8997_v29, %v8995_v2  ;;  %v2364_v18 = vrot.slane %v8998_v42, %v8995_v2  ;;  %v8999_v58 = vld [vmem:[#allocation23_spill] sm:$0xff]  ;;  %v9000_v41 = vld [vmem:[#allocation24_spill] sm:$0xff]  ;;  %v2347_v42 = vpop.permute.xlu1 %2346 }
 0x1c9   : > { %8980 = vst [vmem:[#allocation101_spill] sm:$0xff] %v6902_v1  ;;  %8982 = vst [vmem:[#allocation138_spill] sm:$0xff] %v6905_v37  ;;  %v2368_v51 = vrot.slane %v8999_v58, %v8995_v2  ;;  %v2372_v22 = vrot.slane %v9000_v41, %v8995_v2  ;;  %v9001_v10 = vld [vmem:[#allocation25_spill] sm:$0xff]  ;;  %v9002_v34 = vld [vmem:[#allocation26_spill] sm:$0xff]  ;;  %v2477_v8 = vmul.f32 %v2352_v15, %v2347_v42 }
 0x1ca   : > { %8984 = vst [vmem:[#allocation102_spill] sm:$0xff] %v6908_v63  ;;  %8986 = vst [vmem:[#allocation139_spill] sm:$0xff] %v6911_v53  ;;  %v2376_v39 = vrot.slane %v9001_v10, %v8995_v2  ;;  %v2380_v57 = vrot.slane %v9002_v34, %v8995_v2  ;;  %v9003_v40 = vld [vmem:[#allocation27_spill] sm:$0xff]  ;;  %v9004_v49 = vld [vmem:[#allocation28_spill] sm:$0xff]  ;;  %v2479_v26 = vmul.f32 %v2360_v7, %v2347_v42 }
 0x1cb   : > { %8988 = vst [vmem:[#allocation103_spill] sm:$0xff] %v6914_v23  ;;  %8990 = vst [vmem:[#allocation140_spill] sm:$0xff] %v6917_v31  ;;  %v2384_v47 = vrot.slane %v9003_v40, %v8995_v2  ;;  %v2388_v32 = vrot.slane %v9004_v49, %v8995_v2  ;;  %v9005_v36 = vld [vmem:[#allocation29_spill] sm:$0xff]  ;;  %v9006_v3 = vld [vmem:[#allocation30_spill] sm:$0xff]  ;;  %v2480_v25 = vmul.f32 %v2364_v18, %v2347_v42 }
 0x1cc   : > { %8992 = vst [vmem:[#allocation104_spill] sm:$0xff] %v6920_v20  ;;  %8994 = vst [vmem:[#allocation141_spill] sm:$0xff] %v6923_v52  ;;  %v2392_v55 = vrot.slane %v9005_v36, %v8995_v2  ;;  %v2396_v59 = vrot.slane %v9006_v3, %v8995_v2  ;;  %v9007_v12 = vld [vmem:[#allocation31_spill] sm:$0xff]  ;;  %v9008_v21 = vld [vmem:[#allocation32_spill] sm:$0xff]  ;;  %v2482_v46 = vmul.f32 %v2372_v22, %v2347_v42 }
 0x1cd   : > { %v2400_v28 = vrot.slane %v9007_v12, %v8995_v2  ;;  %v2404_v17 = vrot.slane %v9008_v21, %v8995_v2  ;;  %v9009_v14 = vld [vmem:[#allocation35_spill] sm:$0xff]  ;;  %v9010_v33 = vld [vmem:[#allocation122_spill] sm:$0xff]  ;;  %v9014_v12 = vld [vmem:[#allocation124_spill] sm:$0xff]  ;;  %v2483_v50 = vmul.f32 %v2376_v39, %v2347_v42  ;;  %v2485_v44 = vmul.f32 %v2384_v47, %v2347_v42 }
 0x1ce   : > { %v2408_v19 = vrot.slane %v9009_v14, %v8995_v2  ;;  %v2412_v40 = vrot.slane %v9010_v33, %v8995_v2  ;;  %v9011_v49 = vld [vmem:[#allocation86_spill] sm:$0xff]  ;;  %v9012_v36 = vld [vmem:[#allocation123_spill] sm:$0xff]  ;;  %v2428_v58 = vrot.slane %v9014_v12, %v8995_v2  ;;  %v9015_v21 = vld [vmem:[#allocation88_spill] sm:$0xff]  ;;  %v2486_v30 = vmul.f32 %v2388_v32, %v2347_v42 }
 0x1cf   : > { %v2416_v34 = vrot.slane %v9011_v49, %v8995_v2  ;;  %v2420_v10 = vrot.slane %v9012_v36, %v8995_v2  ;;  %v9013_v3 = vld [vmem:[#allocation87_spill] sm:$0xff]  ;;  %v2432_v29 = vrot.slane %v9015_v21, %v8995_v2  ;;  %v9016_v14 = vld [vmem:[#allocation125_spill] sm:$0xff]  ;;  %v9018_v49 = vld [vmem:[#allocation126_spill] sm:$0xff]  ;;  %v2488_v56 = vmul.f32 %v2396_v59, %v2347_v42 }
 0x1d0   : > { %v2424_v41 = vrot.slane %v9013_v3, %v8995_v2  ;;  %v2436_v24 = vrot.slane %v9016_v14, %v8995_v2  ;;  %v9017_v33 = vld [vmem:[#allocation89_spill] sm:$0xff]  ;;  %v2444_v52 = vrot.slane %v9018_v49, %v8995_v2  ;;  %v9019_v36 = vld [vmem:[#allocation90_spill] sm:$0xff]  ;;  %v9020_v3 = vld [vmem:[#allocation127_spill] sm:$0xff]  ;;  %v2489_v27 = vmul.f32 %v2400_v28, %v2347_v42 }
 0x1d1   : > { %v2440_v16 = vrot.slane %v9017_v33, %v8995_v2  ;;  %v2448_v20 = vrot.slane %v9019_v36, %v8995_v2  ;;  %v2452_v31 = vrot.slane %v9020_v3, %v8995_v2  ;;  %v9021_v12 = vld [vmem:[#allocation91_spill] sm:$0xff]  ;;  %v9022_v21 = vld [vmem:[#allocation128_spill] sm:$0xff]  ;;  %v9024_v33 = vld [vmem:[#allocation129_spill] sm:$0xff]  ;;  %v2478_v3 = vmul.f32 %v2356_v43, %v2347_v42 }
 0x1d2   : > { %v2456_v23 = vrot.slane %v9021_v12, %v8995_v2  ;;  %v2460_v53 = vrot.slane %v9022_v21, %v8995_v2  ;;  %v9023_v14 = vld [vmem:[#allocation92_spill] sm:$0xff]  ;;  %v2468_v37 = vrot.slane %v9024_v33, %v8995_v2  ;;  %v9025_v49 = vld [vmem:[#allocation93_spill] sm:$0xff]  ;;  %v9026_v36 = vld [vmem:[#allocation130_spill] sm:$0xff]  ;;  %v2481_v12 = vmul.f32 %v2368_v51, %v2347_v42 }
 0x1d3   : > { %v2464_v63 = vrot.slane %v9023_v14, %v8995_v2  ;;  %v2472_v1 = vrot.slane %v9025_v49, %v8995_v2  ;;  %v2476_v38 = vrot.slane %v9026_v36, %v8995_v2  ;;  %v2484_v21 = vmul.f32 %v2380_v57, %v2347_v42 }
 0x1d4   : > { %v2487_v14 = vmul.f32 %v2392_v55, %v2347_v42  ;;  %v2490_v33 = vmul.f32 %v2404_v17, %v2347_v42  ;;  %v2491_v4 = vmul.f32 %v2408_v19, %v2347_v42  ;;  %v2492_v35 = vmul.f32 %v2412_v40, %v2347_v42  ;;  %v9063_v17 = vld [vmem:[#allocation103_spill] sm:$0xff]  ;;  %v9065_v19 = vld [vmem:[#allocation140_spill] sm:$0xff] }
 0x1d5   : > { %v2493_v49 = vmul.f32 %v2416_v34, %v2347_v42  ;;  %v2494_v54 = vmul.f32 %v2420_v10, %v2347_v42  ;;  %v2495_v9 = vmul.f32 %v2424_v41, %v2347_v42  ;;  %v2496_v2 = vmul.f32 %v2428_v58, %v2347_v42 }
 0x1d6   : > { %v2497_v15 = vmul.f32 %v2432_v29, %v2347_v42  ;;  %v2498_v43 = vmul.f32 %v2436_v24, %v2347_v42  ;;  %v2499_v7 = vmul.f32 %v2440_v16, %v2347_v42  ;;  %v2500_v18 = vmul.f32 %v2444_v52, %v2347_v42 }
 0x1d7   : > { %v2501_v51 = vmul.f32 %v2448_v20, %v2347_v42  ;;  %v2502_v22 = vmul.f32 %v2452_v31, %v2347_v42  ;;  %v2503_v39 = vmul.f32 %v2456_v23, %v2347_v42  ;;  %v2504_v57 = vmul.f32 %v2460_v53, %v2347_v42  ;;  %v9047_v20 = vld [vmem:[#allocation99_spill] sm:$0xff] }
 0x1d8   : > { %v2505_v47 = vmul.f32 %v2464_v63, %v2347_v42  ;;  %v2506_v32 = vmul.f32 %v2468_v37, %v2347_v42  ;;  %v2507_v55 = vmul.f32 %v2472_v1, %v2347_v42  ;;  %v2508_v59 = vmul.f32 %v2476_v38, %v2347_v42  ;;  %v9041_v1 = vld [vmem:[#allocation134_spill] sm:$0xff]  ;;  %v9053_v42 = vld [vmem:[#allocation137_spill] sm:$0xff] }
 0x1d9   : > { %v6990_v28 = vadd.f32 %v2477_v8, %v6830_v6  ;;  %v6993_v34 = vadd.f32 %v2478_v3, %v6833_v48  ;;  %v6996_v58 = vadd.f32 %v2479_v26, %v6836_v61  ;;  %v6999_v24 = vadd.f32 %v2480_v25, %v6839_v45  ;;  %v9027_v45 = vld [vmem:[#allocation94_spill] sm:$0xff] }
 0x1da   : > { %v7002_v31 = vadd.f32 %v2481_v12, %v6842_v11  ;;  %v7005_v63 = vadd.f32 %v2482_v46, %v6845_v0  ;;  %v7008_v38 = vadd.f32 %v2483_v50, %v6848_v62  ;;  %v7011_v6 = vadd.f32 %v2484_v21, %v6851_v13  ;;  %v9029_v11 = vld [vmem:[#allocation131_spill] sm:$0xff]  ;;  %v9033_v62 = vld [vmem:[#allocation132_spill] sm:$0xff] }
 0x1db   : > { %v7014_v48 = vadd.f32 %v2485_v44, %v6854_v5  ;;  %v7017_v61 = vadd.f32 %v2486_v30, %v6857_v60  ;;  %v7020_v25 = vadd.f32 %v2487_v14, %v9027_v45  ;;  %v7023_v26 = vadd.f32 %v2488_v56, %v9029_v11  ;;  %v9031_v0 = vld [vmem:[#allocation95_spill] sm:$0xff]  ;;  %v9035_v13 = vld [vmem:[#allocation96_spill] sm:$0xff]  ;;  %v9037_v5 = vld [vmem:[#allocation133_spill] sm:$0xff] }
 0x1dc   : > { %v7026_v46 = vadd.f32 %v2489_v27, %v9031_v0  ;;  %v7029_v50 = vadd.f32 %v2490_v33, %v9033_v62  ;;  %v7032_v8 = vadd.f32 %v2491_v4, %v9035_v13  ;;  %v7035_v44 = vadd.f32 %v2492_v35, %v9037_v5  ;;  %v9039_v60 = vld [vmem:[#allocation97_spill] sm:$0xff]  ;;  %v9043_v56 = vld [vmem:[#allocation98_spill] sm:$0xff]  ;;  %v9045_v27 = vld [vmem:[#allocation135_spill] sm:$0xff] }
 0x1dd   : > { %9028 = vst [vmem:[#allocation105_spill] sm:$0xff] %v7020_v25  ;;  %9030 = vst [vmem:[#allocation142_spill] sm:$0xff] %v7023_v26  ;;  %v7038_v30 = vadd.f32 %v2493_v49, %v9039_v60  ;;  %v7041_v37 = vadd.f32 %v2494_v54, %v9041_v1  ;;  %v7044_v53 = vadd.f32 %v2495_v9, %v9043_v56  ;;  %v9049_v4 = vld [vmem:[#allocation136_spill] sm:$0xff]  ;;  %v9055_v54 = vld [vmem:[#allocation101_spill] sm:$0xff] }
 0x1de   : > { %9032 = vst [vmem:[#allocation120_spill] sm:$0xff] %v7026_v46  ;;  %9034 = vst [vmem:[#allocation121_spill] sm:$0xff] %v7029_v50  ;;  %v7047_v23 = vadd.f32 %v2496_v2, %v9045_v27  ;;  %v7050_v52 = vadd.f32 %v2497_v15, %v9047_v20  ;;  %v7053_v16 = vadd.f32 %v2498_v43, %v9049_v4  ;;  %v9051_v35 = vld [vmem:[#allocation100_spill] sm:$0xff]  ;;  %v9057_v9 = vld [vmem:[#allocation138_spill] sm:$0xff] }
 0x1df   : > { %9036 = vst [vmem:[#allocation143_spill] sm:$0xff] %v7032_v8  ;;  %9038 = vst [vmem:[#allocation144_spill] sm:$0xff] %v7035_v44  ;;  %v7056_v29 = vadd.f32 %v2499_v7, %v9051_v35  ;;  %v7059_v41 = vadd.f32 %v2500_v18, %v9053_v42  ;;  %v7062_v10 = vadd.f32 %v2501_v51, %v9055_v54  ;;  %v9059_v49 = vld [vmem:[#allocation102_spill] sm:$0xff]  ;;  %v9061_v12 = vld [vmem:[#allocation139_spill] sm:$0xff] }
 0x1e0   : > { %9040 = vst [vmem:[#allocation145_spill] sm:$0xff] %v7038_v30  ;;  %9042 = vst [vmem:[#allocation146_spill] sm:$0xff] %v7041_v37  ;;  %v7065_v40 = vadd.f32 %v2502_v22, %v9057_v9  ;;  %v7068_v3 = vadd.f32 %v2503_v39, %v9059_v49  ;;  %v7071_v21 = vadd.f32 %v2504_v57, %v9061_v12  ;;  %v9067_v2 = vld [vmem:[#allocation104_spill] sm:$0xff]  ;;  %v9069_v43 = vld [vmem:[#allocation141_spill] sm:$0xff] }
 0x1e1   : > { %9044 = vst [vmem:[#allocation147_spill] sm:$0xff] %v7044_v53  ;;  %9046 = vst [vmem:[#allocation148_spill] sm:$0xff] %v7047_v23  ;;  %v7074_v14 = vadd.f32 %v2505_v47, %v9063_v17  ;;  %v7077_v33 = vadd.f32 %v2506_v32, %v9065_v19  ;;  %v7080_v15 = vadd.f32 %v2507_v55, %v9067_v2  ;;  %v9071_v18 = vld [vmem:[#allocation22_spill] sm:$0xff]  ;;  %v9072_v51 = vld [vmem:[#allocation17_spill] sm:$0xff] }
 0x1e2   : > { %9048 = vst [vmem:[#allocation149_spill] sm:$0xff] %v7050_v52  ;;  %9050 = vst [vmem:[#allocation150_spill] sm:$0xff] %v7053_v16  ;;  %v7083_v7 = vadd.f32 %v2508_v59, %v9069_v43  ;;  %v2548_v22 = vrot.slane %v9072_v51, %v9071_v18  ;;  %v9073_v39 = vld [vmem:[#allocation18_spill] sm:$0xff]  ;;  %v9074_v57 = vld [vmem:[#allocation19_spill] sm:$0xff] }
 0x1e3   : > { %9052 = vst [vmem:[#allocation33_spill] sm:$0xff] %v7056_v29  ;;  %9054 = vst [vmem:[#allocation34_spill] sm:$0xff] %v7059_v41  ;;  %v2552_v45 = vrot.slane %v9073_v39, %v9071_v18  ;;  %v2556_v11 = vrot.slane %v9074_v57, %v9071_v18  ;;  %v9075_v47 = vld [vmem:[#allocation20_spill] sm:$0xff]  ;;  %v9076_v32 = vld [vmem:[#allocation23_spill] sm:$0xff]  ;;  %v2543_v57 = vpop.permute.xlu0 %2542 }
 0x1e4   : > { %9056 = vst [vmem:[#allocation36_spill] sm:$0xff] %v7062_v10  ;;  %9058 = vst [vmem:[#allocation106_spill] sm:$0xff] %v7065_v40  ;;  %v2560_v0 = vrot.slane %v9075_v47, %v9071_v18  ;;  %v2564_v62 = vrot.slane %v9076_v32, %v9071_v18  ;;  %v9077_v55 = vld [vmem:[#allocation24_spill] sm:$0xff]  ;;  %v9078_v59 = vld [vmem:[#allocation25_spill] sm:$0xff]  ;;  %v2673_v29 = vmul.f32 %v2548_v22, %v2543_v57 }
 0x1e5   : > { %9060 = vst [vmem:[#allocation107_spill] sm:$0xff] %v7068_v3  ;;  %9062 = vst [vmem:[#allocation108_spill] sm:$0xff] %v7071_v21  ;;  %v2568_v13 = vrot.slane %v9077_v55, %v9071_v18  ;;  %v2572_v5 = vrot.slane %v9078_v59, %v9071_v18  ;;  %v9079_v60 = vld [vmem:[#allocation26_spill] sm:$0xff]  ;;  %v9080_v56 = vld [vmem:[#allocation27_spill] sm:$0xff]  ;;  %v2675_v16 = vmul.f32 %v2556_v11, %v2543_v57 }
 0x1e6   : > { %9064 = vst [vmem:[#allocation109_spill] sm:$0xff] %v7074_v14  ;;  %9066 = vst [vmem:[#allocation42_spill] sm:$0xff] %v7077_v33  ;;  %v2576_v1 = vrot.slane %v9079_v60, %v9071_v18  ;;  %v2580_v27 = vrot.slane %v9080_v56, %v9071_v18  ;;  %v9081_v20 = vld [vmem:[#allocation28_spill] sm:$0xff]  ;;  %v9082_v35 = vld [vmem:[#allocation29_spill] sm:$0xff]  ;;  %v2676_v52 = vmul.f32 %v2560_v0, %v2543_v57 }
 0x1e7   : > { %9068 = vst [vmem:[#allocation21_spill] sm:$0xff] %v7080_v15  ;;  %9070 = vst [vmem:[#allocation43_spill] sm:$0xff] %v7083_v7  ;;  %v2584_v4 = vrot.slane %v9081_v20, %v9071_v18  ;;  %v2588_v42 = vrot.slane %v9082_v35, %v9071_v18  ;;  %v9083_v54 = vld [vmem:[#allocation30_spill] sm:$0xff]  ;;  %v9084_v49 = vld [vmem:[#allocation31_spill] sm:$0xff]  ;;  %v2678_v23 = vmul.f32 %v2568_v13, %v2543_v57 }
 0x1e8   : > { %v2592_v9 = vrot.slane %v9083_v54, %v9071_v18  ;;  %v2596_v12 = vrot.slane %v9084_v49, %v9071_v18  ;;  %v9085_v17 = vld [vmem:[#allocation32_spill] sm:$0xff]  ;;  %v9086_v2 = vld [vmem:[#allocation35_spill] sm:$0xff]  ;;  %v9087_v56 = vld [vmem:[#allocation122_spill] sm:$0xff]  ;;  %v2679_v53 = vmul.f32 %v2572_v5, %v2543_v57  ;;  %v2681_v37 = vmul.f32 %v2580_v27, %v2543_v57 }
 0x1e9   : > { %v2600_v19 = vrot.slane %v9085_v17, %v9071_v18  ;;  %v2604_v43 = vrot.slane %v9086_v2, %v9071_v18  ;;  %v2608_v60 = vrot.slane %v9087_v56, %v9071_v18  ;;  %v9088_v20 = vld [vmem:[#allocation86_spill] sm:$0xff]  ;;  %v9089_v35 = vld [vmem:[#allocation123_spill] sm:$0xff]  ;;  %v9091_v49 = vld [vmem:[#allocation124_spill] sm:$0xff]  ;;  %v2682_v30 = vmul.f32 %v2584_v4, %v2543_v57 }
 0x1ea   : > { %v2612_v59 = vrot.slane %v9088_v20, %v9071_v18  ;;  %v2616_v55 = vrot.slane %v9089_v35, %v9071_v18  ;;  %v9090_v54 = vld [vmem:[#allocation87_spill] sm:$0xff]  ;;  %v2624_v47 = vrot.slane %v9091_v49, %v9071_v18  ;;  %v9092_v17 = vld [vmem:[#allocation88_spill] sm:$0xff]  ;;  %v9093_v2 = vld [vmem:[#allocation125_spill] sm:$0xff]  ;;  %v2684_v44 = vmul.f32 %v2592_v9, %v2543_v57 }
 0x1eb   : > { %v2620_v32 = vrot.slane %v9090_v54, %v9071_v18  ;;  %v2628_v39 = vrot.slane %v9092_v17, %v9071_v18  ;;  %v2632_v51 = vrot.slane %v9093_v2, %v9071_v18  ;;  %v9094_v56 = vld [vmem:[#allocation89_spill] sm:$0xff]  ;;  %v9095_v20 = vld [vmem:[#allocation126_spill] sm:$0xff]  ;;  %v9097_v54 = vld [vmem:[#allocation127_spill] sm:$0xff]  ;;  %v2685_v8 = vmul.f32 %v2596_v12, %v2543_v57 }
 0x1ec   : > { %v2636_v7 = vrot.slane %v9094_v56, %v9071_v18  ;;  %v2640_v15 = vrot.slane %v9095_v20, %v9071_v18  ;;  %v9096_v35 = vld [vmem:[#allocation90_spill] sm:$0xff]  ;;  %v2648_v14 = vrot.slane %v9097_v54, %v9071_v18  ;;  %v9098_v49 = vld [vmem:[#allocation91_spill] sm:$0xff]  ;;  %v9099_v17 = vld [vmem:[#allocation128_spill] sm:$0xff]  ;;  %v2674_v54 = vmul.f32 %v2552_v45, %v2543_v57 }
 0x1ed   : > { %v2644_v33 = vrot.slane %v9096_v35, %v9071_v18  ;;  %v2652_v21 = vrot.slane %v9098_v49, %v9071_v18  ;;  %v2656_v3 = vrot.slane %v9099_v17, %v9071_v18  ;;  %v9100_v2 = vld [vmem:[#allocation92_spill] sm:$0xff]  ;;  %v9101_v56 = vld [vmem:[#allocation129_spill] sm:$0xff]  ;;  %v2672_v35 = vrot.slane %v9026_v36, %v9071_v18 }
 0x1ee   : > { %v2660_v40 = vrot.slane %v9100_v2, %v9071_v18  ;;  %v2664_v10 = vrot.slane %v9101_v56, %v9071_v18  ;;  %v9102_v20 = vld [vmem:[#allocation93_spill] sm:$0xff]  ;;  %v2677_v49 = vmul.f32 %v2564_v62, %v2543_v57  ;;  %v2680_v17 = vmul.f32 %v2576_v1, %v2543_v57 }
 0x1ef   : > { %v2668_v41 = vrot.slane %v9102_v20, %v9071_v18  ;;  %v2683_v2 = vmul.f32 %v2588_v42, %v2543_v57  ;;  %v2686_v56 = vmul.f32 %v2600_v19, %v2543_v57  ;;  %v2687_v50 = vmul.f32 %v2604_v43, %v2543_v57 }
 0x1f0   : > { %v2688_v46 = vmul.f32 %v2608_v60, %v2543_v57  ;;  %v2689_v20 = vmul.f32 %v2612_v59, %v2543_v57  ;;  %v2690_v26 = vmul.f32 %v2616_v55, %v2543_v57  ;;  %v2691_v25 = vmul.f32 %v2620_v32, %v2543_v57  ;;  %v9129_v32 = vld [vmem:[#allocation34_spill] sm:$0xff] }
 0x1f1   : > { %v2692_v18 = vmul.f32 %v2624_v47, %v2543_v57  ;;  %v2693_v22 = vmul.f32 %v2628_v39, %v2543_v57  ;;  %v2694_v45 = vmul.f32 %v2632_v51, %v2543_v57  ;;  %v2695_v11 = vmul.f32 %v2636_v7, %v2543_v57 }
 0x1f2   : > { %v2696_v0 = vmul.f32 %v2640_v15, %v2543_v57  ;;  %v2697_v62 = vmul.f32 %v2644_v33, %v2543_v57  ;;  %v2698_v13 = vmul.f32 %v2648_v14, %v2543_v57  ;;  %v2699_v5 = vmul.f32 %v2652_v21, %v2543_v57  ;;  %v9123_v15 = vld [vmem:[#allocation149_spill] sm:$0xff] }
 0x1f3   : > { %v2700_v1 = vmul.f32 %v2656_v3, %v2543_v57  ;;  %v2701_v27 = vmul.f32 %v2660_v40, %v2543_v57  ;;  %v2702_v4 = vmul.f32 %v2664_v10, %v2543_v57  ;;  %v2703_v42 = vmul.f32 %v2668_v41, %v2543_v57  ;;  %v9117_v10 = vld [vmem:[#allocation146_spill] sm:$0xff] }
 0x1f4   : > { %v2704_v9 = vmul.f32 %v2672_v35, %v2543_v57  ;;  %v7150_v12 = vadd.f32 %v2673_v29, %v6990_v28  ;;  %v7153_v59 = vadd.f32 %v2674_v54, %v6993_v34  ;;  %v7156_v47 = vadd.f32 %v2675_v16, %v6996_v58  ;;  %v9137_v54 = vld [vmem:[#allocation108_spill] sm:$0xff] }
 0x1f5   : > { %v7159_v7 = vadd.f32 %v2676_v52, %v6999_v24  ;;  %v7162_v14 = vadd.f32 %v2677_v49, %v7002_v31  ;;  %v7165_v40 = vadd.f32 %v2678_v23, %v7005_v63  ;;  %v7168_v41 = vadd.f32 %v2679_v53, %v7008_v38  ;;  %v9103_v24 = vld [vmem:[#allocation105_spill] sm:$0xff]  ;;  %v9105_v31 = vld [vmem:[#allocation142_spill] sm:$0xff]  ;;  %v9107_v63 = vld [vmem:[#allocation120_spill] sm:$0xff] }
 0x1f6   : > { %v7171_v28 = vadd.f32 %v2680_v17, %v7011_v6  ;;  %v7174_v34 = vadd.f32 %v2681_v37, %v7014_v48  ;;  %v7177_v58 = vadd.f32 %v2682_v30, %v7017_v61  ;;  %v7180_v52 = vadd.f32 %v2683_v2, %v9103_v24  ;;  %v9109_v38 = vld [vmem:[#allocation121_spill] sm:$0xff]  ;;  %v9111_v6 = vld [vmem:[#allocation143_spill] sm:$0xff]  ;;  %v9113_v48 = vld [vmem:[#allocation144_spill] sm:$0xff] }
 0x1f7   : > { %v7183_v16 = vadd.f32 %v2684_v44, %v9105_v31  ;;  %v7186_v23 = vadd.f32 %v2685_v8, %v9107_v63  ;;  %v7189_v53 = vadd.f32 %v2686_v56, %v9109_v38  ;;  %v7192_v29 = vadd.f32 %v2687_v50, %v9111_v6  ;;  %v9115_v61 = vld [vmem:[#allocation145_spill] sm:$0xff]  ;;  %v9119_v44 = vld [vmem:[#allocation147_spill] sm:$0xff]  ;;  %v9121_v8 = vld [vmem:[#allocation148_spill] sm:$0xff] }
 0x1f8   : > { %9104 = vst [vmem:[#allocation44_spill] sm:$0xff] %v7180_v52  ;;  %v7195_v37 = vadd.f32 %v2688_v46, %v9113_v48  ;;  %v7198_v30 = vadd.f32 %v2689_v20, %v9115_v61  ;;  %v7201_v3 = vadd.f32 %v2690_v26, %v9117_v10  ;;  %v7204_v21 = vadd.f32 %v2691_v25, %v9119_v44  ;;  %v9125_v50 = vld [vmem:[#allocation150_spill] sm:$0xff]  ;;  %v9127_v46 = vld [vmem:[#allocation33_spill] sm:$0xff]  ;;  %v9131_v26 = vld [vmem:[#allocation36_spill] sm:$0xff] }
 0x1f9   : > { %9106 = vst [vmem:[#allocation45_spill] sm:$0xff] %v7183_v16  ;;  %9108 = vst [vmem:[#allocation46_spill] sm:$0xff] %v7186_v23  ;;  %v7207_v33 = vadd.f32 %v2692_v18, %v9121_v8  ;;  %v7210_v51 = vadd.f32 %v2693_v22, %v9123_v15  ;;  %v7213_v39 = vadd.f32 %v2694_v45, %v9125_v50  ;;  %v9133_v25 = vld [vmem:[#allocation106_spill] sm:$0xff]  ;;  %v9135_v20 = vld [vmem:[#allocation107_spill] sm:$0xff] }
 0x1fa   : > { %9110 = vst [vmem:[#allocation47_spill] sm:$0xff] %v7189_v53  ;;  %9112 = vst [vmem:[#allocation48_spill] sm:$0xff] %v7192_v29  ;;  %v7216_v57 = vadd.f32 %v2695_v11, %v9127_v46  ;;  %v7219_v55 = vadd.f32 %v2696_v0, %v9129_v32  ;;  %v7222_v60 = vadd.f32 %v2697_v62, %v9131_v26  ;;  %v9139_v17 = vld [vmem:[#allocation109_spill] sm:$0xff]  ;;  %v9141_v2 = vld [vmem:[#allocation42_spill] sm:$0xff] }
 0x1fb   : > { %9114 = vst [vmem:[#allocation49_spill] sm:$0xff] %v7195_v37  ;;  %9116 = vst [vmem:[#allocation50_spill] sm:$0xff] %v7198_v30  ;;  %v7225_v56 = vadd.f32 %v2698_v13, %v9133_v25  ;;  %v7228_v35 = vadd.f32 %v2699_v5, %v9135_v20  ;;  %v7231_v49 = vadd.f32 %v2700_v1, %v9137_v54  ;;  %v9143_v18 = vld [vmem:[#allocation21_spill] sm:$0xff]  ;;  %v9145_v45 = vld [vmem:[#allocation43_spill] sm:$0xff] }
 0x1fc   : > { %9118 = vst [vmem:[#allocation51_spill] sm:$0xff] %v7201_v3  ;;  %9120 = vst [vmem:[#allocation52_spill] sm:$0xff] %v7204_v21  ;;  %v7234_v19 = vadd.f32 %v2701_v27, %v9139_v17  ;;  %v7237_v43 = vadd.f32 %v2702_v4, %v9141_v2  ;;  %v7240_v22 = vadd.f32 %v2703_v42, %v9143_v18  ;;  %v9147_v0 = vld [vmem:[#allocation38_spill] sm:$0xff]  ;;  %v9148_v62 = vld [vmem:[#allocation17_spill] sm:$0xff] }
 0x1fd   : > { %9122 = vst [vmem:[#allocation53_spill] sm:$0xff] %v7207_v33  ;;  %9124 = vst [vmem:[#allocation54_spill] sm:$0xff] %v7210_v51  ;;  %v7243_v11 = vadd.f32 %v2704_v9, %v9145_v45  ;;  %v2744_v13 = vrot.slane %v9148_v62, %v9147_v0  ;;  %v9149_v5 = vld [vmem:[#allocation18_spill] sm:$0xff]  ;;  %v9150_v1 = vld [vmem:[#allocation19_spill] sm:$0xff] }
 0x1fe   : > { %9126 = vst [vmem:[#allocation55_spill] sm:$0xff] %v7213_v39  ;;  %9128 = vst [vmem:[#allocation56_spill] sm:$0xff] %v7216_v57  ;;  %v2748_v24 = vrot.slane %v9149_v5, %v9147_v0  ;;  %v2752_v31 = vrot.slane %v9150_v1, %v9147_v0  ;;  %v9151_v27 = vld [vmem:[#allocation20_spill] sm:$0xff]  ;;  %v9152_v4 = vld [vmem:[#allocation23_spill] sm:$0xff]  ;;  %v2739_v1 = vpop.permute.xlu1 %2738 }
 0x1ff   : > { %9130 = vst [vmem:[#allocation57_spill] sm:$0xff] %v7219_v55  ;;  %9132 = vst [vmem:[#allocation58_spill] sm:$0xff] %v7222_v60  ;;  %v2756_v63 = vrot.slane %v9151_v27, %v9147_v0  ;;  %v2760_v38 = vrot.slane %v9152_v4, %v9147_v0  ;;  %v9153_v42 = vld [vmem:[#allocation24_spill] sm:$0xff]  ;;  %v9154_v9 = vld [vmem:[#allocation25_spill] sm:$0xff]  ;;  %v2869_v57 = vmul.f32 %v2744_v13, %v2739_v1 }
 0x200   : > { %9134 = vst [vmem:[#allocation59_spill] sm:$0xff] %v7225_v56  ;;  %9136 = vst [vmem:[#allocation60_spill] sm:$0xff] %v7228_v35  ;;  %v2764_v6 = vrot.slane %v9153_v42, %v9147_v0  ;;  %v2768_v48 = vrot.slane %v9154_v9, %v9147_v0  ;;  %v9155_v61 = vld [vmem:[#allocation26_spill] sm:$0xff]  ;;  %v9156_v44 = vld [vmem:[#allocation27_spill] sm:$0xff]  ;;  %v2871_v39 = vmul.f32 %v2752_v31, %v2739_v1 }
 0x201   : > { %9138 = vst [vmem:[#allocation61_spill] sm:$0xff] %v7231_v49  ;;  %9140 = vst [vmem:[#allocation62_spill] sm:$0xff] %v7234_v19  ;;  %v2772_v10 = vrot.slane %v9155_v61, %v9147_v0  ;;  %v2776_v8 = vrot.slane %v9156_v44, %v9147_v0  ;;  %v9157_v15 = vld [vmem:[#allocation28_spill] sm:$0xff]  ;;  %v9158_v46 = vld [vmem:[#allocation29_spill] sm:$0xff]  ;;  %v2872_v51 = vmul.f32 %v2756_v63, %v2739_v1 }
 0x202   : > { %9142 = vst [vmem:[#allocation63_spill] sm:$0xff] %v7237_v43  ;;  %9144 = vst [vmem:[#allocation64_spill] sm:$0xff] %v7240_v22  ;;  %v2780_v50 = vrot.slane %v9157_v15, %v9147_v0  ;;  %v2784_v32 = vrot.slane %v9158_v46, %v9147_v0  ;;  %v9159_v26 = vld [vmem:[#allocation30_spill] sm:$0xff]  ;;  %v9160_v20 = vld [vmem:[#allocation31_spill] sm:$0xff]  ;;  %v2874_v33 = vmul.f32 %v2764_v6, %v2739_v1 }
 0x203   : > { %9146 = vst [vmem:[#allocation65_spill] sm:$0xff] %v7243_v11  ;;  %v2788_v25 = vrot.slane %v9159_v26, %v9147_v0  ;;  %v2792_v54 = vrot.slane %v9160_v20, %v9147_v0  ;;  %v9161_v17 = vld [vmem:[#allocation32_spill] sm:$0xff]  ;;  %v9162_v18 = vld [vmem:[#allocation35_spill] sm:$0xff]  ;;  %v9163_v44 = vld [vmem:[#allocation122_spill] sm:$0xff]  ;;  %v2875_v21 = vmul.f32 %v2768_v48, %v2739_v1  ;;  %v2877_v3 = vmul.f32 %v2776_v8, %v2739_v1 }
 0x204   : > { %v2796_v2 = vrot.slane %v9161_v17, %v9147_v0  ;;  %v2800_v45 = vrot.slane %v9162_v18, %v9147_v0  ;;  %v2804_v61 = vrot.slane %v9163_v44, %v9147_v0  ;;  %v9164_v15 = vld [vmem:[#allocation86_spill] sm:$0xff]  ;;  %v9165_v46 = vld [vmem:[#allocation123_spill] sm:$0xff]  ;;  %v9167_v20 = vld [vmem:[#allocation124_spill] sm:$0xff]  ;;  %v2878_v30 = vmul.f32 %v2780_v50, %v2739_v1 }
 0x205   : > { %v2808_v9 = vrot.slane %v9164_v15, %v9147_v0  ;;  %v2812_v42 = vrot.slane %v9165_v46, %v9147_v0  ;;  %v9166_v26 = vld [vmem:[#allocation87_spill] sm:$0xff]  ;;  %v2820_v27 = vrot.slane %v9167_v20, %v9147_v0  ;;  %v9168_v17 = vld [vmem:[#allocation88_spill] sm:$0xff]  ;;  %v9169_v18 = vld [vmem:[#allocation125_spill] sm:$0xff]  ;;  %v2880_v37 = vmul.f32 %v2788_v25, %v2739_v1 }
 0x206   : > { %v2816_v4 = vrot.slane %v9166_v26, %v9147_v0  ;;  %v2824_v5 = vrot.slane %v9168_v17, %v9147_v0  ;;  %v2828_v62 = vrot.slane %v9169_v18, %v9147_v0  ;;  %v9170_v44 = vld [vmem:[#allocation89_spill] sm:$0xff]  ;;  %v9171_v15 = vld [vmem:[#allocation126_spill] sm:$0xff]  ;;  %v9173_v26 = vld [vmem:[#allocation127_spill] sm:$0xff]  ;;  %v2881_v29 = vmul.f32 %v2792_v54, %v2739_v1 }
 0x207   : > { %v2832_v11 = vrot.slane %v9170_v44, %v9147_v0  ;;  %v2836_v22 = vrot.slane %v9171_v15, %v9147_v0  ;;  %v9172_v46 = vld [vmem:[#allocation90_spill] sm:$0xff]  ;;  %v2844_v19 = vrot.slane %v9173_v26, %v9147_v0  ;;  %v9174_v20 = vld [vmem:[#allocation91_spill] sm:$0xff]  ;;  %v9175_v17 = vld [vmem:[#allocation128_spill] sm:$0xff]  ;;  %v2870_v26 = vmul.f32 %v2748_v24, %v2739_v1 }
 0x208   : > { %v2840_v43 = vrot.slane %v9172_v46, %v9147_v0  ;;  %v2848_v49 = vrot.slane %v9174_v20, %v9147_v0  ;;  %v2852_v35 = vrot.slane %v9175_v17, %v9147_v0  ;;  %v9176_v18 = vld [vmem:[#allocation92_spill] sm:$0xff]  ;;  %v9177_v44 = vld [vmem:[#allocation129_spill] sm:$0xff]  ;;  %v2868_v46 = vrot.slane %v9026_v36, %v9147_v0 }
 0x209   : > { %v2856_v56 = vrot.slane %v9176_v18, %v9147_v0  ;;  %v2860_v60 = vrot.slane %v9177_v44, %v9147_v0  ;;  %v9178_v15 = vld [vmem:[#allocation93_spill] sm:$0xff]  ;;  %v2873_v20 = vmul.f32 %v2760_v38, %v2739_v1  ;;  %v2876_v17 = vmul.f32 %v2772_v10, %v2739_v1 }
 0x20a   : > { %v2864_v55 = vrot.slane %v9178_v15, %v9147_v0  ;;  %v2879_v18 = vmul.f32 %v2784_v32, %v2739_v1  ;;  %v2882_v44 = vmul.f32 %v2796_v2, %v2739_v1  ;;  %v2883_v53 = vmul.f32 %v2800_v45, %v2739_v1 }
 0x20b   : > { %v2884_v23 = vmul.f32 %v2804_v61, %v2739_v1  ;;  %v2885_v15 = vmul.f32 %v2808_v9, %v2739_v1  ;;  %v2886_v16 = vmul.f32 %v2812_v42, %v2739_v1  ;;  %v2887_v52 = vmul.f32 %v2816_v4, %v2739_v1  ;;  %v9205_v4 = vld [vmem:[#allocation57_spill] sm:$0xff] }
 0x20c   : > { %v2888_v0 = vmul.f32 %v2820_v27, %v2739_v1  ;;  %v2889_v13 = vmul.f32 %v2824_v5, %v2739_v1  ;;  %v2890_v24 = vmul.f32 %v2828_v62, %v2739_v1  ;;  %v2891_v31 = vmul.f32 %v2832_v11, %v2739_v1 }
 0x20d   : > { %v2892_v63 = vmul.f32 %v2836_v22, %v2739_v1  ;;  %v2893_v38 = vmul.f32 %v2840_v43, %v2739_v1  ;;  %v2894_v6 = vmul.f32 %v2844_v19, %v2739_v1  ;;  %v2895_v48 = vmul.f32 %v2848_v49, %v2739_v1  ;;  %v9199_v22 = vld [vmem:[#allocation54_spill] sm:$0xff] }
 0x20e   : > { %v2896_v10 = vmul.f32 %v2852_v35, %v2739_v1  ;;  %v2897_v8 = vmul.f32 %v2856_v56, %v2739_v1  ;;  %v2898_v50 = vmul.f32 %v2860_v60, %v2739_v1  ;;  %v2899_v32 = vmul.f32 %v2864_v55, %v2739_v1  ;;  %v9193_v60 = vld [vmem:[#allocation51_spill] sm:$0xff] }
 0x20f   : > { %v2900_v25 = vmul.f32 %v2868_v46, %v2739_v1  ;;  %v7310_v54 = vadd.f32 %v2869_v57, %v7150_v12  ;;  %v7313_v9 = vadd.f32 %v2870_v26, %v7153_v59  ;;  %v7316_v27 = vadd.f32 %v2871_v39, %v7156_v47  ;;  %v9213_v26 = vld [vmem:[#allocation61_spill] sm:$0xff] }
 0x210   : > { %v7319_v11 = vadd.f32 %v2872_v51, %v7159_v7  ;;  %v7322_v19 = vadd.f32 %v2873_v20, %v7162_v14  ;;  %v7325_v56 = vadd.f32 %v2874_v33, %v7165_v40  ;;  %v7328_v55 = vadd.f32 %v2875_v21, %v7168_v41  ;;  %v9179_v7 = vld [vmem:[#allocation44_spill] sm:$0xff]  ;;  %v9181_v14 = vld [vmem:[#allocation45_spill] sm:$0xff]  ;;  %v9183_v40 = vld [vmem:[#allocation46_spill] sm:$0xff] }
 0x211   : > { %v7331_v12 = vadd.f32 %v2876_v17, %v7171_v28  ;;  %v7334_v59 = vadd.f32 %v2877_v3, %v7174_v34  ;;  %v7337_v47 = vadd.f32 %v2878_v30, %v7177_v58  ;;  %v7340_v51 = vadd.f32 %v2879_v18, %v9179_v7  ;;  %v9185_v41 = vld [vmem:[#allocation47_spill] sm:$0xff]  ;;  %v9187_v28 = vld [vmem:[#allocation48_spill] sm:$0xff]  ;;  %v9189_v34 = vld [vmem:[#allocation49_spill] sm:$0xff] }
 0x212   : > { %v7343_v39 = vadd.f32 %v2880_v37, %v9181_v14  ;;  %v7346_v33 = vadd.f32 %v2881_v29, %v9183_v40  ;;  %v7349_v21 = vadd.f32 %v2882_v44, %v9185_v41  ;;  %v7352_v57 = vadd.f32 %v2883_v53, %v9187_v28  ;;  %v9191_v58 = vld [vmem:[#allocation50_spill] sm:$0xff]  ;;  %v9195_v37 = vld [vmem:[#allocation52_spill] sm:$0xff]  ;;  %v9197_v29 = vld [vmem:[#allocation53_spill] sm:$0xff] }
 0x213   : > { %9180 = vst [vmem:[#allocation66_spill] sm:$0xff] %v7340_v51  ;;  %v7355_v3 = vadd.f32 %v2884_v23, %v9189_v34  ;;  %v7358_v30 = vadd.f32 %v2885_v15, %v9191_v58  ;;  %v7361_v35 = vadd.f32 %v2886_v16, %v9193_v60  ;;  %v7364_v49 = vadd.f32 %v2887_v52, %v9195_v37  ;;  %v9201_v53 = vld [vmem:[#allocation55_spill] sm:$0xff]  ;;  %v9203_v23 = vld [vmem:[#allocation56_spill] sm:$0xff]  ;;  %v9207_v16 = vld [vmem:[#allocation58_spill] sm:$0xff] }
 0x214   : > { %9182 = vst [vmem:[#allocation67_spill] sm:$0xff] %v7343_v39  ;;  %9184 = vst [vmem:[#allocation68_spill] sm:$0xff] %v7346_v33  ;;  %v7367_v43 = vadd.f32 %v2888_v0, %v9197_v29  ;;  %v7370_v62 = vadd.f32 %v2889_v13, %v9199_v22  ;;  %v7373_v5 = vadd.f32 %v2890_v24, %v9201_v53  ;;  %v9209_v52 = vld [vmem:[#allocation59_spill] sm:$0xff]  ;;  %v9211_v15 = vld [vmem:[#allocation60_spill] sm:$0xff] }
 0x215   : > { %9186 = vst [vmem:[#allocation69_spill] sm:$0xff] %v7349_v21  ;;  %9188 = vst [vmem:[#allocation70_spill] sm:$0xff] %v7352_v57  ;;  %v7376_v1 = vadd.f32 %v2891_v31, %v9203_v23  ;;  %v7379_v42 = vadd.f32 %v2892_v63, %v9205_v4  ;;  %v7382_v61 = vadd.f32 %v2893_v38, %v9207_v16  ;;  %v9215_v17 = vld [vmem:[#allocation62_spill] sm:$0xff]  ;;  %v9217_v18 = vld [vmem:[#allocation63_spill] sm:$0xff] }
 0x216   : > { %9190 = vst [vmem:[#allocation71_spill] sm:$0xff] %v7355_v3  ;;  %9192 = vst [vmem:[#allocation72_spill] sm:$0xff] %v7358_v30  ;;  %v7385_v44 = vadd.f32 %v2894_v6, %v9209_v52  ;;  %v7388_v46 = vadd.f32 %v2895_v48, %v9211_v15  ;;  %v7391_v20 = vadd.f32 %v2896_v10, %v9213_v26  ;;  %v9219_v0 = vld [vmem:[#allocation64_spill] sm:$0xff]  ;;  %v9221_v24 = vld [vmem:[#allocation65_spill] sm:$0xff] }
 0x217   : > { %9194 = vst [vmem:[#allocation73_spill] sm:$0xff] %v7361_v35  ;;  %9196 = vst [vmem:[#allocation110_spill] sm:$0xff] %v7364_v49  ;;  %v7394_v2 = vadd.f32 %v2897_v8, %v9215_v17  ;;  %v7397_v45 = vadd.f32 %v2898_v50, %v9217_v18  ;;  %v7400_v13 = vadd.f32 %v2899_v32, %v9219_v0  ;;  %v9223_v63 = vld [vmem:[#allocation39_spill] sm:$0xff]  ;;  %v9224_v38 = vld [vmem:[#allocation17_spill] sm:$0xff] }
 0x218   : > { %9198 = vst [vmem:[#allocation111_spill] sm:$0xff] %v7367_v43  ;;  %9200 = vst [vmem:[#allocation112_spill] sm:$0xff] %v7370_v62  ;;  %v7403_v31 = vadd.f32 %v2900_v25, %v9221_v24  ;;  %v2940_v6 = vrot.slane %v9224_v38, %v9223_v63  ;;  %v9225_v48 = vld [vmem:[#allocation18_spill] sm:$0xff]  ;;  %v9226_v10 = vld [vmem:[#allocation19_spill] sm:$0xff] }
 0x219   : > { %9202 = vst [vmem:[#allocation113_spill] sm:$0xff] %v7373_v5  ;;  %9204 = vst [vmem:[#allocation114_spill] sm:$0xff] %v7376_v1  ;;  %v2944_v7 = vrot.slane %v9225_v48, %v9223_v63  ;;  %v2948_v14 = vrot.slane %v9226_v10, %v9223_v63  ;;  %v9227_v8 = vld [vmem:[#allocation20_spill] sm:$0xff]  ;;  %v9228_v50 = vld [vmem:[#allocation23_spill] sm:$0xff]  ;;  %v2935_v10 = vpop.permute.xlu1 %2934 }
 0x21a   : > { %9206 = vst [vmem:[#allocation115_spill] sm:$0xff] %v7379_v42  ;;  %9208 = vst [vmem:[#allocation116_spill] sm:$0xff] %v7382_v61  ;;  %v2952_v40 = vrot.slane %v9227_v8, %v9223_v63  ;;  %v2956_v41 = vrot.slane %v9228_v50, %v9223_v63  ;;  %v9229_v32 = vld [vmem:[#allocation24_spill] sm:$0xff]  ;;  %v9230_v25 = vld [vmem:[#allocation25_spill] sm:$0xff]  ;;  %v3065_v1 = vmul.f32 %v2940_v6, %v2935_v10 }
 0x21b   : > { %9210 = vst [vmem:[#allocation117_spill] sm:$0xff] %v7385_v44  ;;  %9212 = vst [vmem:[#allocation118_spill] sm:$0xff] %v7388_v46  ;;  %v2960_v28 = vrot.slane %v9229_v32, %v9223_v63  ;;  %v2964_v34 = vrot.slane %v9230_v25, %v9223_v63  ;;  %v9231_v58 = vld [vmem:[#allocation26_spill] sm:$0xff]  ;;  %v9232_v37 = vld [vmem:[#allocation27_spill] sm:$0xff]  ;;  %v3067_v5 = vmul.f32 %v2948_v14, %v2935_v10 }
 0x21c   : > { %9214 = vst [vmem:[#allocation119_spill] sm:$0xff] %v7391_v20  ;;  %9216 = vst [vmem:[#allocation74_spill] sm:$0xff] %v7394_v2  ;;  %v2968_v60 = vrot.slane %v9231_v58, %v9223_v63  ;;  %v2972_v29 = vrot.slane %v9232_v37, %v9223_v63  ;;  %v9233_v22 = vld [vmem:[#allocation28_spill] sm:$0xff]  ;;  %v9234_v23 = vld [vmem:[#allocation29_spill] sm:$0xff]  ;;  %v3068_v62 = vmul.f32 %v2952_v40, %v2935_v10 }
 0x21d   : > { %9218 = vst [vmem:[#allocation75_spill] sm:$0xff] %v7397_v45  ;;  %9220 = vst [vmem:[#allocation76_spill] sm:$0xff] %v7400_v13  ;;  %v2976_v53 = vrot.slane %v9233_v22, %v9223_v63  ;;  %v2980_v4 = vrot.slane %v9234_v23, %v9223_v63  ;;  %v9235_v16 = vld [vmem:[#allocation30_spill] sm:$0xff]  ;;  %v9236_v15 = vld [vmem:[#allocation31_spill] sm:$0xff]  ;;  %v3070_v43 = vmul.f32 %v2960_v28, %v2935_v10 }
 0x21e   : > { %9222 = vst [vmem:[#allocation37_spill] sm:$0xff] %v7403_v31  ;;  %v2984_v52 = vrot.slane %v9235_v16, %v9223_v63  ;;  %v2988_v26 = vrot.slane %v9236_v15, %v9223_v63  ;;  %v9237_v17 = vld [vmem:[#allocation32_spill] sm:$0xff]  ;;  %v9238_v0 = vld [vmem:[#allocation35_spill] sm:$0xff]  ;;  %v9239_v37 = vld [vmem:[#allocation122_spill] sm:$0xff]  ;;  %v3071_v49 = vmul.f32 %v2964_v34, %v2935_v10  ;;  %v3073_v35 = vmul.f32 %v2972_v29, %v2935_v10 }
 0x21f   : > { %v2992_v18 = vrot.slane %v9237_v17, %v9223_v63  ;;  %v2996_v24 = vrot.slane %v9238_v0, %v9223_v63  ;;  %v3000_v58 = vrot.slane %v9239_v37, %v9223_v63  ;;  %v9240_v22 = vld [vmem:[#allocation86_spill] sm:$0xff]  ;;  %v9241_v23 = vld [vmem:[#allocation123_spill] sm:$0xff]  ;;  %v9243_v15 = vld [vmem:[#allocation124_spill] sm:$0xff]  ;;  %v3074_v30 = vmul.f32 %v2976_v53, %v2935_v10 }
 0x220   : > { %v3004_v25 = vrot.slane %v9240_v22, %v9223_v63  ;;  %v3008_v32 = vrot.slane %v9241_v23, %v9223_v63  ;;  %v9242_v16 = vld [vmem:[#allocation87_spill] sm:$0xff]  ;;  %v3016_v8 = vrot.slane %v9243_v15, %v9223_v63  ;;  %v9244_v17 = vld [vmem:[#allocation88_spill] sm:$0xff]  ;;  %v9245_v0 = vld [vmem:[#allocation125_spill] sm:$0xff]  ;;  %v3076_v3 = vmul.f32 %v2984_v52, %v2935_v10 }
 0x221   : > { %v3012_v50 = vrot.slane %v9242_v16, %v9223_v63  ;;  %v3020_v48 = vrot.slane %v9244_v17, %v9223_v63  ;;  %v3024_v38 = vrot.slane %v9245_v0, %v9223_v63  ;;  %v9246_v37 = vld [vmem:[#allocation89_spill] sm:$0xff]  ;;  %v9247_v22 = vld [vmem:[#allocation126_spill] sm:$0xff]  ;;  %v9249_v16 = vld [vmem:[#allocation127_spill] sm:$0xff]  ;;  %v3077_v57 = vmul.f32 %v2988_v26, %v2935_v10 }
 0x222   : > { %v3028_v31 = vrot.slane %v9246_v37, %v9223_v63  ;;  %v3032_v13 = vrot.slane %v9247_v22, %v9223_v63  ;;  %v9248_v23 = vld [vmem:[#allocation90_spill] sm:$0xff]  ;;  %v3040_v2 = vrot.slane %v9249_v16, %v9223_v63  ;;  %v9250_v15 = vld [vmem:[#allocation91_spill] sm:$0xff]  ;;  %v9251_v17 = vld [vmem:[#allocation128_spill] sm:$0xff]  ;;  %v3066_v16 = vmul.f32 %v2944_v7, %v2935_v10 }
 0x223   : > { %v3036_v45 = vrot.slane %v9248_v23, %v9223_v63  ;;  %v3044_v20 = vrot.slane %v9250_v15, %v9223_v63  ;;  %v3048_v46 = vrot.slane %v9251_v17, %v9223_v63  ;;  %v9252_v0 = vld [vmem:[#allocation92_spill] sm:$0xff]  ;;  %v9253_v37 = vld [vmem:[#allocation129_spill] sm:$0xff]  ;;  %v3064_v23 = vrot.slane %v9026_v36, %v9223_v63 }
 0x224   : > { %v3052_v44 = vrot.slane %v9252_v0, %v9223_v63  ;;  %v3056_v61 = vrot.slane %v9253_v37, %v9223_v63  ;;  %v9254_v22 = vld [vmem:[#allocation93_spill] sm:$0xff]  ;;  %v3069_v15 = vmul.f32 %v2956_v41, %v2935_v10  ;;  %v3072_v17 = vmul.f32 %v2968_v60, %v2935_v10 }
 0x225   : > { %v3060_v42 = vrot.slane %v9254_v22, %v9223_v63  ;;  %v3075_v0 = vmul.f32 %v2980_v4, %v2935_v10  ;;  %v3078_v37 = vmul.f32 %v2992_v18, %v2935_v10  ;;  %v3079_v21 = vmul.f32 %v2996_v24, %v2935_v10 }
 0x226   : > { %v3080_v33 = vmul.f32 %v3000_v58, %v2935_v10  ;;  %v3081_v22 = vmul.f32 %v3004_v25, %v2935_v10  ;;  %v3082_v39 = vmul.f32 %v3008_v32, %v2935_v10  ;;  %v3083_v51 = vmul.f32 %v3012_v50, %v2935_v10  ;;  %v9281_v50 = vld [vmem:[#allocation115_spill] sm:$0xff] }
 0x227   : > { %v3084_v63 = vmul.f32 %v3016_v8, %v2935_v10  ;;  %v3085_v6 = vmul.f32 %v3020_v48, %v2935_v10  ;;  %v3086_v7 = vmul.f32 %v3024_v38, %v2935_v10  ;;  %v3087_v14 = vmul.f32 %v3028_v31, %v2935_v10 }
 0x228   : > { %v3088_v40 = vmul.f32 %v3032_v13, %v2935_v10  ;;  %v3089_v41 = vmul.f32 %v3036_v45, %v2935_v10  ;;  %v3090_v28 = vmul.f32 %v3040_v2, %v2935_v10  ;;  %v3091_v34 = vmul.f32 %v3044_v20, %v2935_v10  ;;  %v9275_v13 = vld [vmem:[#allocation112_spill] sm:$0xff] }
 0x229   : > { %v3092_v60 = vmul.f32 %v3048_v46, %v2935_v10  ;;  %v3093_v29 = vmul.f32 %v3052_v44, %v2935_v10  ;;  %v3094_v53 = vmul.f32 %v3056_v61, %v2935_v10  ;;  %v3095_v4 = vmul.f32 %v3060_v42, %v2935_v10  ;;  %v9269_v61 = vld [vmem:[#allocation73_spill] sm:$0xff] }
 0x22a   : > { %v3096_v52 = vmul.f32 %v3064_v23, %v2935_v10  ;;  %v7470_v26 = vadd.f32 %v3065_v1, %v7310_v54  ;;  %v7473_v25 = vadd.f32 %v3066_v16, %v7313_v9  ;;  %v7476_v8 = vadd.f32 %v3067_v5, %v7316_v27  ;;  %v9289_v16 = vld [vmem:[#allocation119_spill] sm:$0xff] }
 0x22b   : > { %v7479_v31 = vadd.f32 %v3068_v62, %v7319_v11  ;;  %v7482_v2 = vadd.f32 %v3069_v15, %v7322_v19  ;;  %v7485_v44 = vadd.f32 %v3070_v43, %v7325_v56  ;;  %v7488_v42 = vadd.f32 %v3071_v49, %v7328_v55  ;;  %v9255_v11 = vld [vmem:[#allocation66_spill] sm:$0xff]  ;;  %v9257_v19 = vld [vmem:[#allocation67_spill] sm:$0xff]  ;;  %v9259_v56 = vld [vmem:[#allocation68_spill] sm:$0xff] }
 0x22c   : > { %v7491_v54 = vadd.f32 %v3072_v17, %v7331_v12  ;;  %v7494_v9 = vadd.f32 %v3073_v35, %v7334_v59  ;;  %v7497_v27 = vadd.f32 %v3074_v30, %v7337_v47  ;;  %v7500_v62 = vadd.f32 %v3075_v0, %v9255_v11  ;;  %v9261_v55 = vld [vmem:[#allocation69_spill] sm:$0xff]  ;;  %v9263_v12 = vld [vmem:[#allocation70_spill] sm:$0xff]  ;;  %v9265_v59 = vld [vmem:[#allocation71_spill] sm:$0xff] }
 0x22d   : > { %v7503_v5 = vadd.f32 %v3076_v3, %v9257_v19  ;;  %v7506_v43 = vadd.f32 %v3077_v57, %v9259_v56  ;;  %v7509_v49 = vadd.f32 %v3078_v37, %v9261_v55  ;;  %v7512_v1 = vadd.f32 %v3079_v21, %v9263_v12  ;;  %v9267_v47 = vld [vmem:[#allocation72_spill] sm:$0xff]  ;;  %v9271_v3 = vld [vmem:[#allocation110_spill] sm:$0xff]  ;;  %v9273_v57 = vld [vmem:[#allocation111_spill] sm:$0xff] }
 0x22e   : > { %9256 = vst [vmem:[#allocation77_spill] sm:$0xff] %v7500_v62  ;;  %v7515_v35 = vadd.f32 %v3080_v33, %v9265_v59  ;;  %v7518_v30 = vadd.f32 %v3081_v22, %v9267_v47  ;;  %v7521_v46 = vadd.f32 %v3082_v39, %v9269_v61  ;;  %v7524_v20 = vadd.f32 %v3083_v51, %v9271_v3  ;;  %v9277_v21 = vld [vmem:[#allocation113_spill] sm:$0xff]  ;;  %v9279_v33 = vld [vmem:[#allocation114_spill] sm:$0xff]  ;;  %v9283_v39 = vld [vmem:[#allocation116_spill] sm:$0xff] }
 0x22f   : > { %9258 = vst [vmem:[#allocation78_spill] sm:$0xff] %v7503_v5  ;;  %9260 = vst [vmem:[#allocation79_spill] sm:$0xff] %v7506_v43  ;;  %v7527_v45 = vadd.f32 %v3084_v63, %v9273_v57  ;;  %v7530_v38 = vadd.f32 %v3085_v6, %v9275_v13  ;;  %v7533_v48 = vadd.f32 %v3086_v7, %v9277_v21  ;;  %v9285_v51 = vld [vmem:[#allocation117_spill] sm:$0xff]  ;;  %v9287_v22 = vld [vmem:[#allocation118_spill] sm:$0xff] }
 0x230   : > { %9262 = vst [vmem:[#allocation80_spill] sm:$0xff] %v7509_v49  ;;  %9264 = vst [vmem:[#allocation81_spill] sm:$0xff] %v7512_v1  ;;  %v7536_v10 = vadd.f32 %v3087_v14, %v9279_v33  ;;  %v7539_v32 = vadd.f32 %v3088_v40, %v9281_v50  ;;  %v7542_v58 = vadd.f32 %v3089_v41, %v9283_v39  ;;  %v9291_v17 = vld [vmem:[#allocation74_spill] sm:$0xff]  ;;  %v9293_v0 = vld [vmem:[#allocation75_spill] sm:$0xff] }
 0x231   : > { %9266 = vst [vmem:[#allocation82_spill] sm:$0xff] %v7515_v35  ;;  %9268 = vst [vmem:[#allocation83_spill] sm:$0xff] %v7518_v30  ;;  %v7545_v37 = vadd.f32 %v3090_v28, %v9285_v51  ;;  %v7548_v23 = vadd.f32 %v3091_v34, %v9287_v22  ;;  %v7551_v15 = vadd.f32 %v3092_v60, %v9289_v16  ;;  %v9295_v63 = vld [vmem:[#allocation76_spill] sm:$0xff]  ;;  %v9297_v7 = vld [vmem:[#allocation37_spill] sm:$0xff] }
 0x232   : > { %9270 = vst [vmem:[#allocation84_spill] sm:$0xff] %v7521_v46  ;;  %9272 = vst [vmem:[#allocation85_spill] sm:$0xff] %v7524_v20  ;;  %v7554_v18 = vadd.f32 %v3093_v29, %v9291_v17  ;;  %v7557_v24 = vadd.f32 %v3094_v53, %v9293_v0  ;;  %v7560_v6 = vadd.f32 %v3095_v4, %v9295_v63  ;;  %v9299_v40 = vld [vmem:[#allocation40_spill] sm:$0xff]  ;;  %v9300_v41 = vld [vmem:[#allocation17_spill] sm:$0xff] }
 0x233   : > { %9274 = vst [vmem:[#allocation3_spill] sm:$0xff] %v7527_v45  ;;  %9276 = vst [vmem:[#allocation5_spill] sm:$0xff] %v7530_v38  ;;  %v7563_v14 = vadd.f32 %v3096_v52, %v9297_v7  ;;  %v3136_v28 = vrot.slane %v9300_v41, %v9299_v40  ;;  %v9301_v34 = vld [vmem:[#allocation18_spill] sm:$0xff]  ;;  %v9302_v60 = vld [vmem:[#allocation19_spill] sm:$0xff] }
 0x234   : > { %9278 = vst [vmem:[#allocation6_spill] sm:$0xff] %v7533_v48  ;;  %9280 = vst [vmem:[#allocation7_spill] sm:$0xff] %v7536_v10  ;;  %v3140_v11 = vrot.slane %v9301_v34, %v9299_v40  ;;  %v3144_v19 = vrot.slane %v9302_v60, %v9299_v40  ;;  %v9303_v29 = vld [vmem:[#allocation20_spill] sm:$0xff]  ;;  %v9304_v53 = vld [vmem:[#allocation23_spill] sm:$0xff] }
 0x235   : > { %9282 = vst [vmem:[#allocation8_spill] sm:$0xff] %v7539_v32  ;;  %9284 = vst [vmem:[#allocation9_spill] sm:$0xff] %v7542_v58  ;;  %v3148_v56 = vrot.slane %v9303_v29, %v9299_v40  ;;  %v3152_v55 = vrot.slane %v9304_v53, %v9299_v40  ;;  %v9305_v4 = vld [vmem:[#allocation24_spill] sm:$0xff]  ;;  %v9306_v52 = vld [vmem:[#allocation25_spill] sm:$0xff] }
 0x236   : > { %9286 = vst [vmem:[#allocation10_spill] sm:$0xff] %v7545_v37  ;;  %9288 = vst [vmem:[#allocation11_spill] sm:$0xff] %v7548_v23  ;;  %v3156_v12 = vrot.slane %v9305_v4, %v9299_v40  ;;  %v3160_v59 = vrot.slane %v9306_v52, %v9299_v40  ;;  %v9307_v47 = vld [vmem:[#allocation26_spill] sm:$0xff]  ;;  %v9308_v3 = vld [vmem:[#allocation27_spill] sm:$0xff] }
 0x237   : > { %9290 = vst [vmem:[#allocation12_spill] sm:$0xff] %v7551_v15  ;;  %9292 = vst [vmem:[#allocation13_spill] sm:$0xff] %v7554_v18  ;;  %v3164_v61 = vrot.slane %v9307_v47, %v9299_v40  ;;  %v3168_v57 = vrot.slane %v9308_v3, %v9299_v40  ;;  %v9309_v13 = vld [vmem:[#allocation28_spill] sm:$0xff]  ;;  %v9310_v33 = vld [vmem:[#allocation29_spill] sm:$0xff] }
 0x238   : > { %9294 = vst [vmem:[#allocation14_spill] sm:$0xff] %v7557_v24  ;;  %9296 = vst [vmem:[#allocation15_spill] sm:$0xff] %v7560_v6  ;;  %v3172_v21 = vrot.slane %v9309_v13, %v9299_v40  ;;  %v3176_v50 = vrot.slane %v9310_v33, %v9299_v40  ;;  %v9311_v39 = vld [vmem:[#allocation30_spill] sm:$0xff]  ;;  %v9312_v22 = vld [vmem:[#allocation31_spill] sm:$0xff]  ;;  %v3131_v33 = vpop.permute.xlu0 %3130 }
 0x239   : > { %9298 = vst [vmem:[#allocation16_spill] sm:$0xff] %v7563_v14  ;;  %v3180_v51 = vrot.slane %v9311_v39, %v9299_v40  ;;  %v3184_v16 = vrot.slane %v9312_v22, %v9299_v40  ;;  %v9313_v17 = vld [vmem:[#allocation32_spill] sm:$0xff]  ;;  %v9314_v63 = vld [vmem:[#allocation35_spill] sm:$0xff]  ;;  %v9315_v41 = vld [vmem:[#allocation122_spill] sm:$0xff]  ;;  %v3261_v10 = vmul.f32 %v3136_v28, %v3131_v33  ;;  %v3263_v48 = vmul.f32 %v3144_v19, %v3131_v33 }
 0x23a   : > { %v3188_v0 = vrot.slane %v9313_v17, %v9299_v40  ;;  %v3192_v7 = vrot.slane %v9314_v63, %v9299_v40  ;;  %v3196_v34 = vrot.slane %v9315_v41, %v9299_v40  ;;  %v9316_v60 = vld [vmem:[#allocation86_spill] sm:$0xff]  ;;  %v9317_v53 = vld [vmem:[#allocation123_spill] sm:$0xff]  ;;  %v9319_v3 = vld [vmem:[#allocation124_spill] sm:$0xff]  ;;  %v3264_v38 = vmul.f32 %v3148_v56, %v3131_v33 }
 0x23b   : > { %v3200_v29 = vrot.slane %v9316_v60, %v9299_v40  ;;  %v3204_v4 = vrot.slane %v9317_v53, %v9299_v40  ;;  %v9318_v52 = vld [vmem:[#allocation87_spill] sm:$0xff]  ;;  %v3212_v13 = vrot.slane %v9319_v3, %v9299_v40  ;;  %v9320_v39 = vld [vmem:[#allocation88_spill] sm:$0xff]  ;;  %v9321_v17 = vld [vmem:[#allocation125_spill] sm:$0xff]  ;;  %v3266_v45 = vmul.f32 %v3156_v12, %v3131_v33 }
 0x23c   : > { %v3208_v47 = vrot.slane %v9318_v52, %v9299_v40  ;;  %v3216_v22 = vrot.slane %v9320_v39, %v9299_v40  ;;  %v3220_v63 = vrot.slane %v9321_v17, %v9299_v40  ;;  %v9322_v41 = vld [vmem:[#allocation89_spill] sm:$0xff]  ;;  %v9323_v60 = vld [vmem:[#allocation126_spill] sm:$0xff]  ;;  %v9325_v52 = vld [vmem:[#allocation127_spill] sm:$0xff]  ;;  %v3267_v20 = vmul.f32 %v3160_v59, %v3131_v33 }
 0x23d   : > { %v3224_v14 = vrot.slane %v9322_v41, %v9299_v40  ;;  %v3228_v6 = vrot.slane %v9323_v60, %v9299_v40  ;;  %v9324_v53 = vld [vmem:[#allocation90_spill] sm:$0xff]  ;;  %v3236_v18 = vrot.slane %v9325_v52, %v9299_v40  ;;  %v9326_v3 = vld [vmem:[#allocation91_spill] sm:$0xff]  ;;  %v9327_v39 = vld [vmem:[#allocation128_spill] sm:$0xff]  ;;  %v3262_v52 = vmul.f32 %v3140_v11, %v3131_v33 }
 0x23e   : > { %v3232_v24 = vrot.slane %v9324_v53, %v9299_v40  ;;  %v3240_v15 = vrot.slane %v9326_v3, %v9299_v40  ;;  %v3244_v23 = vrot.slane %v9327_v39, %v9299_v40  ;;  %v9328_v17 = vld [vmem:[#allocation92_spill] sm:$0xff]  ;;  %v9329_v41 = vld [vmem:[#allocation129_spill] sm:$0xff]  ;;  %v3260_v53 = vrot.slane %v9026_v36, %v9299_v40 }
 0x23f   : > { %v3248_v37 = vrot.slane %v9328_v17, %v9299_v40  ;;  %v3252_v58 = vrot.slane %v9329_v41, %v9299_v40  ;;  %v9330_v60 = vld [vmem:[#allocation93_spill] sm:$0xff]  ;;  %v3265_v3 = vmul.f32 %v3152_v55, %v3131_v33  ;;  %v3268_v39 = vmul.f32 %v3164_v61, %v3131_v33 }
 0x240   : > { %v3256_v32 = vrot.slane %v9330_v60, %v9299_v40  ;;  %v3269_v46 = vmul.f32 %v3168_v57, %v3131_v33  ;;  %v3270_v30 = vmul.f32 %v3172_v21, %v3131_v33  ;;  %v3271_v17 = vmul.f32 %v3176_v50, %v3131_v33 }
 0x241   : > { %v3272_v35 = vmul.f32 %v3180_v51, %v3131_v33  ;;  %v3273_v1 = vmul.f32 %v3184_v16, %v3131_v33  ;;  %v3274_v41 = vmul.f32 %v3188_v0, %v3131_v33  ;;  %v3275_v49 = vmul.f32 %v3192_v7, %v3131_v33  ;;  %v9353_v7 = vld [vmem:[#allocation6_spill] sm:$0xff] }
 0x242   : > { %v3276_v43 = vmul.f32 %v3196_v34, %v3131_v33  ;;  %v3277_v60 = vmul.f32 %v3200_v29, %v3131_v33  ;;  %v3278_v5 = vmul.f32 %v3204_v4, %v3131_v33  ;;  %v3279_v62 = vmul.f32 %v3208_v47, %v3131_v33  ;;  %v9355_v34 = vld [vmem:[#allocation7_spill] sm:$0xff]  ;;  %v9357_v4 = vld [vmem:[#allocation8_spill] sm:$0xff] }
 0x243   : > { %v3280_v36 = vmul.f32 %v3212_v13, %v3131_v33  ;;  %v3281_v40 = vmul.f32 %v3216_v22, %v3131_v33  ;;  %v3282_v28 = vmul.f32 %v3220_v63, %v3131_v33  ;;  %v3283_v11 = vmul.f32 %v3224_v14, %v3131_v33  ;;  %v9361_v13 = vld [vmem:[#allocation10_spill] sm:$0xff]  ;;  %v9363_v22 = vld [vmem:[#allocation11_spill] sm:$0xff] }
 0x244   : > { %v3284_v19 = vmul.f32 %v3228_v6, %v3131_v33  ;;  %v3285_v56 = vmul.f32 %v3232_v24, %v3131_v33  ;;  %v3286_v55 = vmul.f32 %v3236_v18, %v3131_v33  ;;  %v3287_v12 = vmul.f32 %v3240_v15, %v3131_v33  ;;  %v9351_v6 = vld [vmem:[#allocation5_spill] sm:$0xff] }
 0x245   : > { %v3288_v59 = vmul.f32 %v3244_v23, %v3131_v33  ;;  %v3289_v61 = vmul.f32 %v3248_v37, %v3131_v33  ;;  %v3290_v57 = vmul.f32 %v3252_v58, %v3131_v33  ;;  %v3291_v21 = vmul.f32 %v3256_v32, %v3131_v33  ;;  %v9345_v58 = vld [vmem:[#allocation84_spill] sm:$0xff] }
 0x246   : > { %v3292_v50 = vmul.f32 %v3260_v53, %v3131_v33  ;;  %v7630_v51 = vadd.f32 %v3261_v10, %v7470_v26  ;;  %v7633_v16 = vadd.f32 %v3262_v52, %v7473_v25  ;;  %v7636_v0 = vadd.f32 %v3263_v48, %v7476_v8  ;;  %v9365_v53 = vld [vmem:[#allocation12_spill] sm:$0xff] }
 0x247   : > { %v7639_v14 = vadd.f32 %v3264_v38, %v7479_v31  ;;  %v7642_v18 = vadd.f32 %v3265_v3, %v7482_v2  ;;  %v7645_v37 = vadd.f32 %v3266_v45, %v7485_v44  ;;  %v7648_v32 = vadd.f32 %v3267_v20, %v7488_v42  ;;  %v9331_v31 = vld [vmem:[#allocation77_spill] sm:$0xff]  ;;  %v9333_v2 = vld [vmem:[#allocation78_spill] sm:$0xff]  ;;  %v9335_v44 = vld [vmem:[#allocation79_spill] sm:$0xff] }
 0x248   : > { %v7651_v26 = vadd.f32 %v3268_v39, %v7491_v54  ;;  %v7654_v25 = vadd.f32 %v3269_v46, %v7494_v9  ;;  %v7657_v8 = vadd.f32 %v3270_v30, %v7497_v27  ;;  %v7660_v38 = vadd.f32 %v3271_v17, %v9331_v31  ;;  %v9337_v42 = vld [vmem:[#allocation80_spill] sm:$0xff]  ;;  %v9339_v54 = vld [vmem:[#allocation81_spill] sm:$0xff]  ;;  %v9341_v9 = vld [vmem:[#allocation82_spill] sm:$0xff] }
 0x249   : > { %v7663_v48 = vadd.f32 %v3272_v35, %v9333_v2  ;;  %v7666_v45 = vadd.f32 %v3273_v1, %v9335_v44  ;;  %v7669_v20 = vadd.f32 %v3274_v41, %v9337_v42  ;;  %v7672_v10 = vadd.f32 %v3275_v49, %v9339_v54  ;;  %v9343_v27 = vld [vmem:[#allocation83_spill] sm:$0xff]  ;;  %v9347_v35 = vld [vmem:[#allocation85_spill] sm:$0xff]  ;;  %v9369_v17 = vld [vmem:[#allocation14_spill] sm:$0xff] }
 0x24a   : > { %9332 = vst [vmem:[#allocation4_spill] sm:$0xff] %v7660_v38  ;;  %v7675_v46 = vadd.f32 %v3276_v43, %v9341_v9  ;;  %v7678_v30 = vadd.f32 %v3277_v60, %v9343_v27  ;;  %v7681_v23 = vadd.f32 %v3278_v5, %v9345_v58  ;;  %v7684_v15 = vadd.f32 %v3279_v62, %v9347_v35  ;;  %v9349_v1 = vld [vmem:[#allocation3_spill] sm:$0xff]  ;;  %v9359_v62 = vld [vmem:[#allocation9_spill] sm:$0xff]  ;;  %v3810_v2 = vld [vmem:[%s4076_s6 + $0x128] sm:$0xff] }
 0x24b   : > { %9334 = vst [vmem:[#allocation130_spill] sm:$0xff] %v7663_v48  ;;  %9336 = vst [vmem:[#allocation94_spill] sm:$0xff] %v7666_v45  ;;  %v7687_v24 = vadd.f32 %v3280_v36, %v9349_v1  ;;  %v7690_v49 = vadd.f32 %v3281_v40, %v9351_v6  ;;  %v7693_v43 = vadd.f32 %v3282_v28, %v9353_v7  ;;  %v9367_v3 = vld [vmem:[#allocation13_spill] sm:$0xff]  ;;  %v9371_v60 = vld [vmem:[#allocation15_spill] sm:$0xff] }
 0x24c   : > { %9338 = vst [vmem:[#allocation131_spill] sm:$0xff] %v7669_v20  ;;  %9340 = vst [vmem:[#allocation95_spill] sm:$0xff] %v7672_v10  ;;  %v7696_v29 = vadd.f32 %v3283_v11, %v9355_v34  ;;  %v7699_v5 = vadd.f32 %v3284_v19, %v9357_v4  ;;  %v7702_v47 = vadd.f32 %v3285_v56, %v9359_v62  ;;  %v9373_v40 = vld [vmem:[#allocation16_spill] sm:$0xff]  ;;  %v7726_v11 = vld [vmem:[%s4076_s6 + $0x100] sm:$0xff] }
 0x24d   : > { %9342 = vst [vmem:[#allocation132_spill] sm:$0xff] %v7675_v46  ;;  %9344 = vst [vmem:[#allocation96_spill] sm:$0xff] %v7678_v30  ;;  %v7705_v33 = vadd.f32 %v3286_v55, %v9361_v13  ;;  %v7708_v63 = vadd.f32 %v3287_v12, %v9363_v22  ;;  %v7711_v52 = vadd.f32 %v3288_v59, %v9365_v53  ;;  %v9375_v19 = vld [vmem:[#allocation41_spill] sm:$0xff]  ;;  %v7731_v55 = vld [vmem:[%s4076_s6 + $0x108] sm:$0xff] }
 0x24e   : > { %9346 = vst [vmem:[#allocation133_spill] sm:$0xff] %v7681_v23  ;;  %9348 = vst [vmem:[#allocation97_spill] sm:$0xff] %v7684_v15  ;;  %v7714_v39 = vadd.f32 %v3289_v61, %v9367_v3  ;;  %v7717_v41 = vadd.f32 %v3290_v57, %v9369_v17  ;;  %v7720_v36 = vadd.f32 %v3291_v21, %v9371_v60  ;;  %v7736_v59 = vld [vmem:[%s4076_s6 + $0x110] sm:$0xff]  ;;  %v7741_v57 = vld [vmem:[%s4076_s6 + $0x118] sm:$0xff] }
 0x24f   : > { %9350 = vst [vmem:[#allocation134_spill] sm:$0xff] %v7687_v24  ;;  %9352 = vst [vmem:[#allocation98_spill] sm:$0xff] %v7690_v49  ;;  %v7723_v28 = vadd.f32 %v3292_v50, %v9373_v40  ;;  %v3340_v61 = vrot.slane %v7736_v59, %v9375_v19  ;;  %v3344_v21 = vrot.slane %v7741_v57, %v9375_v19  ;;  %v3809_v50 = vld [vmem:[%s4076_s6 + $0x120] sm:$0xff]  ;;  %v3811_v42 = vld [vmem:[%s4076_s6 + $0x130] sm:$0xff] }
 0x250   : > { %9354 = vst [vmem:[#allocation135_spill] sm:$0xff] %v7693_v43  ;;  %9356 = vst [vmem:[#allocation99_spill] sm:$0xff] %v7696_v29  ;;  %v3348_v31 = vrot.slane %v3809_v50, %v9375_v19  ;;  %v3352_v44 = vrot.slane %v3810_v2, %v9375_v19  ;;  %v3356_v54 = vrot.slane %v3811_v42, %v9375_v19  ;;  %v3812_v9 = vld [vmem:[%s4076_s6 + $0x138] sm:$0xff]  ;;  %v3813_v58 = vld [vmem:[%s4076_s6 + $0x140] sm:$0xff] }
 0x251   : > { %9358 = vst [vmem:[#allocation136_spill] sm:$0xff] %v7699_v5  ;;  %9360 = vst [vmem:[#allocation100_spill] sm:$0xff] %v7702_v47  ;;  %v3360_v27 = vrot.slane %v3812_v9, %v9375_v19  ;;  %v3364_v35 = vrot.slane %v3813_v58, %v9375_v19  ;;  %v3814_v1 = vld [vmem:[%s4076_s6 + $0x148] sm:$0xff]  ;;  %v3815_v7 = vld [vmem:[%s4076_s6 + $0x150] sm:$0xff] }
 0x252   : > { %9362 = vst [vmem:[#allocation137_spill] sm:$0xff] %v7705_v33  ;;  %9364 = vst [vmem:[#allocation101_spill] sm:$0xff] %v7708_v63  ;;  %v3368_v6 = vrot.slane %v3814_v1, %v9375_v19  ;;  %v3372_v34 = vrot.slane %v3815_v7, %v9375_v19  ;;  %v3816_v4 = vld [vmem:[%s4076_s6 + $0x158] sm:$0xff]  ;;  %v3817_v13 = vld [vmem:[%s4076_s6 + $0x160] sm:$0xff] }
 0x253   : > { %9366 = vst [vmem:[#allocation138_spill] sm:$0xff] %v7711_v52  ;;  %9368 = vst [vmem:[#allocation102_spill] sm:$0xff] %v7714_v39  ;;  %v3376_v62 = vrot.slane %v3816_v4, %v9375_v19  ;;  %v3380_v22 = vrot.slane %v3817_v13, %v9375_v19  ;;  %v3818_v53 = vld [vmem:[%s4076_s6 + $0x168] sm:$0xff]  ;;  %v3819_v17 = vld [vmem:[%s4076_s6 + $0x170] sm:$0xff]  ;;  %v3327_v4 = vpop.permute.xlu1 %3326 }
 0x254   : > { %9370 = vst [vmem:[#allocation139_spill] sm:$0xff] %v7717_v41  ;;  %9372 = vst [vmem:[#allocation103_spill] sm:$0xff] %v7720_v36  ;;  %v3384_v3 = vrot.slane %v3818_v53, %v9375_v19  ;;  %v3388_v60 = vrot.slane %v3819_v17, %v9375_v19  ;;  %v3820_v40 = vld [vmem:[%s4076_s6 + $0x178] sm:$0xff]  ;;  %v3821_v57 = vld [vmem:[%s4076_s6 + $0x180] sm:$0xff]  ;;  %v3459_v43 = vmul.f32 %v3340_v61, %v3327_v4 }
 0x255   : > { %9374 = vst [vmem:[#allocation140_spill] sm:$0xff] %v7723_v28  ;;  %v3392_v59 = vrot.slane %v3820_v40, %v9375_v19  ;;  %v3396_v50 = vrot.slane %v3821_v57, %v9375_v19  ;;  %v3822_v2 = vld [vmem:[%s4076_s6 + $0x188] sm:$0xff]  ;;  %v3823_v9 = vld [vmem:[%s4076_s6 + $0x190] sm:$0xff]  ;;  %v3824_v1 = vld [vmem:[%s4076_s6 + $0x198] sm:$0xff]  ;;  %v3460_v49 = vmul.f32 %v3344_v21, %v3327_v4  ;;  %v3462_v24 = vmul.f32 %v3352_v44, %v3327_v4 }
 0x256   : > { %v3400_v42 = vrot.slane %v3822_v2, %v9375_v19  ;;  %v3404_v58 = vrot.slane %v3823_v9, %v9375_v19  ;;  %v3408_v7 = vrot.slane %v3824_v1, %v9375_v19  ;;  %v3825_v13 = vld [vmem:[%s4076_s6 + $0x1a0] sm:$0xff]  ;;  %v3826_v17 = vld [vmem:[%s4076_s6 + $0x1a8] sm:$0xff]  ;;  %v3827_v57 = vld [vmem:[%s4076_s6 + $0x1b0] sm:$0xff]  ;;  %v3463_v15 = vmul.f32 %v3356_v54, %v3327_v4 }
 0x257   : > { %v3412_v53 = vrot.slane %v3825_v13, %v9375_v19  ;;  %v3416_v40 = vrot.slane %v3826_v17, %v9375_v19  ;;  %v3420_v2 = vrot.slane %v3827_v57, %v9375_v19  ;;  %v3828_v12 = vld [vmem:[%s4076_s6 + $0x1b8] sm:$0xff]  ;;  %v3829_v56 = vld [vmem:[%s4076_s6 + $0x1c0] sm:$0xff]  ;;  %v3830_v28 = vld [vmem:[%s4076_s6 + $0x1c8] sm:$0xff]  ;;  %v3465_v23 = vmul.f32 %v3364_v35, %v3327_v4 }
 0x258   : > { %v3424_v9 = vrot.slane %v3828_v12, %v9375_v19  ;;  %v3428_v1 = vrot.slane %v3829_v56, %v9375_v19  ;;  %v3432_v36 = vrot.slane %v3830_v28, %v9375_v19  ;;  %v3831_v41 = vld [vmem:[%s4076_s6 + $0x1d0] sm:$0xff]  ;;  %v3832_v39 = vld [vmem:[%s4076_s6 + $0x1d8] sm:$0xff]  ;;  %v3833_v52 = vld [vmem:[%s4076_s6 + $0x1e0] sm:$0xff]  ;;  %v9376_v28 = vrot.slane %v7726_v11, %v9375_v19 }
 0x259   : > { %v3436_v13 = vrot.slane %v3831_v41, %v9375_v19  ;;  %v3440_v17 = vrot.slane %v3832_v39, %v9375_v19  ;;  %v3444_v63 = vrot.slane %v3833_v52, %v9375_v19  ;;  %v3834_v57 = vld [vmem:[%s4076_s6 + $0x1e8] sm:$0xff]  ;;  %v3835_v47 = vld [vmem:[%s4076_s6 + $0x1f0] sm:$0xff]  ;;  %v3836_v5 = vld [vmem:[%s4076_s6 + $0x1f8] sm:$0xff]  ;;  %v9377_v41 = vrot.slane %v7731_v55, %v9375_v19 }
 0x25a   : > { %v3448_v33 = vrot.slane %v3834_v57, %v9375_v19  ;;  %v3452_v12 = vrot.slane %v3835_v47, %v9375_v19  ;;  %v3456_v56 = vrot.slane %v3836_v5, %v9375_v19  ;;  %v3457_v29 = vmul.f32 %v9376_v28, %v3327_v4 }
 0x25b   : > { %v3458_v39 = vmul.f32 %v9377_v41, %v3327_v4  ;;  %v3461_v52 = vmul.f32 %v3348_v31, %v3327_v4  ;;  %v3464_v57 = vmul.f32 %v3360_v27, %v3327_v4  ;;  %v3466_v30 = vmul.f32 %v3368_v6, %v3327_v4 }
 0x25c   : > { %v3467_v47 = vmul.f32 %v3372_v34, %v3327_v4  ;;  %v3468_v46 = vmul.f32 %v3376_v62, %v3327_v4  ;;  %v3469_v10 = vmul.f32 %v3380_v22, %v3327_v4  ;;  %v3470_v5 = vmul.f32 %v3384_v3, %v3327_v4 }
 0x25d   : > { %v3471_v20 = vmul.f32 %v3388_v60, %v3327_v4  ;;  %v3472_v45 = vmul.f32 %v3392_v59, %v3327_v4  ;;  %v3473_v11 = vmul.f32 %v3396_v50, %v3327_v4  ;;  %v3474_v28 = vmul.f32 %v3400_v42, %v3327_v4 }
 0x25e   : > { %v3475_v48 = vmul.f32 %v3404_v58, %v3327_v4  ;;  %v3476_v38 = vmul.f32 %v3408_v7, %v3327_v4  ;;  %v3477_v19 = vmul.f32 %v3412_v53, %v3327_v4  ;;  %v3478_v55 = vmul.f32 %v3416_v40, %v3327_v4  ;;  %v9381_v58 = vld [vmem:[#allocation131_spill] sm:$0xff]  ;;  %v9383_v53 = vld [vmem:[#allocation132_spill] sm:$0xff]  ;;  %v9388_v40 = vld [vmem:[#allocation98_spill] sm:$0xff] }
 0x25f   : > { %v3479_v61 = vmul.f32 %v3420_v2, %v3327_v4  ;;  %v3480_v21 = vmul.f32 %v3424_v9, %v3327_v4  ;;  %v3481_v31 = vmul.f32 %v3428_v1, %v3327_v4  ;;  %v3482_v44 = vmul.f32 %v3432_v36, %v3327_v4  ;;  %v9389_v2 = vld [vmem:[#allocation135_spill] sm:$0xff] }
 0x260   : > { %v3483_v54 = vmul.f32 %v3436_v13, %v3327_v4  ;;  %v3484_v27 = vmul.f32 %v3440_v17, %v3327_v4  ;;  %v3485_v35 = vmul.f32 %v3444_v63, %v3327_v4  ;;  %v3486_v6 = vmul.f32 %v3448_v33, %v3327_v4  ;;  %v9390_v1 = vld [vmem:[#allocation99_spill] sm:$0xff]  ;;  %v9391_v13 = vld [vmem:[#allocation136_spill] sm:$0xff] }
 0x261   : > { %v3487_v34 = vmul.f32 %v3452_v12, %v3327_v4  ;;  %v3488_v62 = vmul.f32 %v3456_v56, %v3327_v4  ;;  %v3489_v22 = vadd.f32 %v3457_v29, %v7630_v51  ;;  %v3490_v3 = vadd.f32 %v3458_v39, %v7633_v16  ;;  %v9378_v29 = vld [vmem:[#allocation4_spill] sm:$0xff]  ;;  %v9382_v4 = vld [vmem:[#allocation95_spill] sm:$0xff]  ;;  %v9393_v56 = vld [vmem:[#allocation137_spill] sm:$0xff] }
 0x262   : > { %v3491_v60 = vadd.f32 %v3459_v43, %v7636_v0  ;;  %v3492_v59 = vadd.f32 %v3460_v49, %v7639_v14  ;;  %v3493_v36 = vadd.f32 %v3461_v52, %v7642_v18  ;;  %v3494_v50 = vadd.f32 %v3462_v24, %v7645_v37  ;;  %v9379_v43 = vld [vmem:[#allocation130_spill] sm:$0xff]  ;;  %v9392_v17 = vld [vmem:[#allocation100_spill] sm:$0xff]  ;;  %v9394_v39 = vld [vmem:[#allocation101_spill] sm:$0xff] }
 0x263   : > { %v3495_v33 = vadd.f32 %v3463_v15, %v7648_v32  ;;  %v3496_v63 = vadd.f32 %v3464_v57, %v7651_v26  ;;  %v3497_v51 = vadd.f32 %v3465_v23, %v7654_v25  ;;  %v3498_v16 = vadd.f32 %v3466_v30, %v7657_v8  ;;  %v9380_v49 = vld [vmem:[#allocation94_spill] sm:$0xff]  ;;  %v9384_v32 = vld [vmem:[#allocation96_spill] sm:$0xff]  ;;  %v9385_v26 = vld [vmem:[#allocation133_spill] sm:$0xff] }
 0x264   : > { %v3499_v0 = vadd.f32 %v3467_v47, %v9378_v29  ;;  %v3500_v14 = vadd.f32 %v3468_v46, %v9379_v43  ;;  %v3501_v42 = vadd.f32 %v3469_v10, %v9380_v49  ;;  %v3502_v7 = vadd.f32 %v3470_v5, %v9381_v58  ;;  %v9386_v25 = vld [vmem:[#allocation97_spill] sm:$0xff]  ;;  %v9387_v30 = vld [vmem:[#allocation134_spill] sm:$0xff]  ;;  %v3525_v46 = vpop.permute.xlu1 %3524  ;;  %v9399_v29 = vld [vmem:[#allocation140_spill] sm:$0xff] }
 0x265   : > { %v3503_v18 = vadd.f32 %v3471_v20, %v9382_v4  ;;  %v3504_v37 = vadd.f32 %v3472_v45, %v9383_v53  ;;  %v3505_v15 = vadd.f32 %v3473_v11, %v9384_v32  ;;  %v3506_v24 = vadd.f32 %v3474_v28, %v9385_v26  ;;  %v9395_v57 = vld [vmem:[#allocation138_spill] sm:$0xff]  ;;  %v9398_v28 = vld [vmem:[#allocation103_spill] sm:$0xff] }
 0x266   : > { %v3507_v8 = vadd.f32 %v3475_v48, %v9386_v25  ;;  %v3508_v23 = vadd.f32 %v3476_v38, %v9387_v30  ;;  %v3509_v10 = vadd.f32 %v3477_v19, %v9388_v40  ;;  %v3510_v9 = vadd.f32 %v3478_v55, %v9389_v2  ;;  %v9396_v48 = vld [vmem:[#allocation102_spill] sm:$0xff]  ;;  %v9397_v38 = vld [vmem:[#allocation139_spill] sm:$0xff] }
 0x267   : > { %v3511_v20 = vadd.f32 %v3479_v61, %v9390_v1  ;;  %v3512_v45 = vadd.f32 %v3480_v21, %v9391_v13  ;;  %v3513_v12 = vadd.f32 %v3481_v31, %v9392_v17  ;;  %v3514_v41 = vadd.f32 %v3482_v44, %v9393_v56 }
 0x268   : > { %v3515_v52 = vadd.f32 %v3483_v54, %v9394_v39  ;;  %v3516_v47 = vadd.f32 %v3484_v27, %v9395_v57  ;;  %v3517_v5 = vadd.f32 %v3485_v35, %v9396_v48  ;;  %v3518_v11 = vadd.f32 %v3486_v6, %v9397_v38 }
 0x269   : > { %v3519_v19 = vadd.f32 %v3487_v34, %v9398_v28  ;;  %v3520_v55 = vadd.f32 %v3488_v62, %v9399_v29  ;;  %v3527_v61 = vadd.f32 %v3525_v46, %v3489_v22  ;;  %v3528_v21 = vadd.f32 %v3525_v46, %v3490_v3 }
 0x26a   : > { %v3529_v31 = vadd.f32 %v3525_v46, %v3491_v60  ;;  %v3530_v44 = vadd.f32 %v3525_v46, %v3492_v59  ;;  %v3531_v43 = vadd.f32 %v3525_v46, %v3493_v36  ;;  %v3532_v54 = vadd.f32 %v3525_v46, %v3494_v50 }
 0x26b   : > { %v3533_v49 = vadd.f32 %v3525_v46, %v3495_v33  ;;  %v3534_v27 = vadd.f32 %v3525_v46, %v3496_v63  ;;  %v3535_v58 = vadd.f32 %v3525_v46, %v3497_v51  ;;  %v3536_v35 = vadd.f32 %v3525_v46, %v3498_v16 }
 0x26c   : > { %v3537_v4 = vadd.f32 %v3525_v46, %v3499_v0  ;;  %v3538_v6 = vadd.f32 %v3525_v46, %v3500_v14  ;;  %v3539_v53 = vadd.f32 %v3525_v46, %v3501_v42  ;;  %v3540_v34 = vadd.f32 %v3525_v46, %v3502_v7 }
 0x26d   : > { %v3541_v32 = vadd.f32 %v3525_v46, %v3503_v18  ;;  %v3542_v62 = vadd.f32 %v3525_v46, %v3504_v37  ;;  %v3543_v26 = vadd.f32 %v3525_v46, %v3505_v15  ;;  %v3544_v25 = vadd.f32 %v3525_v46, %v3506_v24 }
 0x26e   : > { %v3545_v22 = vadd.f32 %v3525_v46, %v3507_v8  ;;  %v3546_v30 = vadd.f32 %v3525_v46, %v3508_v23  ;;  %v3547_v3 = vadd.f32 %v3525_v46, %v3509_v10  ;;  %v3548_v60 = vadd.f32 %v3525_v46, %v3510_v9 }
 0x26f   : > { %v3549_v59 = vadd.f32 %v3525_v46, %v3511_v20  ;;  %v3550_v36 = vadd.f32 %v3525_v46, %v3512_v45  ;;  %v3551_v50 = vadd.f32 %v3525_v46, %v3513_v12  ;;  %v3552_v33 = vadd.f32 %v3525_v46, %v3514_v41 }
 0x270   : > { %v3553_v63 = vadd.f32 %v3525_v46, %v3515_v52  ;;  %v3554_v51 = vadd.f32 %v3525_v46, %v3516_v47  ;;  %v3555_v16 = vadd.f32 %v3525_v46, %v3517_v5  ;;  %v3556_v0 = vadd.f32 %v3525_v46, %v3518_v11 }
 0x271   : > { %v3557_v14 = vadd.f32 %v3525_v46, %v3519_v19  ;;  %v3558_v42 = vadd.f32 %v3525_v46, %v3520_v55  ;;  %v3591_v7 = vcombine.low %v3527_v61, %v3528_v21  ;;  %v3592_v18 = vcombine.low %v3529_v31, %v3530_v44 }
 0x272   : > { %v3593_v37 = vcombine.low %v3531_v43, %v3532_v54  ;;  %v3594_v15 = vcombine.low %v3533_v49, %v3534_v27  ;;  %v3595_v24 = vcombine.low %v3535_v58, %v3536_v35  ;;  %v3596_v8 = vcombine.low %v3537_v4, %v3538_v6 }
 0x273   : > { %v3597_v23 = vcombine.low %v3539_v53, %v3540_v34  ;;  %v3598_v40 = vcombine.low %v3541_v32, %v3542_v62  ;;  %v3599_v10 = vcombine.low %v3543_v26, %v3544_v25  ;;  %v3600_v2 = vcombine.low %v3545_v22, %v3546_v30  ;;  %3623 = vst [vmem:[%s7853_s11] sm:$0xff] %v3591_v7 }
 0x274   : > { %v3601_v9 = vcombine.low %v3547_v3, %v3548_v60  ;;  %v3602_v46 = vcombine.low %v3549_v59, %v3550_v36  ;;  %3624 = vst [vmem:[%s7853_s11 + $0x8] sm:$0xff] %v3592_v18  ;;  %3625 = vst [vmem:[%s7853_s11 + $0x10] sm:$0xff] %v3593_v37  ;;  %v3603_v1 = vcombine.low %v3551_v50, %v3552_v33 }
 0x275   : > { %3626 = vst [vmem:[%s7853_s11 + $0x18] sm:$0xff] %v3594_v15  ;;  %v3604_v20 = vcombine.low %v3553_v63, %v3554_v51  ;;  %v3605_v13 = vcombine.low %v3555_v16, %v3556_v0  ;;  %v3606_v45 = vcombine.low %v3557_v14, %v3558_v42  ;;  %3627 = vst [vmem:[%s7853_s11 + $0x20] sm:$0xff] %v3595_v24 }
 0x276   : > { %3628 = vst [vmem:[%s7853_s11 + $0x28] sm:$0xff] %v3596_v8  ;;  %3629 = vst [vmem:[%s7853_s11 + $0x30] sm:$0xff] %v3597_v23 }
 0x277   : > { %3630 = vst [vmem:[%s7853_s11 + $0x38] sm:$0xff] %v3598_v40  ;;  %3631 = vst [vmem:[%s7853_s11 + $0x40] sm:$0xff] %v3599_v10 }
 0x278   : > { %3632 = vst [vmem:[%s7853_s11 + $0x48] sm:$0xff] %v3600_v2  ;;  %3633 = vst [vmem:[%s7853_s11 + $0x50] sm:$0xff] %v3601_v9 }
 0x279   : > { %3634 = vst [vmem:[%s7853_s11 + $0x58] sm:$0xff] %v3602_v46  ;;  %3635 = vst [vmem:[%s7853_s11 + $0x60] sm:$0xff] %v3603_v1 }
 0x27a   : > { %3636 = vst [vmem:[%s7853_s11 + $0x68] sm:$0xff] %v3604_v20  ;;  %3637 = vst [vmem:[%s7853_s11 + $0x70] sm:$0xff] %v3605_v13 }
 0x27b   : > { %3638 = vst [vmem:[%s7853_s11 + $0x78] sm:$0xff] %v3606_v45 }
 0x27c PF: > { %p10_p9 = scmp.ge.s32.totalorder %s3914_s16, 4   ;;  %s9400_s12 = smov %s3855_s13 }
 0x27d   : > { %s9401_s13 = smov %s3923_s19  ;;  %s9402_s14 = smov %s3914_s16 }
 0x27e   :  { %12 = sbr.rel (!%p10_p9) target bundleno = 2 (0x2), region = 90 }

</bundles_post_ra>
